<compile_context>
chip_gen: v7x
topology: tpu7x:2x2x1
jax: 0.10.0
libtpu: 0.0.40
codegen_flags: <defaults>
</compile_context>

<pallas_src>
import functools
import math

import jax
import jax.numpy as jnp
from jax.experimental import pallas as pl
from jax.experimental.pallas import tpu as pltpu

EPS = 1e-5  # nn.LayerNorm default eps

# Row indices inside the stacked per-MAB vector table (8, D).
_BQ, _BK, _BV, _BO, _BFF, _GAMMA, _BETA = range(7)


def _row(ref, i):
    """Read row i of a (8, D) table as a lane-major (1, D) array."""
    return ref[i:i + 1, :]


def _layer_norm(x, gamma, beta):
    # x: (rows, D) float32; gamma/beta: (1, D)
    mu = jnp.mean(x, axis=-1, keepdims=True)
    var = jnp.mean((x - mu) ** 2, axis=-1, keepdims=True)
    return (x - mu) * jax.lax.rsqrt(var + EPS) * gamma + beta


def _mab(xq, ykv, w_ref, v_ref, *, tb, nq, nk, d, head_num):
    """One MAB block on flattened activations.

    xq : (tb*nq, d) queries, ykv: (tb*nk, d) keys/values.
    w_ref: (5, d, d) stacked [Wq, Wk, Wv, Wo, Wff] (input-dim-first).
    v_ref: (8, d) stacked [bq, bk, bv, bo, bff, gamma, beta, 0-pad].
    Returns (tb*nq, d) float32.
    """
    dh = d // head_num
    scale = 1.0 / math.sqrt(dh)

    bq = _row(v_ref, _BQ)
    bk = _row(v_ref, _BK)
    bv = _row(v_ref, _BV)
    bo = _row(v_ref, _BO)
    bff = _row(v_ref, _BFF)
    gamma = _row(v_ref, _GAMMA)
    beta = _row(v_ref, _BETA)

    # QKV projections: (tb*rows, D) x (D, D) MXU matmuls, contracting full D.
    q = jnp.dot(xq, w_ref[0], preferred_element_type=jnp.float32) + bq
    q = q * scale  # fold 1/sqrt(dh) into Q instead of scaling the score matrix
    k = jnp.dot(ykv, w_ref[1], preferred_element_type=jnp.float32) + bk
    v = jnp.dot(ykv, w_ref[2], preferred_element_type=jnp.float32) + bv

    q3 = q.reshape(tb, nq, d)
    k3 = k.reshape(tb, nk, d)
    v3 = v.reshape(tb, nk, d)

    wo = w_ref[3]
    # Per-head scaled-dot-product attention.  The head concat is fused into
    # the output projection: o = sum_h (softmax(q_h k_h^T) v_h) @ Wo[h-rows].
    o = jnp.zeros((tb * nq, d), jnp.float32)
    for h in range(head_num):  # static, small trip count
        sl = slice(h * dh, (h + 1) * dh)
        s = jnp.einsum('bqd,bkd->bqk', q3[..., sl], k3[..., sl],
                       preferred_element_type=jnp.float32)
        s = s - jnp.max(s, axis=-1, keepdims=True)
        p = jnp.exp(s)
        # EUP approximate reciprocal instead of a VALU divide.
        p = p * pl.reciprocal(jnp.sum(p, axis=-1, keepdims=True), approx=True)
        hh = jnp.einsum('bqk,bkd->bqd', p, v3[..., sl],
                        preferred_element_type=jnp.float32)
        o = o + jnp.dot(hh.reshape(tb * nq, dh), wo[sl, :],
                        preferred_element_type=jnp.float32)
    o = o + bo

    # H = LN(att(X, Y, Y) + X); H = LN(H + ff(H))
    # (the reference MAB reuses one LayerNorm module -> shared gamma/beta).
    h1 = _layer_norm(o + xq.astype(jnp.float32), gamma, beta)
    ff = jnp.dot(h1, w_ref[4], preferred_element_type=jnp.float32) + bff
    return _layer_norm(h1 + ff, gamma, beta)


def isab_kernel(x_ref, ind_ref, w1_ref, v1_ref, w2_ref, v2_ref, out_ref, *,
                head_num):
    tb, n, d = x_ref.shape
    m = ind_ref.shape[1]

    # Flatten the folded batch into the row dim (bigger MXU tiles).
    xf = x_ref[...].reshape(tb * n, d)
    indf = ind_ref[...].reshape(tb * m, d)

    # MAB1: queries = inducing points, keys/values = X.  H stays on-chip.
    h = _mab(indf, xf, w1_ref, v1_ref, tb=tb, nq=m, nk=n, d=d,
             head_num=head_num)
    # MAB2: queries = X, keys/values = H.
    out = _mab(xf, h, w2_ref, v2_ref, tb=tb, nq=n, nk=m, d=d,
               head_num=head_num)

    out_ref[...] = out.reshape(tb, n, d).astype(out_ref.dtype)


def isab_forward(x, inducing_point, mab1_params, mab2_params, *,
                 head_num=4, tb=None):
    """Fused ISAB forward: mab2(X, mab1(inducing_point, X))."""
    b, n, d = x.shape
    _, m, _ = inducing_point.shape
    assert d % 128 == 0, "keep the feature dim lane-dense (multiple of 128)"
    assert d % head_num == 0
    if tb is None:
        tb = b  # fold the whole (small) batch into one grid step
    assert b % tb == 0

    w1, v1 = mab1_params
    w2, v2 = mab2_params

    # Constant-index weight/bias specs (same block every grid step).
    # TODO(synk): for large D on v7x, add pipeline_mode=pl.Buffered(1) here to
    #   avoid double-buffering the constant weights in the 64 MiB VMEM.
    wspec = pl.BlockSpec((5, d, d), lambda i: (0, 0, 0))
    vspec = pl.BlockSpec((8, d), lambda i: (0, 0))

    return pl.pallas_call(
        functools.partial(isab_kernel, head_num=head_num),
        out_shape=jax.ShapeDtypeStruct((b, n, d), x.dtype),
        grid=(b // tb,),
        in_specs=[
            pl.BlockSpec((tb, n, d), lambda i: (i, 0, 0)),   # X
            pl.BlockSpec((tb, m, d), lambda i: (i, 0, 0)),   # inducing points
            wspec, vspec,                                    # MAB1 params
            wspec, vspec,                                    # MAB2 params
        ],
        out_specs=pl.BlockSpec((tb, n, d), lambda i: (i, 0, 0)),
        compiler_params=pltpu.CompilerParams(
            dimension_semantics=("parallel",)),
    )(x, inducing_point, w1, v1, w2, v2)


def init_mab_params(key, d):
    """Stacked MAB parameters: (5, d, d) weights and (8, d) vectors."""
    keys = jax.random.split(key, 10)
    s = 1.0 / math.sqrt(d)

    def w(k):
        return jax.random.normal(k, (d, d), jnp.float32) * s

    def bvec(k):
        return jax.random.normal(k, (d,), jnp.float32) * 0.01

    w_stack = jnp.stack(
        [w(keys[0]), w(keys[2]), w(keys[4]), w(keys[6]), w(keys[8])])
    v_stack = jnp.stack([
        bvec(keys[1]), bvec(keys[3]), bvec(keys[5]), bvec(keys[7]),
        bvec(keys[9]),
        jnp.ones((d,), jnp.float32),    # LayerNorm gamma
        jnp.zeros((d,), jnp.float32),   # LayerNorm beta
        jnp.zeros((d,), jnp.float32),   # pad row -> exactly one (8,128) tile
    ])
    return w_stack, v_stack


if __name__ == "__main__":
    # Small, lane-dense configuration: batch=2, set size=16, d_model=128,
    # m_induce=8, head_num=4 (d_head=32).
    B, N, D, M, H = 2, 16, 128, 8, 4

    key = jax.random.PRNGKey(0)
    kx, kind, k1, k2 = jax.random.split(key, 4)

    x = jax.random.normal(kx, (B, N, D), jnp.float32)
    # ISAB's inducing_point Parameter has shape (batch_size, m_induce, d_model)
    # in the reference module, drawn from N(0, 1).
    inducing_point = jax.random.normal(kind, (B, M, D), jnp.float32)

    mab1_params = init_mab_params(k1, D)
    mab2_params = init_mab_params(k2, D)

    out = isab_forward(x, inducing_point, mab1_params, mab2_params,
                       head_num=H)
    jax.block_until_ready(out)

    assert out.shape == (B, N, D), out.shape
    assert bool(jnp.all(jnp.isfinite(out)))
    print("KERNEL_OK")
</pallas_src>

<mosaic_0001>
module attributes {stable_mosaic.version = 11 : i64} {
  func.func @isab_kernel(%arg0: i32, %arg1: memref<2x16x128xf32, #tpu.memory_space<vmem>>, %arg2: memref<2x8x128xf32, #tpu.memory_space<vmem>>, %arg3: memref<5x128x128xf32, #tpu.memory_space<vmem>>, %arg4: memref<8x128xf32, #tpu.memory_space<vmem>>, %arg5: memref<5x128x128xf32, #tpu.memory_space<vmem>>, %arg6: memref<8x128xf32, #tpu.memory_space<vmem>>, %arg7: memref<2x16x128xf32, #tpu.memory_space<vmem>>) attributes {dimension_semantics = [#tpu.dimension_semantics<parallel>], iteration_bounds = array<i64: 1>, scalar_prefetch = 0 : i64, scratch_operands = 0 : i64, tpu.core_type = #tpu.core_type<tc>, window_params = [{transform_indices = @transform_0, window_bounds = array<i64: 2, 16, 128>}, {transform_indices = @transform_1, window_bounds = array<i64: 2, 8, 128>}, {pipeline_mode = #tpu.pipeline_mode<synchronous>, transform_indices = @transform_2, window_bounds = array<i64: 5, 128, 128>}, {pipeline_mode = #tpu.pipeline_mode<synchronous>, transform_indices = @transform_3, window_bounds = array<i64: 8, 128>}, {pipeline_mode = #tpu.pipeline_mode<synchronous>, transform_indices = @transform_4, window_bounds = array<i64: 5, 128, 128>}, {pipeline_mode = #tpu.pipeline_mode<synchronous>, transform_indices = @transform_5, window_bounds = array<i64: 8, 128>}, {transform_indices = @transform_6, window_bounds = array<i64: 2, 16, 128>}]} {
    %c0 = arith.constant 0 : index
    %c0_0 = arith.constant 0 : index
    %c0_1 = arith.constant 0 : index
    %0 = vector.load %arg1[%c0, %c0_0, %c0_1] : memref<2x16x128xf32, #tpu.memory_space<vmem>>, vector<2x16x128xf32>
    %1 = vector.shape_cast %0 : vector<2x16x128xf32> to vector<32x128xf32>
    %c0_2 = arith.constant 0 : index
    %c0_3 = arith.constant 0 : index
    %c0_4 = arith.constant 0 : index
    %2 = vector.load %arg2[%c0_2, %c0_3, %c0_4] : memref<2x8x128xf32, #tpu.memory_space<vmem>>, vector<2x8x128xf32>
    %3 = vector.shape_cast %2 : vector<2x8x128xf32> to vector<16x128xf32>
    %c0_5 = arith.constant 0 : index
    %c0_6 = arith.constant 0 : index
    %4 = vector.load %arg4[%c0_5, %c0_6] : memref<8x128xf32, #tpu.memory_space<vmem>>, vector<1x128xf32>
    %c1 = arith.constant 1 : index
    %c0_7 = arith.constant 0 : index
    %5 = vector.load %arg4[%c1, %c0_7] : memref<8x128xf32, #tpu.memory_space<vmem>>, vector<1x128xf32>
    %c2 = arith.constant 2 : index
    %c0_8 = arith.constant 0 : index
    %6 = vector.load %arg4[%c2, %c0_8] : memref<8x128xf32, #tpu.memory_space<vmem>>, vector<1x128xf32>
    %c3 = arith.constant 3 : index
    %c0_9 = arith.constant 0 : index
    %7 = vector.load %arg4[%c3, %c0_9] : memref<8x128xf32, #tpu.memory_space<vmem>>, vector<1x128xf32>
    %c4 = arith.constant 4 : index
    %c0_10 = arith.constant 0 : index
    %8 = vector.load %arg4[%c4, %c0_10] : memref<8x128xf32, #tpu.memory_space<vmem>>, vector<1x128xf32>
    %c5 = arith.constant 5 : index
    %c0_11 = arith.constant 0 : index
    %9 = vector.load %arg4[%c5, %c0_11] : memref<8x128xf32, #tpu.memory_space<vmem>>, vector<1x128xf32>
    %c6 = arith.constant 6 : index
    %c0_12 = arith.constant 0 : index
    %10 = vector.load %arg4[%c6, %c0_12] : memref<8x128xf32, #tpu.memory_space<vmem>>, vector<1x128xf32>
    %c0_13 = arith.constant 0 : index
    %c0_14 = arith.constant 0 : index
    %c0_15 = arith.constant 0 : index
    %11 = vector.load %arg3[%c0_13, %c0_14, %c0_15] : memref<5x128x128xf32, #tpu.memory_space<vmem>>, vector<1x128x128xf32>
    %12 = vector.shape_cast %11 : vector<1x128x128xf32> to vector<128x128xf32>
    %cst = arith.constant dense<0.000000e+00> : vector<16x128xf32>
    %13 = tpu.matmul %3, %12, %cst {dimension_numbers = #tpu.dot_dimension_numbers<[1], [0], [0], [1], [0, 0, 1, 1], [], []>} : vector<16x128xf32>, vector<128x128xf32>, vector<16x128xf32> -> vector<16x128xf32>
    %14 = vector.broadcast %4 : vector<1x128xf32> to vector<16x128xf32>
    %15 = arith.addf %13, %14 : vector<16x128xf32>
    %cst_16 = arith.constant 0.176776692 : f32
    %16 = vector.broadcast %cst_16 : f32 to vector<16x128xf32>
    %17 = arith.mulf %15, %16 : vector<16x128xf32>
    %c1_17 = arith.constant 1 : index
    %c0_18 = arith.constant 0 : index
    %c0_19 = arith.constant 0 : index
    %18 = vector.load %arg3[%c1_17, %c0_18, %c0_19] : memref<5x128x128xf32, #tpu.memory_space<vmem>>, vector<1x128x128xf32>
    %19 = vector.shape_cast %18 : vector<1x128x128xf32> to vector<128x128xf32>
    %cst_20 = arith.constant dense<0.000000e+00> : vector<32x128xf32>
    %20 = tpu.matmul %1, %19, %cst_20 {dimension_numbers = #tpu.dot_dimension_numbers<[1], [0], [0], [1], [0, 0, 1, 1], [], []>} : vector<32x128xf32>, vector<128x128xf32>, vector<32x128xf32> -> vector<32x128xf32>
    %21 = vector.broadcast %5 : vector<1x128xf32> to vector<32x128xf32>
    %22 = arith.addf %20, %21 : vector<32x128xf32>
    %c2_21 = arith.constant 2 : index
    %c0_22 = arith.constant 0 : index
    %c0_23 = arith.constant 0 : index
    %23 = vector.load %arg3[%c2_21, %c0_22, %c0_23] : memref<5x128x128xf32, #tpu.memory_space<vmem>>, vector<1x128x128xf32>
    %24 = vector.shape_cast %23 : vector<1x128x128xf32> to vector<128x128xf32>
    %cst_24 = arith.constant dense<0.000000e+00> : vector<32x128xf32>
    %25 = tpu.matmul %1, %24, %cst_24 {dimension_numbers = #tpu.dot_dimension_numbers<[1], [0], [0], [1], [0, 0, 1, 1], [], []>} : vector<32x128xf32>, vector<128x128xf32>, vector<32x128xf32> -> vector<32x128xf32>
    %26 = vector.broadcast %6 : vector<1x128xf32> to vector<32x128xf32>
    %27 = arith.addf %25, %26 : vector<32x128xf32>
    %28 = vector.shape_cast %17 : vector<16x128xf32> to vector<2x8x128xf32>
    %29 = vector.shape_cast %22 : vector<32x128xf32> to vector<2x16x128xf32>
    %30 = vector.shape_cast %27 : vector<32x128xf32> to vector<2x16x128xf32>
    %c3_25 = arith.constant 3 : index
    %c0_26 = arith.constant 0 : index
    %c0_27 = arith.constant 0 : index
    %31 = vector.load %arg3[%c3_25, %c0_26, %c0_27] : memref<5x128x128xf32, #tpu.memory_space<vmem>>, vector<1x128x128xf32>
    %32 = vector.shape_cast %31 : vector<1x128x128xf32> to vector<128x128xf32>
    %cst_28 = arith.constant 0.000000e+00 : f32
    %33 = vector.broadcast %cst_28 : f32 to vector<16x128xf32>
    %34 = vector.extract_strided_slice %28 {offsets = [0, 0, 0], sizes = [2, 8, 32], strides = [1, 1, 1]} : vector<2x8x128xf32> to vector<2x8x32xf32>
    %35 = vector.extract_strided_slice %29 {offsets = [0, 0, 0], sizes = [2, 16, 32], strides = [1, 1, 1]} : vector<2x16x128xf32> to vector<2x16x32xf32>
    "tpu.trace_start"() <{level = 10 : i32, message = "bqd,bkd->bqk"}> : () -> ()
    %cst_29 = arith.constant dense<0.000000e+00> : vector<2x8x16xf32>
    %36 = tpu.matmul %34, %35, %cst_29 {dimension_numbers = #tpu.dot_dimension_numbers<[2], [2], [1], [1], [0, 0, 0, 1, 1, 1], [0], [0]>} : vector<2x8x32xf32>, vector<2x16x32xf32>, vector<2x8x16xf32> -> vector<2x8x16xf32>
    "tpu.trace_stop"() : () -> ()
    %cst_30 = arith.constant dense<0xFF800000> : vector<2x8xf32>
    %37 = vector.multi_reduction <maximumf>, %36, %cst_30 [2] : vector<2x8x16xf32> to vector<2x8xf32>
    %38 = vector.shape_cast %37 : vector<2x8xf32> to vector<2x8x1xf32>
    %39 = vector.broadcast %38 : vector<2x8x1xf32> to vector<2x8x16xf32>
    %40 = arith.subf %36, %39 : vector<2x8x16xf32>
    %41 = math.exp %40 : vector<2x8x16xf32>
    %cst_31 = arith.constant dense<0.000000e+00> : vector<2x8xf32>
    %42 = vector.multi_reduction <add>, %41, %cst_31 [2] : vector<2x8x16xf32> to vector<2x8xf32>
    %43 = vector.shape_cast %42 : vector<2x8xf32> to vector<2x8x1xf32>
    %44 = tpu.reciprocal %43 {approx = true} : vector<2x8x1xf32> -> vector<2x8x1xf32>
    %45 = vector.broadcast %44 : vector<2x8x1xf32> to vector<2x8x16xf32>
    %46 = arith.mulf %41, %45 : vector<2x8x16xf32>
    %47 = vector.extract_strided_slice %30 {offsets = [0, 0, 0], sizes = [2, 16, 32], strides = [1, 1, 1]} : vector<2x16x128xf32> to vector<2x16x32xf32>
    "tpu.trace_start"() <{level = 10 : i32, message = "bqk,bkd->bqd"}> : () -> ()
    %cst_32 = arith.constant dense<0.000000e+00> : vector<2x8x32xf32>
    %48 = tpu.matmul %46, %47, %cst_32 {dimension_numbers = #tpu.dot_dimension_numbers<[2], [1], [1], [2], [0, 0, 0, 1, 1, 2], [0], [0]>} : vector<2x8x16xf32>, vector<2x16x32xf32>, vector<2x8x32xf32> -> vector<2x8x32xf32>
    "tpu.trace_stop"() : () -> ()
    %49 = vector.shape_cast %48 : vector<2x8x32xf32> to vector<16x32xf32>
    %50 = vector.extract_strided_slice %32 {offsets = [0, 0], sizes = [32, 128], strides = [1, 1]} : vector<128x128xf32> to vector<32x128xf32>
    %cst_33 = arith.constant dense<0.000000e+00> : vector<16x128xf32>
    %51 = tpu.matmul %49, %50, %cst_33 {dimension_numbers = #tpu.dot_dimension_numbers<[1], [0], [0], [1], [0, 0, 1, 1], [], []>} : vector<16x32xf32>, vector<32x128xf32>, vector<16x128xf32> -> vector<16x128xf32>
    %52 = arith.addf %33, %51 : vector<16x128xf32>
    %53 = vector.extract_strided_slice %28 {offsets = [0, 0, 32], sizes = [2, 8, 32], strides = [1, 1, 1]} : vector<2x8x128xf32> to vector<2x8x32xf32>
    %54 = vector.extract_strided_slice %29 {offsets = [0, 0, 32], sizes = [2, 16, 32], strides = [1, 1, 1]} : vector<2x16x128xf32> to vector<2x16x32xf32>
    "tpu.trace_start"() <{level = 10 : i32, message = "bqd,bkd->bqk"}> : () -> ()
    %cst_34 = arith.constant dense<0.000000e+00> : vector<2x8x16xf32>
    %55 = tpu.matmul %53, %54, %cst_34 {dimension_numbers = #tpu.dot_dimension_numbers<[2], [2], [1], [1], [0, 0, 0, 1, 1, 1], [0], [0]>} : vector<2x8x32xf32>, vector<2x16x32xf32>, vector<2x8x16xf32> -> vector<2x8x16xf32>
    "tpu.trace_stop"() : () -> ()
    %cst_35 = arith.constant dense<0xFF800000> : vector<2x8xf32>
    %56 = vector.multi_reduction <maximumf>, %55, %cst_35 [2] : vector<2x8x16xf32> to vector<2x8xf32>
    %57 = vector.shape_cast %56 : vector<2x8xf32> to vector<2x8x1xf32>
    %58 = vector.broadcast %57 : vector<2x8x1xf32> to vector<2x8x16xf32>
    %59 = arith.subf %55, %58 : vector<2x8x16xf32>
    %60 = math.exp %59 : vector<2x8x16xf32>
    %cst_36 = arith.constant dense<0.000000e+00> : vector<2x8xf32>
    %61 = vector.multi_reduction <add>, %60, %cst_36 [2] : vector<2x8x16xf32> to vector<2x8xf32>
    %62 = vector.shape_cast %61 : vector<2x8xf32> to vector<2x8x1xf32>
    %63 = tpu.reciprocal %62 {approx = true} : vector<2x8x1xf32> -> vector<2x8x1xf32>
    %64 = vector.broadcast %63 : vector<2x8x1xf32> to vector<2x8x16xf32>
    %65 = arith.mulf %60, %64 : vector<2x8x16xf32>
    %66 = vector.extract_strided_slice %30 {offsets = [0, 0, 32], sizes = [2, 16, 32], strides = [1, 1, 1]} : vector<2x16x128xf32> to vector<2x16x32xf32>
    "tpu.trace_start"() <{level = 10 : i32, message = "bqk,bkd->bqd"}> : () -> ()
    %cst_37 = arith.constant dense<0.000000e+00> : vector<2x8x32xf32>
    %67 = tpu.matmul %65, %66, %cst_37 {dimension_numbers = #tpu.dot_dimension_numbers<[2], [1], [1], [2], [0, 0, 0, 1, 1, 2], [0], [0]>} : vector<2x8x16xf32>, vector<2x16x32xf32>, vector<2x8x32xf32> -> vector<2x8x32xf32>
    "tpu.trace_stop"() : () -> ()
    %68 = vector.shape_cast %67 : vector<2x8x32xf32> to vector<16x32xf32>
    %69 = vector.extract_strided_slice %32 {offsets = [32, 0], sizes = [32, 128], strides = [1, 1]} : vector<128x128xf32> to vector<32x128xf32>
    %cst_38 = arith.constant dense<0.000000e+00> : vector<16x128xf32>
    %70 = tpu.matmul %68, %69, %cst_38 {dimension_numbers = #tpu.dot_dimension_numbers<[1], [0], [0], [1], [0, 0, 1, 1], [], []>} : vector<16x32xf32>, vector<32x128xf32>, vector<16x128xf32> -> vector<16x128xf32>
    %71 = arith.addf %52, %70 : vector<16x128xf32>
    %72 = vector.extract_strided_slice %28 {offsets = [0, 0, 64], sizes = [2, 8, 32], strides = [1, 1, 1]} : vector<2x8x128xf32> to vector<2x8x32xf32>
    %73 = vector.extract_strided_slice %29 {offsets = [0, 0, 64], sizes = [2, 16, 32], strides = [1, 1, 1]} : vector<2x16x128xf32> to vector<2x16x32xf32>
    "tpu.trace_start"() <{level = 10 : i32, message = "bqd,bkd->bqk"}> : () -> ()
    %cst_39 = arith.constant dense<0.000000e+00> : vector<2x8x16xf32>
    %74 = tpu.matmul %72, %73, %cst_39 {dimension_numbers = #tpu.dot_dimension_numbers<[2], [2], [1], [1], [0, 0, 0, 1, 1, 1], [0], [0]>} : vector<2x8x32xf32>, vector<2x16x32xf32>, vector<2x8x16xf32> -> vector<2x8x16xf32>
    "tpu.trace_stop"() : () -> ()
    %cst_40 = arith.constant dense<0xFF800000> : vector<2x8xf32>
    %75 = vector.multi_reduction <maximumf>, %74, %cst_40 [2] : vector<2x8x16xf32> to vector<2x8xf32>
    %76 = vector.shape_cast %75 : vector<2x8xf32> to vector<2x8x1xf32>
    %77 = vector.broadcast %76 : vector<2x8x1xf32> to vector<2x8x16xf32>
    %78 = arith.subf %74, %77 : vector<2x8x16xf32>
    %79 = math.exp %78 : vector<2x8x16xf32>
    %cst_41 = arith.constant dense<0.000000e+00> : vector<2x8xf32>
    %80 = vector.multi_reduction <add>, %79, %cst_41 [2] : vector<2x8x16xf32> to vector<2x8xf32>
    %81 = vector.shape_cast %80 : vector<2x8xf32> to vector<2x8x1xf32>
    %82 = tpu.reciprocal %81 {approx = true} : vector<2x8x1xf32> -> vector<2x8x1xf32>
    %83 = vector.broadcast %82 : vector<2x8x1xf32> to vector<2x8x16xf32>
    %84 = arith.mulf %79, %83 : vector<2x8x16xf32>
    %85 = vector.extract_strided_slice %30 {offsets = [0, 0, 64], sizes = [2, 16, 32], strides = [1, 1, 1]} : vector<2x16x128xf32> to vector<2x16x32xf32>
    "tpu.trace_start"() <{level = 10 : i32, message = "bqk,bkd->bqd"}> : () -> ()
    %cst_42 = arith.constant dense<0.000000e+00> : vector<2x8x32xf32>
    %86 = tpu.matmul %84, %85, %cst_42 {dimension_numbers = #tpu.dot_dimension_numbers<[2], [1], [1], [2], [0, 0, 0, 1, 1, 2], [0], [0]>} : vector<2x8x16xf32>, vector<2x16x32xf32>, vector<2x8x32xf32> -> vector<2x8x32xf32>
    "tpu.trace_stop"() : () -> ()
    %87 = vector.shape_cast %86 : vector<2x8x32xf32> to vector<16x32xf32>
    %88 = vector.extract_strided_slice %32 {offsets = [64, 0], sizes = [32, 128], strides = [1, 1]} : vector<128x128xf32> to vector<32x128xf32>
    %cst_43 = arith.constant dense<0.000000e+00> : vector<16x128xf32>
    %89 = tpu.matmul %87, %88, %cst_43 {dimension_numbers = #tpu.dot_dimension_numbers<[1], [0], [0], [1], [0, 0, 1, 1], [], []>} : vector<16x32xf32>, vector<32x128xf32>, vector<16x128xf32> -> vector<16x128xf32>
    %90 = arith.addf %71, %89 : vector<16x128xf32>
    %91 = vector.extract_strided_slice %28 {offsets = [0, 0, 96], sizes = [2, 8, 32], strides = [1, 1, 1]} : vector<2x8x128xf32> to vector<2x8x32xf32>
    %92 = vector.extract_strided_slice %29 {offsets = [0, 0, 96], sizes = [2, 16, 32], strides = [1, 1, 1]} : vector<2x16x128xf32> to vector<2x16x32xf32>
    "tpu.trace_start"() <{level = 10 : i32, message = "bqd,bkd->bqk"}> : () -> ()
    %cst_44 = arith.constant dense<0.000000e+00> : vector<2x8x16xf32>
    %93 = tpu.matmul %91, %92, %cst_44 {dimension_numbers = #tpu.dot_dimension_numbers<[2], [2], [1], [1], [0, 0, 0, 1, 1, 1], [0], [0]>} : vector<2x8x32xf32>, vector<2x16x32xf32>, vector<2x8x16xf32> -> vector<2x8x16xf32>
    "tpu.trace_stop"() : () -> ()
    %cst_45 = arith.constant dense<0xFF800000> : vector<2x8xf32>
    %94 = vector.multi_reduction <maximumf>, %93, %cst_45 [2] : vector<2x8x16xf32> to vector<2x8xf32>
    %95 = vector.shape_cast %94 : vector<2x8xf32> to vector<2x8x1xf32>
    %96 = vector.broadcast %95 : vector<2x8x1xf32> to vector<2x8x16xf32>
    %97 = arith.subf %93, %96 : vector<2x8x16xf32>
    %98 = math.exp %97 : vector<2x8x16xf32>
    %cst_46 = arith.constant dense<0.000000e+00> : vector<2x8xf32>
    %99 = vector.multi_reduction <add>, %98, %cst_46 [2] : vector<2x8x16xf32> to vector<2x8xf32>
    %100 = vector.shape_cast %99 : vector<2x8xf32> to vector<2x8x1xf32>
    %101 = tpu.reciprocal %100 {approx = true} : vector<2x8x1xf32> -> vector<2x8x1xf32>
    %102 = vector.broadcast %101 : vector<2x8x1xf32> to vector<2x8x16xf32>
    %103 = arith.mulf %98, %102 : vector<2x8x16xf32>
    %104 = vector.extract_strided_slice %30 {offsets = [0, 0, 96], sizes = [2, 16, 32], strides = [1, 1, 1]} : vector<2x16x128xf32> to vector<2x16x32xf32>
    "tpu.trace_start"() <{level = 10 : i32, message = "bqk,bkd->bqd"}> : () -> ()
    %cst_47 = arith.constant dense<0.000000e+00> : vector<2x8x32xf32>
    %105 = tpu.matmul %103, %104, %cst_47 {dimension_numbers = #tpu.dot_dimension_numbers<[2], [1], [1], [2], [0, 0, 0, 1, 1, 2], [0], [0]>} : vector<2x8x16xf32>, vector<2x16x32xf32>, vector<2x8x32xf32> -> vector<2x8x32xf32>
    "tpu.trace_stop"() : () -> ()
    %106 = vector.shape_cast %105 : vector<2x8x32xf32> to vector<16x32xf32>
    %107 = vector.extract_strided_slice %32 {offsets = [96, 0], sizes = [32, 128], strides = [1, 1]} : vector<128x128xf32> to vector<32x128xf32>
    %cst_48 = arith.constant dense<0.000000e+00> : vector<16x128xf32>
    %108 = tpu.matmul %106, %107, %cst_48 {dimension_numbers = #tpu.dot_dimension_numbers<[1], [0], [0], [1], [0, 0, 1, 1], [], []>} : vector<16x32xf32>, vector<32x128xf32>, vector<16x128xf32> -> vector<16x128xf32>
    %109 = arith.addf %90, %108 : vector<16x128xf32>
    %110 = vector.broadcast %7 : vector<1x128xf32> to vector<16x128xf32>
    %111 = arith.addf %109, %110 : vector<16x128xf32>
    %112 = arith.addf %111, %3 : vector<16x128xf32>
    %cst_49 = arith.constant dense<0.000000e+00> : vector<16xf32>
    %113 = vector.multi_reduction <add>, %112, %cst_49 [1] : vector<16x128xf32> to vector<16xf32>
    %114 = vector.shape_cast %113 : vector<16xf32> to vector<16x1xf32>
    %cst_50 = arith.constant 1.280000e+02 : f32
    %115 = vector.broadcast %cst_50 : f32 to vector<16x1xf32>
    %116 = arith.divf %114, %115 : vector<16x1xf32>
    %117 = vector.broadcast %116 : vector<16x1xf32> to vector<16x128xf32>
    %118 = arith.subf %112, %117 : vector<16x128xf32>
    %119 = arith.mulf %118, %118 : vector<16x128xf32>
    %cst_51 = arith.constant dense<0.000000e+00> : vector<16xf32>
    %120 = vector.multi_reduction <add>, %119, %cst_51 [1] : vector<16x128xf32> to vector<16xf32>
    %121 = vector.shape_cast %120 : vector<16xf32> to vector<16x1xf32>
    %cst_52 = arith.constant 1.280000e+02 : f32
    %122 = vector.broadcast %cst_52 : f32 to vector<16x1xf32>
    %123 = arith.divf %121, %122 : vector<16x1xf32>
    %124 = vector.broadcast %116 : vector<16x1xf32> to vector<16x128xf32>
    %125 = arith.subf %112, %124 : vector<16x128xf32>
    %cst_53 = arith.constant 9.99999974E-6 : f32
    %126 = vector.broadcast %cst_53 : f32 to vector<16x1xf32>
    %127 = arith.addf %123, %126 : vector<16x1xf32>
    %128 = math.rsqrt %127 : vector<16x1xf32>
    %129 = vector.broadcast %128 : vector<16x1xf32> to vector<16x128xf32>
    %130 = arith.mulf %125, %129 : vector<16x128xf32>
    %131 = vector.broadcast %9 : vector<1x128xf32> to vector<16x128xf32>
    %132 = arith.mulf %130, %131 : vector<16x128xf32>
    %133 = vector.broadcast %10 : vector<1x128xf32> to vector<16x128xf32>
    %134 = arith.addf %132, %133 : vector<16x128xf32>
    %c4_54 = arith.constant 4 : index
    %c0_55 = arith.constant 0 : index
    %c0_56 = arith.constant 0 : index
    %135 = vector.load %arg3[%c4_54, %c0_55, %c0_56] : memref<5x128x128xf32, #tpu.memory_space<vmem>>, vector<1x128x128xf32>
    %136 = vector.shape_cast %135 : vector<1x128x128xf32> to vector<128x128xf32>
    %cst_57 = arith.constant dense<0.000000e+00> : vector<16x128xf32>
    %137 = tpu.matmul %134, %136, %cst_57 {dimension_numbers = #tpu.dot_dimension_numbers<[1], [0], [0], [1], [0, 0, 1, 1], [], []>} : vector<16x128xf32>, vector<128x128xf32>, vector<16x128xf32> -> vector<16x128xf32>
    %138 = vector.broadcast %8 : vector<1x128xf32> to vector<16x128xf32>
    %139 = arith.addf %137, %138 : vector<16x128xf32>
    %140 = arith.addf %134, %139 : vector<16x128xf32>
    %cst_58 = arith.constant dense<0.000000e+00> : vector<16xf32>
    %141 = vector.multi_reduction <add>, %140, %cst_58 [1] : vector<16x128xf32> to vector<16xf32>
    %142 = vector.shape_cast %141 : vector<16xf32> to vector<16x1xf32>
    %cst_59 = arith.constant 1.280000e+02 : f32
    %143 = vector.broadcast %cst_59 : f32 to vector<16x1xf32>
    %144 = arith.divf %142, %143 : vector<16x1xf32>
    %145 = vector.broadcast %144 : vector<16x1xf32> to vector<16x128xf32>
    %146 = arith.subf %140, %145 : vector<16x128xf32>
    %147 = arith.mulf %146, %146 : vector<16x128xf32>
    %cst_60 = arith.constant dense<0.000000e+00> : vector<16xf32>
    %148 = vector.multi_reduction <add>, %147, %cst_60 [1] : vector<16x128xf32> to vector<16xf32>
    %149 = vector.shape_cast %148 : vector<16xf32> to vector<16x1xf32>
    %cst_61 = arith.constant 1.280000e+02 : f32
    %150 = vector.broadcast %cst_61 : f32 to vector<16x1xf32>
    %151 = arith.divf %149, %150 : vector<16x1xf32>
    %152 = vector.broadcast %144 : vector<16x1xf32> to vector<16x128xf32>
    %153 = arith.subf %140, %152 : vector<16x128xf32>
    %cst_62 = arith.constant 9.99999974E-6 : f32
    %154 = vector.broadcast %cst_62 : f32 to vector<16x1xf32>
    %155 = arith.addf %151, %154 : vector<16x1xf32>
    %156 = math.rsqrt %155 : vector<16x1xf32>
    %157 = vector.broadcast %156 : vector<16x1xf32> to vector<16x128xf32>
    %158 = arith.mulf %153, %157 : vector<16x128xf32>
    %159 = vector.broadcast %9 : vector<1x128xf32> to vector<16x128xf32>
    %160 = arith.mulf %158, %159 : vector<16x128xf32>
    %161 = vector.broadcast %10 : vector<1x128xf32> to vector<16x128xf32>
    %162 = arith.addf %160, %161 : vector<16x128xf32>
    %c0_63 = arith.constant 0 : index
    %c0_64 = arith.constant 0 : index
    %163 = vector.load %arg6[%c0_63, %c0_64] : memref<8x128xf32, #tpu.memory_space<vmem>>, vector<1x128xf32>
    %c1_65 = arith.constant 1 : index
    %c0_66 = arith.constant 0 : index
    %164 = vector.load %arg6[%c1_65, %c0_66] : memref<8x128xf32, #tpu.memory_space<vmem>>, vector<1x128xf32>
    %c2_67 = arith.constant 2 : index
    %c0_68 = arith.constant 0 : index
    %165 = vector.load %arg6[%c2_67, %c0_68] : memref<8x128xf32, #tpu.memory_space<vmem>>, vector<1x128xf32>
    %c3_69 = arith.constant 3 : index
    %c0_70 = arith.constant 0 : index
    %166 = vector.load %arg6[%c3_69, %c0_70] : memref<8x128xf32, #tpu.memory_space<vmem>>, vector<1x128xf32>
    %c4_71 = arith.constant 4 : index
    %c0_72 = arith.constant 0 : index
    %167 = vector.load %arg6[%c4_71, %c0_72] : memref<8x128xf32, #tpu.memory_space<vmem>>, vector<1x128xf32>
    %c5_73 = arith.constant 5 : index
    %c0_74 = arith.constant 0 : index
    %168 = vector.load %arg6[%c5_73, %c0_74] : memref<8x128xf32, #tpu.memory_space<vmem>>, vector<1x128xf32>
    %c6_75 = arith.constant 6 : index
    %c0_76 = arith.constant 0 : index
    %169 = vector.load %arg6[%c6_75, %c0_76] : memref<8x128xf32, #tpu.memory_space<vmem>>, vector<1x128xf32>
    %c0_77 = arith.constant 0 : index
    %c0_78 = arith.constant 0 : index
    %c0_79 = arith.constant 0 : index
    %170 = vector.load %arg5[%c0_77, %c0_78, %c0_79] : memref<5x128x128xf32, #tpu.memory_space<vmem>>, vector<1x128x128xf32>
    %171 = vector.shape_cast %170 : vector<1x128x128xf32> to vector<128x128xf32>
    %cst_80 = arith.constant dense<0.000000e+00> : vector<32x128xf32>
    %172 = tpu.matmul %1, %171, %cst_80 {dimension_numbers = #tpu.dot_dimension_numbers<[1], [0], [0], [1], [0, 0, 1, 1], [], []>} : vector<32x128xf32>, vector<128x128xf32>, vector<32x128xf32> -> vector<32x128xf32>
    %173 = vector.broadcast %163 : vector<1x128xf32> to vector<32x128xf32>
    %174 = arith.addf %172, %173 : vector<32x128xf32>
    %cst_81 = arith.constant 0.176776692 : f32
    %175 = vector.broadcast %cst_81 : f32 to vector<32x128xf32>
    %176 = arith.mulf %174, %175 : vector<32x128xf32>
    %c1_82 = arith.constant 1 : index
    %c0_83 = arith.constant 0 : index
    %c0_84 = arith.constant 0 : index
    %177 = vector.load %arg5[%c1_82, %c0_83, %c0_84] : memref<5x128x128xf32, #tpu.memory_space<vmem>>, vector<1x128x128xf32>
    %178 = vector.shape_cast %177 : vector<1x128x128xf32> to vector<128x128xf32>
    %cst_85 = arith.constant dense<0.000000e+00> : vector<16x128xf32>
    %179 = tpu.matmul %162, %178, %cst_85 {dimension_numbers = #tpu.dot_dimension_numbers<[1], [0], [0], [1], [0, 0, 1, 1], [], []>} : vector<16x128xf32>, vector<128x128xf32>, vector<16x128xf32> -> vector<16x128xf32>
    %180 = vector.broadcast %164 : vector<1x128xf32> to vector<16x128xf32>
    %181 = arith.addf %179, %180 : vector<16x128xf32>
    %c2_86 = arith.constant 2 : index
    %c0_87 = arith.constant 0 : index
    %c0_88 = arith.constant 0 : index
    %182 = vector.load %arg5[%c2_86, %c0_87, %c0_88] : memref<5x128x128xf32, #tpu.memory_space<vmem>>, vector<1x128x128xf32>
    %183 = vector.shape_cast %182 : vector<1x128x128xf32> to vector<128x128xf32>
    %cst_89 = arith.constant dense<0.000000e+00> : vector<16x128xf32>
    %184 = tpu.matmul %162, %183, %cst_89 {dimension_numbers = #tpu.dot_dimension_numbers<[1], [0], [0], [1], [0, 0, 1, 1], [], []>} : vector<16x128xf32>, vector<128x128xf32>, vector<16x128xf32> -> vector<16x128xf32>
    %185 = vector.broadcast %165 : vector<1x128xf32> to vector<16x128xf32>
    %186 = arith.addf %184, %185 : vector<16x128xf32>
    %187 = vector.shape_cast %176 : vector<32x128xf32> to vector<2x16x128xf32>
    %188 = vector.shape_cast %181 : vector<16x128xf32> to vector<2x8x128xf32>
    %189 = vector.shape_cast %186 : vector<16x128xf32> to vector<2x8x128xf32>
    %c3_90 = arith.constant 3 : index
    %c0_91 = arith.constant 0 : index
    %c0_92 = arith.constant 0 : index
    %190 = vector.load %arg5[%c3_90, %c0_91, %c0_92] : memref<5x128x128xf32, #tpu.memory_space<vmem>>, vector<1x128x128xf32>
    %191 = vector.shape_cast %190 : vector<1x128x128xf32> to vector<128x128xf32>
    %cst_93 = arith.constant 0.000000e+00 : f32
    %192 = vector.broadcast %cst_93 : f32 to vector<32x128xf32>
    %193 = vector.extract_strided_slice %187 {offsets = [0, 0, 0], sizes = [2, 16, 32], strides = [1, 1, 1]} : vector<2x16x128xf32> to vector<2x16x32xf32>
    %194 = vector.extract_strided_slice %188 {offsets = [0, 0, 0], sizes = [2, 8, 32], strides = [1, 1, 1]} : vector<2x8x128xf32> to vector<2x8x32xf32>
    "tpu.trace_start"() <{level = 10 : i32, message = "bqd,bkd->bqk"}> : () -> ()
    %cst_94 = arith.constant dense<0.000000e+00> : vector<2x16x8xf32>
    %195 = tpu.matmul %193, %194, %cst_94 {dimension_numbers = #tpu.dot_dimension_numbers<[2], [2], [1], [1], [0, 0, 0, 1, 1, 1], [0], [0]>} : vector<2x16x32xf32>, vector<2x8x32xf32>, vector<2x16x8xf32> -> vector<2x16x8xf32>
    "tpu.trace_stop"() : () -> ()
    %cst_95 = arith.constant dense<0xFF800000> : vector<2x16xf32>
    %196 = vector.multi_reduction <maximumf>, %195, %cst_95 [2] : vector<2x16x8xf32> to vector<2x16xf32>
    %197 = vector.shape_cast %196 : vector<2x16xf32> to vector<2x16x1xf32>
    %198 = vector.broadcast %197 : vector<2x16x1xf32> to vector<2x16x8xf32>
    %199 = arith.subf %195, %198 : vector<2x16x8xf32>
    %200 = math.exp %199 : vector<2x16x8xf32>
    %cst_96 = arith.constant dense<0.000000e+00> : vector<2x16xf32>
    %201 = vector.multi_reduction <add>, %200, %cst_96 [2] : vector<2x16x8xf32> to vector<2x16xf32>
    %202 = vector.shape_cast %201 : vector<2x16xf32> to vector<2x16x1xf32>
    %203 = tpu.reciprocal %202 {approx = true} : vector<2x16x1xf32> -> vector<2x16x1xf32>
    %204 = vector.broadcast %203 : vector<2x16x1xf32> to vector<2x16x8xf32>
    %205 = arith.mulf %200, %204 : vector<2x16x8xf32>
    %206 = vector.extract_strided_slice %189 {offsets = [0, 0, 0], sizes = [2, 8, 32], strides = [1, 1, 1]} : vector<2x8x128xf32> to vector<2x8x32xf32>
    "tpu.trace_start"() <{level = 10 : i32, message = "bqk,bkd->bqd"}> : () -> ()
    %cst_97 = arith.constant dense<0.000000e+00> : vector<2x16x32xf32>
    %207 = tpu.matmul %205, %206, %cst_97 {dimension_numbers = #tpu.dot_dimension_numbers<[2], [1], [1], [2], [0, 0, 0, 1, 1, 2], [0], [0]>} : vector<2x16x8xf32>, vector<2x8x32xf32>, vector<2x16x32xf32> -> vector<2x16x32xf32>
    "tpu.trace_stop"() : () -> ()
    %208 = vector.shape_cast %207 : vector<2x16x32xf32> to vector<32x32xf32>
    %209 = vector.extract_strided_slice %191 {offsets = [0, 0], sizes = [32, 128], strides = [1, 1]} : vector<128x128xf32> to vector<32x128xf32>
    %cst_98 = arith.constant dense<0.000000e+00> : vector<32x128xf32>
    %210 = tpu.matmul %208, %209, %cst_98 {dimension_numbers = #tpu.dot_dimension_numbers<[1], [0], [0], [1], [0, 0, 1, 1], [], []>} : vector<32x32xf32>, vector<32x128xf32>, vector<32x128xf32> -> vector<32x128xf32>
    %211 = arith.addf %192, %210 : vector<32x128xf32>
    %212 = vector.extract_strided_slice %187 {offsets = [0, 0, 32], sizes = [2, 16, 32], strides = [1, 1, 1]} : vector<2x16x128xf32> to vector<2x16x32xf32>
    %213 = vector.extract_strided_slice %188 {offsets = [0, 0, 32], sizes = [2, 8, 32], strides = [1, 1, 1]} : vector<2x8x128xf32> to vector<2x8x32xf32>
    "tpu.trace_start"() <{level = 10 : i32, message = "bqd,bkd->bqk"}> : () -> ()
    %cst_99 = arith.constant dense<0.000000e+00> : vector<2x16x8xf32>
    %214 = tpu.matmul %212, %213, %cst_99 {dimension_numbers = #tpu.dot_dimension_numbers<[2], [2], [1], [1], [0, 0, 0, 1, 1, 1], [0], [0]>} : vector<2x16x32xf32>, vector<2x8x32xf32>, vector<2x16x8xf32> -> vector<2x16x8xf32>
    "tpu.trace_stop"() : () -> ()
    %cst_100 = arith.constant dense<0xFF800000> : vector<2x16xf32>
    %215 = vector.multi_reduction <maximumf>, %214, %cst_100 [2] : vector<2x16x8xf32> to vector<2x16xf32>
    %216 = vector.shape_cast %215 : vector<2x16xf32> to vector<2x16x1xf32>
    %217 = vector.broadcast %216 : vector<2x16x1xf32> to vector<2x16x8xf32>
    %218 = arith.subf %214, %217 : vector<2x16x8xf32>
    %219 = math.exp %218 : vector<2x16x8xf32>
    %cst_101 = arith.constant dense<0.000000e+00> : vector<2x16xf32>
    %220 = vector.multi_reduction <add>, %219, %cst_101 [2] : vector<2x16x8xf32> to vector<2x16xf32>
    %221 = vector.shape_cast %220 : vector<2x16xf32> to vector<2x16x1xf32>
    %222 = tpu.reciprocal %221 {approx = true} : vector<2x16x1xf32> -> vector<2x16x1xf32>
    %223 = vector.broadcast %222 : vector<2x16x1xf32> to vector<2x16x8xf32>
    %224 = arith.mulf %219, %223 : vector<2x16x8xf32>
    %225 = vector.extract_strided_slice %189 {offsets = [0, 0, 32], sizes = [2, 8, 32], strides = [1, 1, 1]} : vector<2x8x128xf32> to vector<2x8x32xf32>
    "tpu.trace_start"() <{level = 10 : i32, message = "bqk,bkd->bqd"}> : () -> ()
    %cst_102 = arith.constant dense<0.000000e+00> : vector<2x16x32xf32>
    %226 = tpu.matmul %224, %225, %cst_102 {dimension_numbers = #tpu.dot_dimension_numbers<[2], [1], [1], [2], [0, 0, 0, 1, 1, 2], [0], [0]>} : vector<2x16x8xf32>, vector<2x8x32xf32>, vector<2x16x32xf32> -> vector<2x16x32xf32>
    "tpu.trace_stop"() : () -> ()
    %227 = vector.shape_cast %226 : vector<2x16x32xf32> to vector<32x32xf32>
    %228 = vector.extract_strided_slice %191 {offsets = [32, 0], sizes = [32, 128], strides = [1, 1]} : vector<128x128xf32> to vector<32x128xf32>
    %cst_103 = arith.constant dense<0.000000e+00> : vector<32x128xf32>
    %229 = tpu.matmul %227, %228, %cst_103 {dimension_numbers = #tpu.dot_dimension_numbers<[1], [0], [0], [1], [0, 0, 1, 1], [], []>} : vector<32x32xf32>, vector<32x128xf32>, vector<32x128xf32> -> vector<32x128xf32>
    %230 = arith.addf %211, %229 : vector<32x128xf32>
    %231 = vector.extract_strided_slice %187 {offsets = [0, 0, 64], sizes = [2, 16, 32], strides = [1, 1, 1]} : vector<2x16x128xf32> to vector<2x16x32xf32>
    %232 = vector.extract_strided_slice %188 {offsets = [0, 0, 64], sizes = [2, 8, 32], strides = [1, 1, 1]} : vector<2x8x128xf32> to vector<2x8x32xf32>
    "tpu.trace_start"() <{level = 10 : i32, message = "bqd,bkd->bqk"}> : () -> ()
    %cst_104 = arith.constant dense<0.000000e+00> : vector<2x16x8xf32>
    %233 = tpu.matmul %231, %232, %cst_104 {dimension_numbers = #tpu.dot_dimension_numbers<[2], [2], [1], [1], [0, 0, 0, 1, 1, 1], [0], [0]>} : vector<2x16x32xf32>, vector<2x8x32xf32>, vector<2x16x8xf32> -> vector<2x16x8xf32>
    "tpu.trace_stop"() : () -> ()
    %cst_105 = arith.constant dense<0xFF800000> : vector<2x16xf32>
    %234 = vector.multi_reduction <maximumf>, %233, %cst_105 [2] : vector<2x16x8xf32> to vector<2x16xf32>
    %235 = vector.shape_cast %234 : vector<2x16xf32> to vector<2x16x1xf32>
    %236 = vector.broadcast %235 : vector<2x16x1xf32> to vector<2x16x8xf32>
    %237 = arith.subf %233, %236 : vector<2x16x8xf32>
    %238 = math.exp %237 : vector<2x16x8xf32>
    %cst_106 = arith.constant dense<0.000000e+00> : vector<2x16xf32>
    %239 = vector.multi_reduction <add>, %238, %cst_106 [2] : vector<2x16x8xf32> to vector<2x16xf32>
    %240 = vector.shape_cast %239 : vector<2x16xf32> to vector<2x16x1xf32>
    %241 = tpu.reciprocal %240 {approx = true} : vector<2x16x1xf32> -> vector<2x16x1xf32>
    %242 = vector.broadcast %241 : vector<2x16x1xf32> to vector<2x16x8xf32>
    %243 = arith.mulf %238, %242 : vector<2x16x8xf32>
    %244 = vector.extract_strided_slice %189 {offsets = [0, 0, 64], sizes = [2, 8, 32], strides = [1, 1, 1]} : vector<2x8x128xf32> to vector<2x8x32xf32>
    "tpu.trace_start"() <{level = 10 : i32, message = "bqk,bkd->bqd"}> : () -> ()
    %cst_107 = arith.constant dense<0.000000e+00> : vector<2x16x32xf32>
    %245 = tpu.matmul %243, %244, %cst_107 {dimension_numbers = #tpu.dot_dimension_numbers<[2], [1], [1], [2], [0, 0, 0, 1, 1, 2], [0], [0]>} : vector<2x16x8xf32>, vector<2x8x32xf32>, vector<2x16x32xf32> -> vector<2x16x32xf32>
    "tpu.trace_stop"() : () -> ()
    %246 = vector.shape_cast %245 : vector<2x16x32xf32> to vector<32x32xf32>
    %247 = vector.extract_strided_slice %191 {offsets = [64, 0], sizes = [32, 128], strides = [1, 1]} : vector<128x128xf32> to vector<32x128xf32>
    %cst_108 = arith.constant dense<0.000000e+00> : vector<32x128xf32>
    %248 = tpu.matmul %246, %247, %cst_108 {dimension_numbers = #tpu.dot_dimension_numbers<[1], [0], [0], [1], [0, 0, 1, 1], [], []>} : vector<32x32xf32>, vector<32x128xf32>, vector<32x128xf32> -> vector<32x128xf32>
    %249 = arith.addf %230, %248 : vector<32x128xf32>
    %250 = vector.extract_strided_slice %187 {offsets = [0, 0, 96], sizes = [2, 16, 32], strides = [1, 1, 1]} : vector<2x16x128xf32> to vector<2x16x32xf32>
    %251 = vector.extract_strided_slice %188 {offsets = [0, 0, 96], sizes = [2, 8, 32], strides = [1, 1, 1]} : vector<2x8x128xf32> to vector<2x8x32xf32>
    "tpu.trace_start"() <{level = 10 : i32, message = "bqd,bkd->bqk"}> : () -> ()
    %cst_109 = arith.constant dense<0.000000e+00> : vector<2x16x8xf32>
    %252 = tpu.matmul %250, %251, %cst_109 {dimension_numbers = #tpu.dot_dimension_numbers<[2], [2], [1], [1], [0, 0, 0, 1, 1, 1], [0], [0]>} : vector<2x16x32xf32>, vector<2x8x32xf32>, vector<2x16x8xf32> -> vector<2x16x8xf32>
    "tpu.trace_stop"() : () -> ()
    %cst_110 = arith.constant dense<0xFF800000> : vector<2x16xf32>
    %253 = vector.multi_reduction <maximumf>, %252, %cst_110 [2] : vector<2x16x8xf32> to vector<2x16xf32>
    %254 = vector.shape_cast %253 : vector<2x16xf32> to vector<2x16x1xf32>
    %255 = vector.broadcast %254 : vector<2x16x1xf32> to vector<2x16x8xf32>
    %256 = arith.subf %252, %255 : vector<2x16x8xf32>
    %257 = math.exp %256 : vector<2x16x8xf32>
    %cst_111 = arith.constant dense<0.000000e+00> : vector<2x16xf32>
    %258 = vector.multi_reduction <add>, %257, %cst_111 [2] : vector<2x16x8xf32> to vector<2x16xf32>
    %259 = vector.shape_cast %258 : vector<2x16xf32> to vector<2x16x1xf32>
    %260 = tpu.reciprocal %259 {approx = true} : vector<2x16x1xf32> -> vector<2x16x1xf32>
    %261 = vector.broadcast %260 : vector<2x16x1xf32> to vector<2x16x8xf32>
    %262 = arith.mulf %257, %261 : vector<2x16x8xf32>
    %263 = vector.extract_strided_slice %189 {offsets = [0, 0, 96], sizes = [2, 8, 32], strides = [1, 1, 1]} : vector<2x8x128xf32> to vector<2x8x32xf32>
    "tpu.trace_start"() <{level = 10 : i32, message = "bqk,bkd->bqd"}> : () -> ()
    %cst_112 = arith.constant dense<0.000000e+00> : vector<2x16x32xf32>
    %264 = tpu.matmul %262, %263, %cst_112 {dimension_numbers = #tpu.dot_dimension_numbers<[2], [1], [1], [2], [0, 0, 0, 1, 1, 2], [0], [0]>} : vector<2x16x8xf32>, vector<2x8x32xf32>, vector<2x16x32xf32> -> vector<2x16x32xf32>
    "tpu.trace_stop"() : () -> ()
    %265 = vector.shape_cast %264 : vector<2x16x32xf32> to vector<32x32xf32>
    %266 = vector.extract_strided_slice %191 {offsets = [96, 0], sizes = [32, 128], strides = [1, 1]} : vector<128x128xf32> to vector<32x128xf32>
    %cst_113 = arith.constant dense<0.000000e+00> : vector<32x128xf32>
    %267 = tpu.matmul %265, %266, %cst_113 {dimension_numbers = #tpu.dot_dimension_numbers<[1], [0], [0], [1], [0, 0, 1, 1], [], []>} : vector<32x32xf32>, vector<32x128xf32>, vector<32x128xf32> -> vector<32x128xf32>
    %268 = arith.addf %249, %267 : vector<32x128xf32>
    %269 = vector.broadcast %166 : vector<1x128xf32> to vector<32x128xf32>
    %270 = arith.addf %268, %269 : vector<32x128xf32>
    %271 = arith.addf %270, %1 : vector<32x128xf32>
    %cst_114 = arith.constant dense<0.000000e+00> : vector<32xf32>
    %272 = vector.multi_reduction <add>, %271, %cst_114 [1] : vector<32x128xf32> to vector<32xf32>
    %273 = vector.shape_cast %272 : vector<32xf32> to vector<32x1xf32>
    %cst_115 = arith.constant 1.280000e+02 : f32
    %274 = vector.broadcast %cst_115 : f32 to vector<32x1xf32>
    %275 = arith.divf %273, %274 : vector<32x1xf32>
    %276 = vector.broadcast %275 : vector<32x1xf32> to vector<32x128xf32>
    %277 = arith.subf %271, %276 : vector<32x128xf32>
    %278 = arith.mulf %277, %277 : vector<32x128xf32>
    %cst_116 = arith.constant dense<0.000000e+00> : vector<32xf32>
    %279 = vector.multi_reduction <add>, %278, %cst_116 [1] : vector<32x128xf32> to vector<32xf32>
    %280 = vector.shape_cast %279 : vector<32xf32> to vector<32x1xf32>
    %cst_117 = arith.constant 1.280000e+02 : f32
    %281 = vector.broadcast %cst_117 : f32 to vector<32x1xf32>
    %282 = arith.divf %280, %281 : vector<32x1xf32>
    %283 = vector.broadcast %275 : vector<32x1xf32> to vector<32x128xf32>
    %284 = arith.subf %271, %283 : vector<32x128xf32>
    %cst_118 = arith.constant 9.99999974E-6 : f32
    %285 = vector.broadcast %cst_118 : f32 to vector<32x1xf32>
    %286 = arith.addf %282, %285 : vector<32x1xf32>
    %287 = math.rsqrt %286 : vector<32x1xf32>
    %288 = vector.broadcast %287 : vector<32x1xf32> to vector<32x128xf32>
    %289 = arith.mulf %284, %288 : vector<32x128xf32>
    %290 = vector.broadcast %168 : vector<1x128xf32> to vector<32x128xf32>
    %291 = arith.mulf %289, %290 : vector<32x128xf32>
    %292 = vector.broadcast %169 : vector<1x128xf32> to vector<32x128xf32>
    %293 = arith.addf %291, %292 : vector<32x128xf32>
    %c4_119 = arith.constant 4 : index
    %c0_120 = arith.constant 0 : index
    %c0_121 = arith.constant 0 : index
    %294 = vector.load %arg5[%c4_119, %c0_120, %c0_121] : memref<5x128x128xf32, #tpu.memory_space<vmem>>, vector<1x128x128xf32>
    %295 = vector.shape_cast %294 : vector<1x128x128xf32> to vector<128x128xf32>
    %cst_122 = arith.constant dense<0.000000e+00> : vector<32x128xf32>
    %296 = tpu.matmul %293, %295, %cst_122 {dimension_numbers = #tpu.dot_dimension_numbers<[1], [0], [0], [1], [0, 0, 1, 1], [], []>} : vector<32x128xf32>, vector<128x128xf32>, vector<32x128xf32> -> vector<32x128xf32>
    %297 = vector.broadcast %167 : vector<1x128xf32> to vector<32x128xf32>
    %298 = arith.addf %296, %297 : vector<32x128xf32>
    %299 = arith.addf %293, %298 : vector<32x128xf32>
    %cst_123 = arith.constant dense<0.000000e+00> : vector<32xf32>
    %300 = vector.multi_reduction <add>, %299, %cst_123 [1] : vector<32x128xf32> to vector<32xf32>
    %301 = vector.shape_cast %300 : vector<32xf32> to vector<32x1xf32>
    %cst_124 = arith.constant 1.280000e+02 : f32
    %302 = vector.broadcast %cst_124 : f32 to vector<32x1xf32>
    %303 = arith.divf %301, %302 : vector<32x1xf32>
    %304 = vector.broadcast %303 : vector<32x1xf32> to vector<32x128xf32>
    %305 = arith.subf %299, %304 : vector<32x128xf32>
    %306 = arith.mulf %305, %305 : vector<32x128xf32>
    %cst_125 = arith.constant dense<0.000000e+00> : vector<32xf32>
    %307 = vector.multi_reduction <add>, %306, %cst_125 [1] : vector<32x128xf32> to vector<32xf32>
    %308 = vector.shape_cast %307 : vector<32xf32> to vector<32x1xf32>
    %cst_126 = arith.constant 1.280000e+02 : f32
    %309 = vector.broadcast %cst_126 : f32 to vector<32x1xf32>
    %310 = arith.divf %308, %309 : vector<32x1xf32>
    %311 = vector.broadcast %303 : vector<32x1xf32> to vector<32x128xf32>
    %312 = arith.subf %299, %311 : vector<32x128xf32>
    %cst_127 = arith.constant 9.99999974E-6 : f32
    %313 = vector.broadcast %cst_127 : f32 to vector<32x1xf32>
    %314 = arith.addf %310, %313 : vector<32x1xf32>
    %315 = math.rsqrt %314 : vector<32x1xf32>
    %316 = vector.broadcast %315 : vector<32x1xf32> to vector<32x128xf32>
    %317 = arith.mulf %312, %316 : vector<32x128xf32>
    %318 = vector.broadcast %168 : vector<1x128xf32> to vector<32x128xf32>
    %319 = arith.mulf %317, %318 : vector<32x128xf32>
    %320 = vector.broadcast %169 : vector<1x128xf32> to vector<32x128xf32>
    %321 = arith.addf %319, %320 : vector<32x128xf32>
    %322 = vector.shape_cast %321 : vector<32x128xf32> to vector<2x16x128xf32>
    %c0_128 = arith.constant 0 : index
    %c0_129 = arith.constant 0 : index
    %c0_130 = arith.constant 0 : index
    %323 = vector.load %arg7[%c0_128, %c0_129, %c0_130] : memref<2x16x128xf32, #tpu.memory_space<vmem>>, vector<2x16x128xf32>
    tpu.vector_store %arg7[%c0_128, %c0_129, %c0_130], %322 {strides = array<i32>} : memref<2x16x128xf32, #tpu.memory_space<vmem>>, vector<2x16x128xf32>,
    return
  }
  func.func @transform_0(%arg0: i32) -> (i32, i32, i32) {
    %c0_i32 = arith.constant 0 : i32
    %c0_i32_0 = arith.constant 0 : i32
    %c0_i32_1 = arith.constant 0 : i32
    return %arg0, %c0_i32, %c0_i32_0 : i32, i32, i32
  }
  func.func @transform_1(%arg0: i32) -> (i32, i32, i32) {
    %c0_i32 = arith.constant 0 : i32
    %c0_i32_0 = arith.constant 0 : i32
    %c0_i32_1 = arith.constant 0 : i32
    return %arg0, %c0_i32, %c0_i32_0 : i32, i32, i32
  }
  func.func @transform_2(%arg0: i32) -> (i32, i32, i32) {
    %c0_i32 = arith.constant 0 : i32
    %c0_i32_0 = arith.constant 0 : i32
    %c0_i32_1 = arith.constant 0 : i32
    %c0_i32_2 = arith.constant 0 : i32
    return %c0_i32, %c0_i32_0, %c0_i32_1 : i32, i32, i32
  }
  func.func @transform_3(%arg0: i32) -> (i32, i32) {
    %c0_i32 = arith.constant 0 : i32
    %c0_i32_0 = arith.constant 0 : i32
    %c0_i32_1 = arith.constant 0 : i32
    return %c0_i32, %c0_i32_0 : i32, i32
  }
  func.func @transform_4(%arg0: i32) -> (i32, i32, i32) {
    %c0_i32 = arith.constant 0 : i32
    %c0_i32_0 = arith.constant 0 : i32
    %c0_i32_1 = arith.constant 0 : i32
    %c0_i32_2 = arith.constant 0 : i32
    return %c0_i32, %c0_i32_0, %c0_i32_1 : i32, i32, i32
  }
  func.func @transform_5(%arg0: i32) -> (i32, i32) {
    %c0_i32 = arith.constant 0 : i32
    %c0_i32_0 = arith.constant 0 : i32
    %c0_i32_1 = arith.constant 0 : i32
    return %c0_i32, %c0_i32_0 : i32, i32
  }
  func.func @transform_6(%arg0: i32) -> (i32, i32, i32) {
    %c0_i32 = arith.constant 0 : i32
    %c0_i32_0 = arith.constant 0 : i32
    %c0_i32_1 = arith.constant 0 : i32
    return %arg0, %c0_i32, %c0_i32_0 : i32, i32, i32
  }
}

</mosaic_0001>

<bundles_post_ra>
// kernel: tpu_custom_call.1
= control target key start
LH: loop header
LB: loop body
LE: loop exit
PB: predicated region body
PF: predicated region fallthrough
CT: control target
= control target key end

     0   :  { %11 = vsyncpa [#allocation3], 0  ;;  %s7145_s0 = inlined_call_operand.hbm [shape: f32[2,16,128], index: 0, kind: input, shape index: {}]   ;;  %s7146_s1 = inlined_call_operand.hbm [shape: f32[2,8,128], index: 1, kind: input, shape index: {}]   ;;  %s7147_s2 = inlined_call_operand.hbm [shape: f32[5,128,128], index: 2, kind: input, shape index: {}]   ;;  %s7148_s3 = inlined_call_operand.vmem [shape: f32[8,128], index: 3, kind: input, shape index: {}]   ;;  %s7149_s4 = inlined_call_operand.hbm [shape: f32[5,128,128], index: 4, kind: input, shape index: {}]   ;;  %s7150_s5 = inlined_call_operand.vmem [shape: f32[8,128], index: 5, kind: input, shape index: {}]   ;;  %s7151_s6 = inlined_call_operand.hbm [shape: f32[2,16,128], index: 6, kind: output, shape index: {}]  }
   0x1   :  { %12 = vsyncpa [#allocation6], 0 }
   0x2   :  { %13 = vsyncpa [#allocation9], 0 }
   0x3   :  { %14 = vsyncpa [#allocation4], 0  ;;  %s6500_s21 = smov [#allocation5]   ;;  %s6501_s23 = smov [#allocation2]  }
   0x4   :  { %s32_s22 = sshll.u32 %s6500_s21, 4  ;;  %s20_s24 = sshll.u32 %s6501_s23, 4  ;;  %s33_s22 = int_to_ptr.vmem [resolvable:$true] %s32_s22  ;;  %s6548_s24 = int_to_ptr.vmem [resolvable:$true] %s20_s24 }
   0x5   :  { %s6382_s27 = scalar_lea.hbm %s7146_s1, 256 }
   0x6   :  { %p6383_p0 = scmp.ne.s32.totalorder %s7146_s1, %s6382_s27  ;;  %p6386_p1 = scmp.lt.u32.totalorder %s6382_s27, %s7146_s1 }
   0x8   :  { %p6388_p2 = pnand %p6386_p1, %p6383_p0 }
   0xa   :  { %6391 = shalt.err (!%p6388_p2)
}
   0xb   :  { %s6392_s8 = scalar_lea.vmem %s33_s22, 256  ;;  %p6397_p4 = scmp.lt.s32.totalorder %s33_s22, %s33_s22 }
   0xc   :  { %p6393_p3 = scmp.ne.s32.totalorder %s33_s22, %s6392_s8  ;;  %p6398_p5 = scmp.lt.s32.totalorder %s6392_s8, %s6392_s8 }
   0xe   :  { %p6399_p6 = por %p6398_p5, %p6397_p4 }
  0x10   :  { %p6400_p7 = pnand %p6399_p6, %p6393_p3 }
  0x12   :  { %6403 = shalt.err (!%p6400_p7)
}
  0x13   :  { %s6502_s9 = smov 128   ;;  %s6503_s10 = smov 8  }
  0x14   :  { %38 = dma.hbm_to_vmem [thread:$0]  %s7146_s1, 256, %s33_s22, [#allocation6], %s6502_s9, %s6502_s9, %s6503_s10  }
  0x15   :  { %s6404_s15 = scalar_lea.hbm %s7145_s0, 512 }
  0x16   :  { %p6405_p8 = scmp.ne.s32.totalorder %s7145_s0, %s6404_s15  ;;  %p6408_p9 = scmp.lt.u32.totalorder %s6404_s15, %s7145_s0 }
  0x18   :  { %p6410_p10 = pnand %p6408_p9, %p6405_p8 }
  0x1a   :  { %6413 = shalt.err (!%p6410_p10)
}
  0x1b   :  { %s6414_s20 = scalar_lea.vmem %s6548_s24, 512  ;;  %p6419_p12 = scmp.lt.s32.totalorder %s6548_s24, %s6548_s24 }
  0x1c   :  { %p6415_p11 = scmp.ne.s32.totalorder %s6548_s24, %s6414_s20  ;;  %p6420_p13 = scmp.lt.s32.totalorder %s6414_s20, %s6414_s20 }
  0x1e   :  { %p6421_p0 = por %p6420_p13, %p6419_p12 }
  0x20   :  { %p6422_p1 = pnand %p6421_p0, %p6415_p11 }
  0x22   :  { %6425 = shalt.err (!%p6422_p1)
}
  0x23   :  { %26 = dma.hbm_to_vmem [thread:$0]  %s7145_s0, 512, %s6548_s24, [#allocation3], %s6502_s9, %s6502_s9, %s6503_s10  }
  0x24   :  { %s6504_s22 = smov [#allocation7]   ;;  %s6505_s25 = smov [#allocation8]  }
  0x25   :  { %s44_s23 = sshll.u32 %s6504_s22, 4  ;;  %s58_s26 = sshll.u32 %s6505_s25, 4  ;;  %s45_s23 = int_to_ptr.vmem [resolvable:$true] %s44_s23  ;;  %s6585_s26 = int_to_ptr.vmem [resolvable:$true] %s58_s26 }
  0x26   :  { %s6426_s29 = scalar_lea.hbm %s7147_s2, 10240 }
  0x27   :  { %p6427_p2 = scmp.ne.s32.totalorder %s7147_s2, %s6426_s29  ;;  %p6430_p3 = scmp.lt.u32.totalorder %s6426_s29, %s7147_s2 }
  0x29   :  { %p6432_p4 = pnand %p6430_p3, %p6427_p2 }
  0x2b   :  { %6435 = shalt.err (!%p6432_p4)
}
  0x2c   :  { %s6436_s0 = scalar_lea.vmem %s45_s23, 10240  ;;  %p6441_p6 = scmp.lt.s32.totalorder %s45_s23, %s45_s23 }
  0x2d   :  { %p6437_p5 = scmp.ne.s32.totalorder %s45_s23, %s6436_s0  ;;  %p6442_p7 = scmp.lt.s32.totalorder %s6436_s0, %s6436_s0 }
  0x2f   :  { %p6443_p8 = por %p6442_p7, %p6441_p6 }
  0x31   :  { %p6444_p9 = pnand %p6443_p8, %p6437_p5 }
  0x33   :  { %6447 = shalt.err (!%p6444_p9)
}
  0x34   :  { %50 = dma.hbm_to_vmem [thread:$0]  %s7147_s2, 10240, %s45_s23, [#allocation6], %s6502_s9, %s6502_s9, %s6503_s10  }
  0x35   :  { %s6448_s15 = scalar_lea.hbm %s7149_s4, 10240 }
  0x36   :  { %p6449_p10 = scmp.ne.s32.totalorder %s7149_s4, %s6448_s15  ;;  %p6452_p11 = scmp.lt.u32.totalorder %s6448_s15, %s7149_s4 }
  0x38   :  { %p6454_p12 = pnand %p6452_p11, %p6449_p10 }
  0x3a   :  { %6457 = shalt.err (!%p6454_p12)
}
  0x3b   :  { %s6458_s20 = scalar_lea.vmem %s6585_s26, 10240  ;;  %p6463_p0 = scmp.lt.s32.totalorder %s6585_s26, %s6585_s26 }
  0x3c   :  { %p6459_p13 = scmp.ne.s32.totalorder %s6585_s26, %s6458_s20  ;;  %p6464_p1 = scmp.lt.s32.totalorder %s6458_s20, %s6458_s20 }
  0x3e   :  { %p6465_p2 = por %p6464_p1, %p6463_p0 }
  0x40   :  { %p6466_p3 = pnand %p6465_p2, %p6459_p13 }
  0x42   :  { %6469 = shalt.err (!%p6466_p3)
}
  0x43   :  { %64 = dma.hbm_to_vmem [thread:$0]  %s7149_s4, 10240, %s6585_s26, [#allocation9], %s6502_s9, %s6502_s9, %s6503_s10  }
  0x44   :  { %6492 = dma.done.wait [#allocation3], 512  }
  0x45   :  { %6493 = vsyncadd [#allocation3], 4294966784 }
  0x46   :  { %6494 = dma.done.wait [#allocation6], 10496  }
  0x47   :  { %6495 = vsyncadd [#allocation6], 4294956800 }
  0x48   :  { %6496 = dma.done.wait [#allocation9], 10240  }
  0x49   :  { %6497 = vsyncadd [#allocation9], 4294957056  ;;  %v190_v0 = vld [vmem:[#allocation7 + $0x80] sm:$0xff]  ;;  %v191_v1 = vld [vmem:[#allocation7 + $0x88] sm:$0xff]  ;;  %vm6507_vm0 = vmmov 0   ;;  %vm418_vm1 = vcmask 261120  }
  0x4a   :  { %v192_v2 = vld [vmem:[#allocation7 + $0x90] sm:$0xff]  ;;  %v5820_v3 = vpack.c.bf16 %v191_v1, %v190_v0  ;;  %v193_v4 = vld [vmem:[#allocation7 + $0x98] sm:$0xff]  ;;  %v92_v5 = vld [vmem:[#allocation7] sm:$0xff]  ;;  %vm577_vm3 = vcmask 130048   ;;  %s6509_s27 = smov 96   ;;  %s6510_s28 = smov 64  }
  0x4b   :  { %v93_v6 = vld [vmem:[#allocation7 + $0x8] sm:$0xff]  ;;  %v5824_v7 = vpack.c.bf16 %v193_v4, %v192_v2  ;;  %v194_v9 = vld [vmem:[#allocation7 + $0xa0] sm:$0xff]  ;;  %v94_v11 = vld [vmem:[#allocation7 + $0x10] sm:$0xff]  ;;  %s6511_s29 = smov 32   ;;  %vm2770_vm4 = vcmask 64512  }
  0x4c   :  { %v5788_v8 = vpack.c.bf16 %v93_v6, %v92_v5  ;;  %v195_v10 = vld [vmem:[#allocation7 + $0xa8] sm:$0xff]  ;;  %5821 = vmatprep.subr.bf16.mxu1 %v5820_v3  ;;  %v95_v12 = vld [vmem:[#allocation7 + $0x18] sm:$0xff]  ;;  %v96_v14 = vld [vmem:[#allocation7 + $0x20] sm:$0xff] }
  0x4d   :  { %5823 = vmatpush3.bf16.msra.mxu1 %v5820_v3  ;;  %v5792_v13 = vpack.c.bf16 %v95_v12, %v94_v11  ;;  %v97_v15 = vld [vmem:[#allocation7 + $0x28] sm:$0xff]  ;;  %v5828_v16 = vpack.c.bf16 %v195_v10, %v194_v9  ;;  %v196_v17 = vld [vmem:[#allocation7 + $0xb0] sm:$0xff]  ;;  %v197_v18 = vld [vmem:[#allocation7 + $0xb8] sm:$0xff] }
  0x4e   :  { %5789 = vmatprep.subr.bf16.mxu0 %v5788_v8  ;;  %5825 = vmatprep.subr.bf16.mxu1 %v5824_v7  ;;  %v5796_v19 = vpack.c.bf16 %v97_v15, %v96_v14  ;;  %v98_v20 = vld [vmem:[#allocation7 + $0x30] sm:$0xff]  ;;  %v99_v21 = vld [vmem:[#allocation7 + $0x38] sm:$0xff]  ;;  %v5832_v22 = vpack.c.bf16 %v197_v18, %v196_v17  ;;  %v198_v23 = vld [vmem:[#allocation7 + $0xc0] sm:$0xff]  ;;  %v6506_v14 = vmov 0.0|0.0   ;;  %v6508_v15 = vmov 0.0  }
  0x4f   :  { %5791 = vmatpush3.bf16.msra.mxu0 %v5788_v8  ;;  %v199_v24 = vld [vmem:[#allocation7 + $0xc8] sm:$0xff]  ;;  %v5800_v25 = vpack.c.bf16 %v99_v21, %v98_v20  ;;  %v6622_v26 = vld [vmem:[#allocation2] sm:$0xff]  ;;  %v100_v27 = vld [vmem:[#allocation7 + $0x40] sm:$0xff] }
  0x50   :  { %5793 = vmatprep.subr.bf16.mxu0 %v5792_v13  ;;  %v101_v28 = vld [vmem:[#allocation7 + $0x48] sm:$0xff]  ;;  %5271 = vmatprep.mubr.f32.mxu1 %v6622_v26  ;;  %v6625_v29 = vld [vmem:[#allocation5] sm:$0xff]  ;;  %v5836_v30 = vpack.c.bf16 %v199_v24, %v198_v23  ;;  %v201_v32 = vld [vmem:[#allocation7 + $0xd8] sm:$0xff] }
  0x51   :  { %5827 = vmatpush3.bf16.msra.mxu1 %v5824_v7  ;;  %v200_v31 = vld [vmem:[#allocation7 + $0xd0] sm:$0xff]  ;;  %v5804_v33 = vpack.c.bf16 %v101_v28, %v100_v27  ;;  %5236 = vmatprep.mubr.f32.mxu0 %v6625_v29  ;;  %v103_v35 = vld [vmem:[#allocation7 + $0x58] sm:$0xff]  ;;  %v202_v37 = vld [vmem:[#allocation7 + $0xe0] sm:$0xff] }
  0x52   :  { %5829 = vmatprep.subr.bf16.mxu1 %v5828_v16  ;;  %v102_v34 = vld [vmem:[#allocation7 + $0x50] sm:$0xff]  ;;  %v5840_v36 = vpack.c.bf16 %v201_v32, %v200_v31  ;;  %v203_v38 = vld [vmem:[#allocation7 + $0xe8] sm:$0xff]  ;;  %v104_v40 = vld [vmem:[#allocation7 + $0x60] sm:$0xff] }
  0x53   :  { %5795 = vmatpush3.bf16.msra.mxu0 %v5792_v13  ;;  %v5808_v39 = vpack.c.bf16 %v103_v35, %v102_v34  ;;  %v105_v41 = vld [vmem:[#allocation7 + $0x68] sm:$0xff]  ;;  %v5844_v42 = vpack.c.bf16 %v203_v38, %v202_v37  ;;  %v204_v43 = vld [vmem:[#allocation7 + $0xf0] sm:$0xff]  ;;  %v205_v44 = vld [vmem:[#allocation7 + $0xf8] sm:$0xff] }
  0x54   :  { %5797 = vmatprep.subr.bf16.mxu0 %v5796_v19  ;;  %v5812_v45 = vpack.c.bf16 %v105_v41, %v104_v40  ;;  %v106_v46 = vld [vmem:[#allocation7 + $0x70] sm:$0xff]  ;;  %v107_v47 = vld [vmem:[#allocation7 + $0x78] sm:$0xff]  ;;  %v5848_v48 = vpack.c.bf16 %v205_v44, %v204_v43  ;;  %v296_v50 = vld [vmem:[#allocation7 + $0x100] sm:$0xff] }
  0x55   :  { %5831 = vmatpush3.bf16.msra.mxu1 %v5828_v16  ;;  %v5816_v49 = vpack.c.bf16 %v107_v47, %v106_v46  ;;  %v297_v51 = vld [vmem:[#allocation7 + $0x108] sm:$0xff]  ;;  %v298_v53 = vld [vmem:[#allocation7 + $0x110] sm:$0xff]  ;;  %v299_v54 = vld [vmem:[#allocation7 + $0x118] sm:$0xff] }
  0x56   :  { %5833 = vmatprep.subr.bf16.mxu1 %v5832_v22  ;;  %v5852_v52 = vpack.c.bf16 %v297_v51, %v296_v50  ;;  %v80_v55 = vld [vmem:[#allocation2 + $0x8] sm:$0xff]  ;;  %v81_v56 = vld [vmem:[#allocation2 + $0x10] sm:$0xff]  ;;  %v5856_v58 = vpack.c.bf16 %v299_v54, %v298_v53  ;;  %v301_v60 = vld [vmem:[#allocation7 + $0x128] sm:$0xff] }
  0x57   :  { %5799 = vmatpush3.bf16.msra.mxu0 %v5796_v19  ;;  %v6628_v57 = vld [vmem:[#allocation5 + $0x8] sm:$0xff]  ;;  %v300_v59 = vld [vmem:[#allocation7 + $0x120] sm:$0xff]  ;;  %v82_v61 = vld [vmem:[#allocation2 + $0x18] sm:$0xff] }
  0x58   :  { %5801 = vmatprep.subr.bf16.mxu0 %v5800_v25  ;;  %v5860_v62 = vpack.c.bf16 %v301_v60, %v300_v59  ;;  %v302_v63 = vld [vmem:[#allocation7 + $0x130] sm:$0xff]  ;;  %v303_v0 = vld [vmem:[#allocation7 + $0x138] sm:$0xff]  ;;  %v304_v2 = vld [vmem:[#allocation7 + $0x140] sm:$0xff] }
  0x59   :  { %5835 = vmatpush3.bf16.msra.mxu1 %v5832_v22  ;;  %v5864_v1 = vpack.c.bf16 %v303_v0, %v302_v63  ;;  %v305_v3 = vld [vmem:[#allocation7 + $0x148] sm:$0xff]  ;;  %v306_v5 = vld [vmem:[#allocation7 + $0x150] sm:$0xff]  ;;  %v307_v6 = vld [vmem:[#allocation7 + $0x158] sm:$0xff] }
  0x5a   :  { %5837 = vmatprep.subr.bf16.mxu1 %v5836_v30  ;;  %v5868_v4 = vpack.c.bf16 %v305_v3, %v304_v2  ;;  %v5872_v7 = vpack.c.bf16 %v307_v6, %v306_v5  ;;  %v308_v8 = vld [vmem:[#allocation7 + $0x160] sm:$0xff]  ;;  %v309_v9 = vld [vmem:[#allocation7 + $0x168] sm:$0xff]  ;;  %v310_v11 = vld [vmem:[#allocation7 + $0x170] sm:$0xff] }
  0x5b   :  { %5803 = vmatpush3.bf16.msra.mxu0 %v5800_v25  ;;  %v5876_v10 = vpack.c.bf16 %v309_v9, %v308_v8  ;;  %v311_v12 = vld [vmem:[#allocation7 + $0x178] sm:$0xff]  ;;  %v4791_v16 = vld [vmem:[%s7148_s3 + $0x1] ss:$0 sm:$0xff]  ;;  %v4790_v22 = vld [vmem:[%s7148_s3] ss:$0 sm:$0xff] }
  0x5c   :  { %5805 = vmatprep.subr.bf16.mxu0 %v5804_v33  ;;  %v5880_v13 = vpack.c.bf16 %v311_v12, %v310_v11  ;;  %vm6646_vm2 = vmpackc.low %vm418_vm1, %vm418_vm1 }
  0x5d   :  { %5839 = vmatpush3.bf16.msra.mxu1 %v5836_v30 }
  0x5e   :  { %5841 = vmatprep.subr.bf16.mxu1 %v5840_v36 }
  0x5f   :  { %5807 = vmatpush3.bf16.msra.mxu0 %v5804_v33 }
  0x60   :  { %5809 = vmatprep.subr.bf16.mxu0 %v5808_v39 }
  0x61   :  { %5843 = vmatpush3.bf16.msra.mxu1 %v5840_v36 }
  0x62   :  { %5845 = vmatprep.subr.bf16.mxu1 %v5844_v42 }
  0x63   :  { %5811 = vmatpush3.bf16.msra.mxu0 %v5808_v39  ;;  %v4792_v39 = vld [vmem:[%s7148_s3 + $0x2] ss:$0 sm:$0xff] }
  0x64   :  { %5813 = vmatprep.subr.bf16.mxu0 %v5812_v45 }
  0x65   :  { %5847 = vmatpush3.bf16.msra.mxu1 %v5844_v42 }
  0x66   :  { %5849 = vmatprep.subr.bf16.mxu1 %v5848_v48 }
  0x67   :  { %5815 = vmatpush3.bf16.msra.mxu0 %v5812_v45 }
  0x68   :  { %5817 = vmatprep.subr.bf16.mxu0 %v5816_v49 }
  0x69   :  { %5851 = vmatpush3.bf16.msra.mxu1 %v5848_v48 }
  0x6a   :  { %5888 = vmatprep.subr.bf16.mxu1 %v6506_v14 }
  0x6b   :  { %5819 = vmatpush3.bf16.msra.mxu0 %v5816_v49 }
  0x6c   :  { %5853 = vmatprep.subr.bf16.mxu0 %v5852_v52  ;;  %5272 = vmatmul.mubr.f32.vlgmr.msra.gmra.mrb[0].mxu1 %v80_v55 }
  0x6d   :  { %5274 = vmatprep.mubr.f32.mxu1 %v81_v56 }
  0x6e   :  { %5237 = vmatmul.mubr.f32.vlgmr.msra.gmra.mrb[0].mxu0 %v6628_v57 }
  0x6f   :  { %5855 = vmatpush3.bf16.msra.mxu0 %v5852_v52  ;;  %5309 = vmatprep.mubr.f32.mxu0 %v6622_v26 }
  0x70   :  { %5857 = vmatprep.subr.bf16.mxu0 %v5856_v58  ;;  %5275 = vmatmul.mubr.f32.gmra.mrb[2].mxu1 %v82_v61 }
  0x71   :  { %5326 = vmatprep.mubr.msk.f32.mxu1 %vm6507_vm0, %v6508_v15 }
  0x73   :  { %5859 = vmatpush3.bf16.msra.mxu0 %v5856_v58 }
  0x74   :  { %5861 = vmatprep.subr.bf16.mxu0 %v5860_v62 }
  0x77   :  { %5863 = vmatpush3.bf16.msra.mxu0 %v5860_v62 }
  0x78   :  { %5865 = vmatprep.subr.bf16.mxu0 %v5864_v1 }
  0x7b   :  { %5867 = vmatpush3.bf16.msra.mxu0 %v5864_v1 }
  0x7c   :  { %5869 = vmatprep.subr.bf16.mxu0 %v5868_v4 }
  0x7f   :  { %5871 = vmatpush3.bf16.msra.mxu0 %v5868_v4 }
  0x80   :  { %5873 = vmatprep.subr.bf16.mxu0 %v5872_v7 }
  0x83   :  { %5875 = vmatpush3.bf16.msra.mxu0 %v5872_v7 }
  0x84   :  { %5877 = vmatprep.subr.bf16.mxu0 %v5876_v10 }
  0x87   :  { %5879 = vmatpush3.bf16.msra.mxu0 %v5876_v10 }
  0x88   :  { %5881 = vmatprep.subr.bf16.mxu0 %v5880_v13 }
  0x8b   :  { %5883 = vmatpush3.bf16.msra.mxu0 %v5880_v13 }
  0x8c   :  { %5884 = vmatprep.subr.bf16.mxu0 %v6506_v14 }
  0x8e   :  { %5310 = vmatmul.mubr.f32.vlgmr.msra.gmra.mrb[2].mxu0 %v80_v55 }
  0x8f   :  { %5312 = vmatprep.mubr.f32.mxu0 %v81_v56 }
  0x92   :  { %5313 = vmatmul.mubr.f32.gmra.mrb[4].mxu0 %v82_v61 }
  0x93   :  { %5319 = vmatprep.mubr.msk.f32.mxu0 %vm6507_vm0, %v6508_v15 }
 0x13f   :  { %v5273_v17 = vpop.f32.mrb[0].mxu1 }
 0x140   :  { %v282_v18 = vadd.f32 %v5273_v17, %v4791_v16  ;;  %v276_v19 = vpop.f32.mrb[1].mxu1 }
 0x141   :  { %v5238_v20 = vpop.f32.mrb[0].mxu0  ;;  %v277_v21 = vadd.f32 %v4791_v16, %v276_v19 }
 0x142   :  { %v178_v23 = vpop.f32.mrb[1].mxu0  ;;  %v184_v37 = vadd.f32 %v5238_v20, %v4790_v22 }
 0x143   :  { %v5885_v25 = vpack.c.bf16 %v282_v18, %v277_v21  ;;  %v5276_v27 = vpop.f32.mrb[2].mxu1  ;;  %v6650_v28 = vpack.i.bf16 %v282_v18, %v277_v21  ;;  %v179_v32 = vadd.f32 %v4790_v22, %v178_v23 }
 0x144   :  { %v292_v30 = vadd.f32 %v5276_v27, %v4791_v16  ;;  %v286_v31 = vpop.f32.mrb[3].mxu1  ;;  %v6666_v38 = vmul.f32 0.17677669, %v184_v37 }
 0x145   :  { %v287_v33 = vadd.f32 %v4791_v16, %v286_v31  ;;  %5887 = vmatpush3.bf16.xpose.msk.msra.mxu0 %vm6646_vm2, %v5885_v25  ;;  %v6657_v36 = vmul.f32 0.17677669, %v179_v32 }
 0x146   :  { %5902 = vmatprep.subr.bf16.mxu0 %v6506_v14 }
 0x147   :  { %v5889_v34 = vpack.c.bf16 %v292_v30, %v287_v33  ;;  %v6655_v35 = vpack.i.bf16 %v292_v30, %v287_v33 }
 0x149   :  { %5891 = vmatpush3.bf16.xpose.msk.msra.mxu1 %vm6646_vm2, %v5889_v34 }
 0x14a   :  { %5892 = vmatprep.subr.bf16.mxu1 %v6506_v14 }
 0x14c   :  { %5320 = vmatmul.mubr.msk.f32.vlgmr.msra.gmra.mrb[6].mxu0 %vm418_vm1, %v6657_v36 }
 0x14d   :  { %5354 = vmatprep.mubr.msk.f32.mxu0 %vm6507_vm0, %v6508_v15 }
 0x150   :  { %5327 = vmatmul.mubr.msk.f32.vlgmr.msra.gmra.mrb[4].mxu1 %vm418_vm1, %v6666_v38 }
 0x151   :  { %5333 = vmatprep.mubr.msk.f32.mxu1 %vm6507_vm0, %v6508_v15 }
 0x161   :  { %v5311_v40 = vpop.f32.mrb[2].mxu0 }
 0x162   :  { %v388_v41 = vadd.f32 %v5311_v40, %v4792_v39  ;;  %v382_v42 = vpop.f32.mrb[3].mxu0 }
 0x163   :  { %v383_v43 = vadd.f32 %v4792_v39, %v382_v42 }
 0x165   :  { %v5314_v44 = vpop.f32.mrb[4].mxu0  ;;  %v5893_v45 = vpack.c.bf16 %v388_v41, %v383_v43  ;;  %v6676_v49 = vpack.i.bf16 %v388_v41, %v383_v43 }
 0x166   :  { %v398_v46 = vadd.f32 %v5314_v44, %v4792_v39  ;;  %v392_v47 = vpop.f32.mrb[5].mxu0 }
 0x167   :  { %v393_v48 = vadd.f32 %v4792_v39, %v392_v47  ;;  %5894 = vmatpush3.bf16.msra.mxu1 %v5893_v45 }
 0x168   :  { %5895 = vmatprep.subr.bf16.mxu1 %v6506_v14 }
 0x169   :  { %v5896_v50 = vpack.c.bf16 %v398_v46, %v393_v48  ;;  %v6678_v51 = vpack.i.bf16 %v398_v46, %v393_v48 }
 0x21f   :  { %v494_v52 = vpop.f32.mrb[6].mxu0 }
 0x220   :  { %v5321_v53 = vpop.f32.mrb[7].mxu0  ;;  %v578_v54 = vsel %vm577_vm3, %v494_v52, -inf }
 0x221   :  { %579 = vmax.xlane.f32.xlu0 %v578_v54  ;;  %v407_v53 = vld [vmem:[#allocation7 + $0x1a8] sm:$0xff] }
 0x223   :  { %v573_v55 = vpop.f32.mrb[4].mxu1 }
 0x224   :  { %v5328_v56 = vpop.f32.mrb[5].mxu1  ;;  %v581_v58 = vsel %vm577_vm3, %v573_v55, -inf }
 0x225   :  { %582 = vmax.xlane.f32.xlu0 %v581_v58 }
 0x23b   :  { %6196 = vrot.lane.b32.xlu0 %v6650_v28, %s6509_s27 }
 0x2ae   :  { %v580_v59 = vpop.xlane.xlu0 %579 }
 0x2af   :  { %v584_v60 = vsub.f32 %v494_v52, %v580_v59  ;;  %v406_v52 = vld [vmem:[#allocation7 + $0x1a0] sm:$0xff] }
 0x2b0   :  { %v5912_v54 = vpack.c.bf16 %v407_v53, %v406_v52 }
 0x2b1   :  { %v586_v61 = vmul.f32 1.442695, %v584_v60 }
 0x2b2   :  { %v583_v0 = vpop.xlane.xlu0 %582 }
 0x2b3   :  { %6255 = vpow2.f32 %v586_v61  ;;  %v585_v1 = vsub.f32 %v573_v55, %v583_v0 }
 0x2b5   :  { %v588_v2 = vmul.f32 1.442695, %v585_v1 }
 0x2b6   :  { %v6197_v13 = vpop.permute.xlu0 %6196 }
 0x2b7   :  { %6257 = vpow2.f32 %v588_v2  ;;  %v6199_v17 = vunpack.i.h.bf16 %v6197_v13  ;;  %v6198_v18 = vunpack.i.l.bf16 %v6197_v13 }
 0x2b9   :  { %v5899_v21 = vpack.c.bf16 %v6199_v17, %v6198_v18  ;;  %v408_v18 = vld [vmem:[#allocation7 + $0x1b0] sm:$0xff] }
 0x2bd   :  { %v6256_v62 = vpop.eup %6255 }
 0x2be   :  { %v590_v63 = vsel %vm577_vm3, %v6256_v62, 0.0 }
 0x2bf   :  { %591 = vadd.xlane.f32.xlu1 %v590_v63 }
 0x2c1   :  { %v6258_v3 = vpop.eup %6257 }
 0x2c2   :  { %v593_v4 = vsel %vm577_vm3, %v6258_v3, 0.0 }
 0x2d0   :  { %746 = vrot.lane.b32.xlu1 %v6657_v36, %s6509_s27 }
 0x2f4   :  { %594 = vadd.xlane.f32.xlu1 %v593_v4 }
 0x305   :  { %6201 = vrot.lane.b32.xlu1 %v6655_v35, %s6509_s27 }
 0x309   :  { %828 = vrot.lane.b32.xlu1 %v6666_v38, %s6509_s27 }
 0x34c   :  { %v592_v5 = vpop.xlane.xlu1 %591 }
 0x34d   :  { %6259 = vrcp.f32 %v592_v5 }
 0x350   :  { %v747_v8 = vpop.permute.xlu1 %746 }
 0x357   :  { %v6260_v6 = vpop.eup %6259 }
 0x358   :  { %v598_v7 = vmul.f32 %v6260_v6, %v6256_v62 }
 0x35a   :  { %5334 = vmatmul.mubr.msk.f32.vlgmr.msra.gmra.mrb[6].mxu1 %vm577_vm3, %v598_v7 }
 0x35b   :  { %5897 = vmatpush3.bf16.msra.mxu1 %v5896_v50  ;;  %5340 = vmatprep.mubr.msk.f32.mxu1 %vm6507_vm0, %v6508_v15 }
 0x35c   :  { %5898 = vmatprep.subr.bf16.mxu1 %v6506_v14 }
 0x381   :  { %v595_v9 = vpop.xlane.xlu1 %594 }
 0x382   :  { %6261 = vrcp.f32 %v595_v9 }
 0x385   :  { %v6202_v10 = vpop.permute.xlu1 %6201 }
 0x386   :  { %v6204_v11 = vunpack.i.h.bf16 %v6202_v10  ;;  %v6203_v12 = vunpack.i.l.bf16 %v6202_v10 }
 0x388   :  { %v5903_v16 = vpack.c.bf16 %v6204_v11, %v6203_v12 }
 0x389   :  { %v829_v22 = vpop.permute.xlu1 %828 }
 0x38a   :  { %5905 = vmatpush3.bf16.xpose.msk.msra.mxu0 %vm6646_vm2, %v5903_v16 }
 0x38b   :  { %5913 = vmatprep.subr.bf16.mxu0 %v5912_v54 }
 0x38c   :  { %v6262_v19 = vpop.eup %6261 }
 0x38d   :  { %v599_v20 = vmul.f32 %v6262_v19, %v6258_v3  ;;  %v409_v19 = vld [vmem:[#allocation7 + $0x1b8] sm:$0xff] }
 0x38f   :  { %5341 = vmatmul.mubr.msk.f32.vlgmr.msra.gmra.mrb[8].mxu1 %vm577_vm3, %v599_v20  ;;  %v5916_v20 = vpack.c.bf16 %v409_v19, %v408_v18 }
 0x390   :  { %5901 = vmatpush3.bf16.xpose.msk.msra.mxu1 %vm6646_vm2, %v5899_v21  ;;  %5347 = vmatprep.mubr.msk.f32.mxu1 %vm6507_vm0, %v6508_v15  ;;  %v402_v21 = vld [vmem:[#allocation7 + $0x180] sm:$0xff] }
 0x391   :  { %5355 = vmatmul.mubr.msk.f32.vlgmr.msra.gmra.mrb[8].mxu0 %vm418_vm1, %v829_v22  ;;  %5906 = vmatprep.subr.bf16.mxu1 %v6506_v14  ;;  %v403_v22 = vld [vmem:[#allocation7 + $0x188] sm:$0xff] }
 0x392   :  { %5915 = vmatpush3.bf16.msra.mxu0 %v5912_v54 }
 0x393   :  { %5917 = vmatprep.subr.bf16.mxu0 %v5916_v20 }
 0x396   :  { %5919 = vmatpush3.bf16.msra.mxu0 %v5916_v20 }
 0x397   :  { %5348 = vmatmul.mubr.msk.f32.vlgmr.msra.gmra.mrb[10].mxu1 %vm418_vm1, %v747_v8 }
 0x398   :  { %5361 = vmatprep.mubr.msk.f32.mxu1 %vm6507_vm0, %v6508_v15 }
 0x42d   :  { %v6708_v23 = vpop.f32.mrb[6].mxu1 }
 0x42e   :  { %v5335_v25 = vpop.f32.mrb[7].mxu1 }
 0x42f   :  { %v5920_v25 = vpack.c.bf16 %v403_v22, %v402_v21 }
 0x431   :  { %5921 = vmatprep.subr.bf16.mxu0 %v5920_v25 }
 0x462   :  { %v6710_v27 = vpop.f32.mrb[8].mxu1 }
 0x463   :  { %v5342_v30 = vpop.f32.mrb[9].mxu1 }
 0x464   :  { %v906_v31 = vpop.f32.mrb[8].mxu0 }
 0x465   :  { %v5356_v32 = vpop.f32.mrb[9].mxu0  ;;  %v913_v33 = vsel %vm577_vm3, %v906_v31, -inf }
 0x466   :  { %914 = vmax.xlane.f32.xlu1 %v913_v33  ;;  %v405_v32 = vld [vmem:[#allocation7 + $0x198] sm:$0xff] }
 0x46a   :  { %v824_v34 = vpop.f32.mrb[10].mxu1 }
 0x46b   :  { %v5349_v37 = vpop.f32.mrb[11].mxu1  ;;  %v910_v39 = vsel %vm577_vm3, %v824_v34, -inf }
 0x46c   :  { %911 = vmax.xlane.f32.xlu0 %v910_v39 }
 0x477   :  { %6211 = vrot.lane.b32.xlu1 %v6678_v51, %s6509_s27 }
 0x47b   :  { %6216 = vrot.lane.b32.xlu1 %v6650_v28, %s6510_s28 }
 0x47f   :  { %6221 = vrot.lane.b32.xlu1 %v6655_v35, %s6510_s28 }
 0x483   :  { %1338 = vrot.lane.b32.xlu1 %v6666_v38, %s6510_s28 }
 0x4f3   :  { %v915_v40 = vpop.xlane.xlu1 %914 }
 0x4f4   :  { %v917_v41 = vsub.f32 %v906_v31, %v915_v40  ;;  %v404_v31 = vld [vmem:[#allocation7 + $0x190] sm:$0xff] }
 0x4f6   :  { %v920_v42 = vmul.f32 1.442695, %v917_v41 }
 0x4f7   :  { %v6212_v61 = vpop.permute.xlu1 %6211 }
 0x4f8   :  { %6263 = vpow2.f32 %v920_v42  ;;  %v6214_v63 = vunpack.i.h.bf16 %v6212_v61  ;;  %v6213_v0 = vunpack.i.l.bf16 %v6212_v61  ;;  %v411_v61 = vld [vmem:[#allocation7 + $0x1c8] sm:$0xff] }
 0x4f9   :  { %v912_v43 = vpop.xlane.xlu0 %911 }
 0x4fa   :  { %v916_v44 = vsub.f32 %v824_v34, %v912_v43  ;;  %v5910_v4 = vpack.c.bf16 %v6214_v63, %v6213_v0  ;;  %v5924_v34 = vpack.c.bf16 %v405_v32, %v404_v31 }
 0x4fb   :  { %v6217_v5 = vpop.permute.xlu1 %6216 }
 0x4fc   :  { %v918_v45 = vmul.f32 1.442695, %v916_v44  ;;  %v6219_v7 = vunpack.i.h.bf16 %v6217_v5  ;;  %v6218_v8 = vunpack.i.l.bf16 %v6217_v5  ;;  %v412_v5 = vld [vmem:[#allocation7 + $0x1d0] sm:$0xff] }
 0x4fe   :  { %6265 = vpow2.f32 %v918_v45  ;;  %v5929_v9 = vpack.c.bf16 %v6219_v7, %v6218_v8 }
 0x4ff   :  { %v6222_v10 = vpop.permute.xlu1 %6221 }
 0x500   :  { %v6224_v11 = vunpack.i.h.bf16 %v6222_v10  ;;  %v6223_v12 = vunpack.i.l.bf16 %v6222_v10 }
 0x502   :  { %v6264_v46 = vpop.eup %6263  ;;  %v5933_v13 = vpack.c.bf16 %v6224_v11, %v6223_v12 }
 0x503   :  { %v925_v47 = vsel %vm577_vm3, %v6264_v46, 0.0  ;;  %v1339_v17 = vpop.permute.xlu1 %1338 }
 0x504   :  { %926 = vadd.xlane.f32.xlu0 %v925_v47 }
 0x508   :  { %v6266_v48 = vpop.eup %6265 }
 0x509   :  { %v922_v50 = vsel %vm577_vm3, %v6266_v48, 0.0 }
 0x50a   :  { %923 = vadd.xlane.f32.xlu0 %v922_v50 }
 0x520   :  { %6206 = vrot.lane.b32.xlu0 %v6676_v49, %s6509_s27 }
 0x524   :  { %1256 = vrot.lane.b32.xlu0 %v6657_v36, %s6510_s28 }
 0x591   :  { %v927_v55 = vpop.xlane.xlu0 %926 }
 0x597   :  { %v924_v56 = vpop.xlane.xlu0 %923 }
 0x598   :  { %6267 = vrcp.f32 %v924_v56 }
 0x599   :  { %6269 = vrcp.f32 %v927_v55 }
 0x59b   :  { %v6207_v58 = vpop.permute.xlu0 %6206 }
 0x59c   :  { %v6209_v59 = vunpack.i.h.bf16 %v6207_v58  ;;  %v6208_v60 = vunpack.i.l.bf16 %v6207_v58 }
 0x59e   :  { %v5907_v62 = vpack.c.bf16 %v6209_v59, %v6208_v60  ;;  %v410_v60 = vld [vmem:[#allocation7 + $0x1c0] sm:$0xff] }
 0x59f   :  { %v1257_v16 = vpop.permute.xlu0 %1256 }
 0x5a0   :  { %5908 = vmatpush3.bf16.msra.mxu1 %v5907_v62 }
 0x5a1   :  { %5909 = vmatprep.subr.bf16.mxu1 %v6506_v14 }
 0x5a2   :  { %v6268_v1 = vpop.eup %6267 }
 0x5a3   :  { %v930_v2 = vmul.f32 %v6268_v1, %v6266_v48  ;;  %v6270_v3 = vpop.eup %6269 }
 0x5a4   :  { %v931_v6 = vmul.f32 %v6270_v3, %v6264_v46 }
 0x5a5   :  { %5362 = vmatmul.mubr.msk.f32.vlgmr.msra.gmra.mrb[12].mxu1 %vm577_vm3, %v930_v2  ;;  %v5942_v2 = vpack.c.bf16 %v411_v61, %v410_v60 }
 0x5a6   :  { %5911 = vmatpush3.bf16.msra.mxu1 %v5910_v4  ;;  %5368 = vmatprep.mubr.msk.f32.mxu1 %vm6507_vm0, %v6508_v15 }
 0x5a7   :  { %5928 = vmatprep.subr.bf16.mxu1 %v6506_v14 }
 0x5a9   :  { %5369 = vmatmul.mubr.msk.f32.vlgmr.msra.gmra.mrb[14].mxu1 %vm577_vm3, %v931_v6  ;;  %v413_v6 = vld [vmem:[#allocation7 + $0x1d8] sm:$0xff] }
 0x5aa   :  { %5397 = vmatprep.mubr.msk.f32.mxu1 %vm6507_vm0, %v6508_v15 }
 0x5af   :  { %5931 = vmatpush3.bf16.xpose.msk.msra.mxu1 %vm6646_vm2, %v5929_v9 }
 0x5b0   :  { %5932 = vmatprep.subr.bf16.mxu1 %v6506_v14 }
 0x5b6   :  { %5398 = vmatmul.mubr.msk.f32.vlgmr.msra.gmra.mrb[16].mxu1 %vm418_vm1, %v1257_v16 }
 0x5b7   :  { %5935 = vmatpush3.bf16.xpose.msk.msra.mxu1 %vm6646_vm2, %v5933_v13  ;;  %5404 = vmatprep.mubr.msk.f32.mxu1 %vm6507_vm0, %v6508_v15 }
 0x5b8   :  { %5939 = vmatprep.subr.bf16.mxu1 %v6506_v14 }
 0x5be   :  { %5405 = vmatmul.mubr.msk.f32.vlgmr.msra.gmra.mrb[18].mxu1 %vm418_vm1, %v1339_v17 }
 0x5bf   :  { %5418 = vmatprep.mubr.msk.f32.mxu1 %vm6507_vm0, %v6508_v15 }
 0x678   :  { %v1009_v30 = vpop.f32.mrb[12].mxu1 }
 0x679   :  { %v5363_v33 = vpop.f32.mrb[13].mxu1  ;;  %5379 = vmatprep.mubr.msk.f32.mxu0 %vm418_vm1, %v1009_v30 }
 0x67c   :  { %v1090_v37 = vpop.f32.mrb[14].mxu1 }
 0x67d   :  { %v5370_v39 = vpop.f32.mrb[15].mxu1  ;;  %5380 = vmatmul.mubr.msk.f32.vlgmr.msra.gmra.mrb[10].mxu0 %vm418_vm1, %v1090_v37 }
 0x67e   :  { %5923 = vmatpush3.bf16.msra.mxu0 %v5920_v25  ;;  %5390 = vmatprep.mubr.msk.f32.mxu0 %vm418_vm1, %v6708_v23 }
 0x67f   :  { %5925 = vmatprep.subr.bf16.mxu0 %v5924_v34 }
 0x682   :  { %5927 = vmatpush3.bf16.msra.mxu0 %v5924_v34 }
 0x683   :  { %5936 = vmatprep.subr.bf16.mxu0 %v6506_v14 }
 0x685   :  { %5391 = vmatmul.mubr.msk.f32.vlgmr.msra.gmra.mrb[10].mxu0 %vm418_vm1, %v6710_v27 }
 0x686   :  { %5411 = vmatprep.mubr.msk.f32.mxu0 %vm6507_vm0, %v6508_v15 }
 0x689   :  { %v1334_v40 = vpop.f32.mrb[16].mxu1 }
 0x68a   :  { %v5399_v41 = vpop.f32.mrb[17].mxu1  ;;  %v1420_v42 = vsel %vm577_vm3, %v1334_v40, -inf }
 0x68b   :  { %1421 = vmax.xlane.f32.xlu0 %v1420_v42 }
 0x691   :  { %v1416_v43 = vpop.f32.mrb[18].mxu1 }
 0x692   :  { %v5406_v44 = vpop.f32.mrb[19].mxu1  ;;  %v1423_v45 = vsel %vm577_vm3, %v1416_v43, -inf }
 0x693   :  { %1424 = vmax.xlane.f32.xlu1 %v1423_v45 }
 0x6a4   :  { %6231 = vrot.lane.b32.xlu1 %v6678_v51, %s6510_s28 }
 0x6a8   :  { %6236 = vrot.lane.b32.xlu1 %v6650_v28, %s6511_s29 }
 0x6ac   :  { %6241 = vrot.lane.b32.xlu1 %v6655_v35, %s6511_s29 }
 0x6b0   :  { %1765 = vrot.lane.b32.xlu1 %v6666_v38, %s6511_s29 }
 0x718   :  { %v1422_v23 = vpop.xlane.xlu0 %1421 }
 0x719   :  { %v1426_v27 = vsub.f32 %v1334_v40, %v1422_v23 }
 0x71b   :  { %v1428_v46 = vmul.f32 1.442695, %v1426_v27 }
 0x71d   :  { %6271 = vpow2.f32 %v1428_v46 }
 0x720   :  { %v1425_v47 = vpop.xlane.xlu1 %1424 }
 0x721   :  { %v1427_v48 = vsub.f32 %v1416_v43, %v1425_v47  ;;  %v414_v47 = vld [vmem:[#allocation7 + $0x1e0] sm:$0xff] }
 0x723   :  { %v1430_v50 = vmul.f32 1.442695, %v1427_v48  ;;  %v415_v48 = vld [vmem:[#allocation7 + $0x1e8] sm:$0xff] }
 0x724   :  { %v6232_v52 = vpop.permute.xlu1 %6231 }
 0x725   :  { %6273 = vpow2.f32 %v1430_v50  ;;  %v6234_v53 = vunpack.i.h.bf16 %v6232_v52  ;;  %v6233_v54 = vunpack.i.l.bf16 %v6232_v52  ;;  %v5964_v50 = vpack.c.bf16 %v415_v48, %v414_v47 }
 0x727   :  { %v6272_v55 = vpop.eup %6271  ;;  %v5940_v56 = vpack.c.bf16 %v6234_v53, %v6233_v54 }
 0x728   :  { %v1432_v28 = vsel %vm577_vm3, %v6272_v55, 0.0  ;;  %v6237_v1 = vpop.permute.xlu1 %6236 }
 0x729   :  { %1433 = vadd.xlane.f32.xlu0 %v1432_v28  ;;  %5941 = vmatpush3.bf16.msra.mxu1 %v5940_v56  ;;  %v6239_v7 = vunpack.i.h.bf16 %v6237_v1  ;;  %v6238_v8 = vunpack.i.l.bf16 %v6237_v1 }
 0x72a   :  { %5950 = vmatprep.subr.bf16.mxu1 %v6506_v14 }
 0x72b   :  { %v5951_v12 = vpack.c.bf16 %v6239_v7, %v6238_v8 }
 0x72c   :  { %v6242_v16 = vpop.permute.xlu1 %6241 }
 0x72d   :  { %v6244_v17 = vunpack.i.h.bf16 %v6242_v16  ;;  %v6243_v18 = vunpack.i.l.bf16 %v6242_v16  ;;  %v2158_v16 = vld [vmem:[#allocation7 + $0x220] sm:$0xff] }
 0x72f   :  { %v6274_v35 = vpop.eup %6273  ;;  %v5955_v21 = vpack.c.bf16 %v6244_v17, %v6243_v18  ;;  %v2159_v17 = vld [vmem:[#allocation7 + $0x228] sm:$0xff] }
 0x730   :  { %v1435_v38 = vsel %vm577_vm3, %v6274_v35, 0.0  ;;  %v1766_v30 = vpop.permute.xlu1 %1765  ;;  %v5980_v18 = vpack.c.bf16 %v2159_v17, %v2158_v16  ;;  %v2397_v16 = vld [vmem:[#allocation8 + $0x98] sm:$0xff] }
 0x731   :  { %1436 = vadd.xlane.f32.xlu0 %v1435_v38 }
 0x747   :  { %6226 = vrot.lane.b32.xlu0 %v6676_v49, %s6510_s28 }
 0x74b   :  { %1683 = vrot.lane.b32.xlu0 %v6657_v36, %s6511_s29  ;;  %v5946_v36 = vpack.c.bf16 %v413_v6, %v412_v5 }
 0x7b6   :  { %v1434_v58 = vpop.xlane.xlu0 %1433 }
 0x7b7   :  { %6275 = vrcp.f32 %v1434_v58 }
 0x7be   :  { %v1437_v59 = vpop.xlane.xlu0 %1436 }
 0x7bf   :  { %6277 = vrcp.f32 %v1437_v59 }
 0x7c1   :  { %v6276_v3 = vpop.eup %6275 }
 0x7c2   :  { %v6227_v62 = vpop.permute.xlu0 %6226  ;;  %v1440_v9 = vmul.f32 %v6276_v3, %v6272_v55 }
 0x7c3   :  { %v6229_v63 = vunpack.i.h.bf16 %v6227_v62  ;;  %v6228_v0 = vunpack.i.l.bf16 %v6227_v62  ;;  %v416_v62 = vld [vmem:[#allocation7 + $0x1f0] sm:$0xff] }
 0x7c5   :  { %v5937_v4 = vpack.c.bf16 %v6229_v63, %v6228_v0  ;;  %v417_v63 = vld [vmem:[#allocation7 + $0x1f8] sm:$0xff] }
 0x7c6   :  { %v1684_v13 = vpop.permute.xlu0 %1683  ;;  %v5968_v0 = vpack.c.bf16 %v417_v63, %v416_v62 }
 0x7c7   :  { %5938 = vmatpush3.bf16.msra.mxu0 %v5937_v4 }
 0x7c8   :  { %5943 = vmatprep.subr.bf16.mxu0 %v5942_v2 }
 0x7c9   :  { %v6278_v10 = vpop.eup %6277 }
 0x7ca   :  { %5412 = vmatmul.mubr.msk.f32.vlgmr.msra.gmra.mrb[12].mxu0 %vm577_vm3, %v1440_v9  ;;  %v1441_v11 = vmul.f32 %v6278_v10, %v6274_v35  ;;  %v2155_v10 = vld [vmem:[#allocation7 + $0x208] sm:$0xff] }
 0x7cb   :  { %5945 = vmatpush3.bf16.msra.mxu0 %v5942_v2 }
 0x7cc   :  { %5419 = vmatmul.mubr.msk.f32.vlgmr.msra.gmra.mrb[20].mxu1 %vm577_vm3, %v1441_v11  ;;  %5947 = vmatprep.subr.bf16.mxu0 %v5946_v36  ;;  %v2156_v11 = vld [vmem:[#allocation7 + $0x210] sm:$0xff] }
 0x7cd   :  { %5953 = vmatpush3.bf16.xpose.msk.msra.mxu1 %vm6646_vm2, %v5951_v12  ;;  %5436 = vmatprep.mubr.msk.f32.mxu1 %vm6507_vm0, %v6508_v15 }
 0x7ce   :  { %5958 = vmatprep.subr.bf16.mxu1 %v6506_v14 }
 0x7cf   :  { %5949 = vmatpush3.bf16.msra.mxu0 %v5946_v36  ;;  %v2154_v36 = vld [vmem:[#allocation7 + $0x200] sm:$0xff] }
 0x7d0   :  { %5954 = vmatprep.subr.bf16.mxu0 %v6506_v14  ;;  %v5972_v12 = vpack.c.bf16 %v2155_v10, %v2154_v36  ;;  %v2394_v36 = vld [vmem:[#allocation8 + $0x80] sm:$0xff]  ;;  %v2395_v10 = vld [vmem:[#allocation8 + $0x88] sm:$0xff] }
 0x7d4   :  { %5437 = vmatmul.mubr.msk.f32.vlgmr.msra.gmra.mrb[22].mxu1 %vm418_vm1, %v1684_v13  ;;  %v2157_v13 = vld [vmem:[#allocation7 + $0x218] sm:$0xff] }
 0x7d5   :  { %5450 = vmatprep.mubr.msk.f32.mxu1 %vm6507_vm0, %v6508_v15 }
 0x89d   :  { %v1517_v19 = vpop.f32.mrb[12].mxu0 }
 0x89e   :  { %v5413_v20 = vpop.f32.mrb[13].mxu0  ;;  %5429 = vmatprep.mubr.msk.f32.mxu0 %vm418_vm1, %v1517_v19 }
 0x89f   :  { %v1596_v22 = vpop.f32.mrb[20].mxu1 }
 0x8a0   :  { %v5420_v25 = vpop.f32.mrb[21].mxu1  ;;  %5430 = vmatmul.mubr.msk.f32.vlgmr.msra.gmra.mrb[10].mxu0 %vm418_vm1, %v1596_v22 }
 0x8a1   :  { %5957 = vmatpush3.bf16.xpose.msk.msra.mxu0 %vm6646_vm2, %v5955_v21  ;;  %5443 = vmatprep.mubr.msk.f32.mxu0 %vm6507_vm0, %v6508_v15 }
 0x8a2   :  { %5965 = vmatprep.subr.bf16.mxu0 %v5964_v50 }
 0x8a7   :  { %v1761_v31 = vpop.f32.mrb[22].mxu1 }
 0x8a8   :  { %v5438_v32 = vpop.f32.mrb[23].mxu1  ;;  %5444 = vmatmul.mubr.msk.f32.vlgmr.msra.gmra.mrb[14].mxu0 %vm418_vm1, %v1766_v30  ;;  %v1847_v33 = vsel %vm577_vm3, %v1761_v31, -inf }
 0x8a9   :  { %1848 = vmax.xlane.f32.xlu0 %v1847_v33  ;;  %5967 = vmatpush3.bf16.msra.mxu0 %v5964_v50  ;;  %v2161_v32 = vld [vmem:[#allocation7 + $0x238] sm:$0xff] }
 0x8aa   :  { %5969 = vmatprep.subr.bf16.mxu0 %v5968_v0 }
 0x8ad   :  { %5971 = vmatpush3.bf16.msra.mxu0 %v5968_v0 }
 0x936   :  { %v1849_v34 = vpop.xlane.xlu0 %1848 }
 0x937   :  { %v1853_v37 = vsub.f32 %v1761_v31, %v1849_v34  ;;  %v2160_v31 = vld [vmem:[#allocation7 + $0x230] sm:$0xff]  ;;  %v2162_v34 = vld [vmem:[#allocation7 + $0x240] sm:$0xff] }
 0x938   :  { %v5984_v33 = vpack.c.bf16 %v2161_v32, %v2160_v31  ;;  %v2296_v32 = vld [vmem:[#allocation8 + $0x60] sm:$0xff] }
 0x939   :  { %v1855_v39 = vmul.f32 1.442695, %v1853_v37  ;;  %v2163_v37 = vld [vmem:[#allocation7 + $0x248] sm:$0xff] }
 0x93b   :  { %6279 = vpow2.f32 %v1855_v39  ;;  %v5988_v39 = vpack.c.bf16 %v2163_v37, %v2162_v34  ;;  %v2298_v37 = vld [vmem:[#allocation8 + $0x70] sm:$0xff] }
 0x945   :  { %v6280_v40 = vpop.eup %6279 }
 0x946   :  { %v1859_v41 = vsel %vm577_vm3, %v6280_v40, 0.0 }
 0x947   :  { %1860 = vadd.xlane.f32.xlu0 %v1859_v41  ;;  %v2165_v41 = vld [vmem:[#allocation7 + $0x258] sm:$0xff] }
 0x97b   :  { %v1843_v24 = vpop.f32.mrb[14].mxu0 }
 0x97c   :  { %v5445_v42 = vpop.f32.mrb[15].mxu0  ;;  %v1850_v43 = vsel %vm577_vm3, %v1843_v24, -inf }
 0x97d   :  { %1851 = vmax.xlane.f32.xlu1 %v1850_v43  ;;  %v2166_v42 = vld [vmem:[#allocation7 + $0x260] sm:$0xff]  ;;  %v2167_v43 = vld [vmem:[#allocation7 + $0x268] sm:$0xff] }
 0x98e   :  { %6251 = vrot.lane.b32.xlu1 %v6678_v51, %s6511_s29 }
 0x9d4   :  { %v1861_v52 = vpop.xlane.xlu0 %1860 }
 0xa0a   :  { %v1852_v44 = vpop.xlane.xlu1 %1851 }
 0xa0b   :  { %v1854_v45 = vsub.f32 %v1843_v24, %v1852_v44  ;;  %v5996_v44 = vpack.c.bf16 %v2167_v43, %v2166_v42  ;;  %v2492_v43 = vld [vmem:[#allocation8 + $0x110] sm:$0xff] }
 0xa0d   :  { %v1857_v23 = vmul.f32 1.442695, %v1854_v45  ;;  %v2168_v45 = vld [vmem:[#allocation7 + $0x270] sm:$0xff] }
 0xa0e   :  { %v6252_v51 = vpop.permute.xlu1 %6251 }
 0xa0f   :  { %6281 = vpow2.f32 %v1857_v23  ;;  %v6254_v35 = vunpack.i.h.bf16 %v6252_v51  ;;  %v6253_v38 = vunpack.i.l.bf16 %v6252_v51  ;;  %v2169_v23 = vld [vmem:[#allocation7 + $0x278] sm:$0xff] }
 0xa10   :  { %6283 = vrcp.f32 %v1861_v52 }
 0xa11   :  { %v5962_v60 = vpack.c.bf16 %v6254_v35, %v6253_v38  ;;  %v6821_v35 = vld [vmem:[%s7148_s3 + $0x6] ss:$0 sm:$0xff] }
 0xa19   :  { %v6282_v27 = vpop.eup %6281 }
 0xa1a   :  { %v1862_v46 = vsel %vm577_vm3, %v6282_v27, 0.0  ;;  %v6284_v28 = vpop.eup %6283 }
 0xa1b   :  { %1863 = vadd.xlane.f32.xlu0 %v1862_v46  ;;  %v1867_v59 = vmul.f32 %v6284_v28, %v6280_v40  ;;  %v2164_v40 = vld [vmem:[#allocation7 + $0x250] sm:$0xff] }
 0xa1c   :  { %v5992_v24 = vpack.c.bf16 %v2165_v41, %v2164_v40  ;;  %v2490_v41 = vld [vmem:[#allocation8 + $0x100] sm:$0xff] }
 0xa31   :  { %6246 = vrot.lane.b32.xlu0 %v6676_v49, %s6511_s29 }
 0xaa8   :  { %v1864_v53 = vpop.xlane.xlu0 %1863 }
 0xaa9   :  { %6285 = vrcp.f32 %v1864_v53 }
 0xaac   :  { %v6247_v54 = vpop.permute.xlu0 %6246 }
 0xaad   :  { %v6249_v55 = vunpack.i.h.bf16 %v6247_v54  ;;  %v6248_v56 = vunpack.i.l.bf16 %v6247_v54  ;;  %v6816_v54 = vld [vmem:[%s7148_s3 + $0x5] ss:$0 sm:$0xff] }
 0xaaf   :  { %v5959_v58 = vpack.c.bf16 %v6249_v55, %v6248_v56 }
 0xab1   :  { %5960 = vmatpush3.bf16.msra.mxu1 %v5959_v58 }
 0xab2   :  { %5961 = vmatprep.subr.bf16.mxu1 %v6506_v14 }
 0xab3   :  { %v6286_v49 = vpop.eup %6285 }
 0xab4   :  { %5451 = vmatmul.mubr.msk.f32.vlgmr.msra.gmra.mrb[24].mxu1 %vm577_vm3, %v1867_v59  ;;  %v1868_v61 = vmul.f32 %v6286_v49, %v6282_v27  ;;  %v6000_v27 = vpack.c.bf16 %v2169_v23, %v2168_v45  ;;  %v2494_v23 = vld [vmem:[#allocation8 + $0x120] sm:$0xff] }
 0xab5   :  { %5963 = vmatpush3.bf16.msra.mxu1 %v5962_v60  ;;  %5457 = vmatprep.mubr.msk.f32.mxu1 %vm6507_vm0, %v6508_v15  ;;  %v4833_v15 = vld [vmem:[%s7148_s3 + $0x3] ss:$0 sm:$0xff]  ;;  %v4836_v60 = vld [vmem:[%s7148_s3 + $0x4] ss:$0 sm:$0xff] }
 0xab6   :  { %5973 = vmatprep.subr.bf16.mxu1 %v5972_v12 }
 0xab8   :  { %5458 = vmatmul.mubr.msk.f32.vlgmr.msra.gmra.mrb[26].mxu1 %vm577_vm3, %v1868_v61 }
 0xab9   :  { %5975 = vmatpush3.bf16.msra.mxu1 %v5972_v12  ;;  %v2291_v12 = vld [vmem:[#allocation8 + $0x38] sm:$0xff] }
 0xb87   :  { %v1944_v1 = vpop.f32.mrb[24].mxu1 }
 0xb88   :  { %v5452_v2 = vpop.f32.mrb[25].mxu1  ;;  %5468 = vmatprep.mubr.msk.f32.mxu0 %vm418_vm1, %v1944_v1 }
 0xb8b   :  { %v2023_v14 = vpop.f32.mrb[26].mxu1 }
 0xb8c   :  { %v5459_v3 = vpop.f32.mrb[27].mxu1  ;;  %5469 = vmatmul.mubr.msk.f32.vlgmr.msra.gmra.mrb[10].mxu0 %vm418_vm1, %v2023_v14  ;;  %v2284_v14 = vld [vmem:[#allocation8] sm:$0xff] }
 0xb8d   :  { %5538 = vmatprep.mubr.f32.mxu0 %v6622_v26  ;;  %v5976_v26 = vpack.c.bf16 %v2157_v13, %v2156_v11  ;;  %v2285_v3 = vld [vmem:[#allocation8 + $0x8] sm:$0xff]  ;;  %v2290_v11 = vld [vmem:[#allocation8 + $0x30] sm:$0xff]  ;;  %v6036_v13 = vpack.c.bf16 %v2395_v10, %v2394_v36 }
 0xb8e   :  { %v2407_v10 = vld [vmem:[#allocation8 + $0xe8] sm:$0xff] }
 0xb8f   :  { %5977 = vmatprep.subr.bf16.mxu1 %v5976_v26 }
 0xb90   :  { %5979 = vmatpush3.bf16.msra.mxu1 %v5976_v26  ;;  %v2396_v26 = vld [vmem:[#allocation8 + $0x90] sm:$0xff] }
 0xb91   :  { %5981 = vmatprep.subr.bf16.mxu1 %v5980_v18  ;;  %v6040_v17 = vpack.c.bf16 %v2397_v16, %v2396_v26  ;;  %v2408_v16 = vld [vmem:[#allocation8 + $0xf0] sm:$0xff] }
 0xb94   :  { %5983 = vmatpush3.bf16.msra.mxu1 %v5980_v18  ;;  %v2398_v18 = vld [vmem:[#allocation8 + $0xa0] sm:$0xff] }
 0xb95   :  { %5985 = vmatprep.subr.bf16.mxu1 %v5984_v33 }
 0xb98   :  { %5987 = vmatpush3.bf16.msra.mxu1 %v5984_v33  ;;  %v2297_v33 = vld [vmem:[#allocation8 + $0x68] sm:$0xff] }
 0xb99   :  { %5989 = vmatprep.subr.bf16.mxu1 %v5988_v39  ;;  %v6028_v34 = vpack.c.bf16 %v2297_v33, %v2296_v32 }
 0xb9c   :  { %5991 = vmatpush3.bf16.msra.mxu1 %v5988_v39  ;;  %v2299_v39 = vld [vmem:[#allocation8 + $0x78] sm:$0xff] }
 0xb9d   :  { %5993 = vmatprep.subr.bf16.mxu1 %v5992_v24  ;;  %v6032_v40 = vpack.c.bf16 %v2299_v39, %v2298_v37 }
 0xba0   :  { %5995 = vmatpush3.bf16.msra.mxu1 %v5992_v24  ;;  %v2491_v24 = vld [vmem:[#allocation8 + $0x108] sm:$0xff] }
 0xba1   :  { %5997 = vmatprep.subr.bf16.mxu1 %v5996_v44  ;;  %v6068_v42 = vpack.c.bf16 %v2491_v24, %v2490_v41 }
 0xba4   :  { %5999 = vmatpush3.bf16.msra.mxu1 %v5996_v44  ;;  %v2493_v44 = vld [vmem:[#allocation8 + $0x118] sm:$0xff] }
 0xba5   :  { %6001 = vmatprep.subr.bf16.mxu1 %v6000_v27  ;;  %v6072_v45 = vpack.c.bf16 %v2493_v44, %v2492_v43 }
 0xba8   :  { %6003 = vmatpush3.bf16.msra.mxu1 %v6000_v27  ;;  %v2495_v27 = vld [vmem:[#allocation8 + $0x128] sm:$0xff] }
 0xba9   :  { %6037 = vmatprep.subr.bf16.mxu1 %v6036_v13 }
 0xc5f   :  { %v5470_v4 = vpop.f32.mrb[10].mxu0 }
 0xc60   :  { %v2115_v5 = vadd.f32 %v5470_v4, %v4833_v15  ;;  %v2099_v6 = vpop.f32.mrb[11].mxu0  ;;  %v6004_v4 = vpack.c.bf16 %v2285_v3, %v2284_v14  ;;  %v2499_v3 = vld [vmem:[#allocation8 + $0x148] sm:$0xff] }
 0xc61   :  { %v2114_v7 = vadd.f32 %v4833_v15, %v2099_v6  ;;  %v2286_v15 = vld [vmem:[#allocation8 + $0x10] sm:$0xff] }
 0xc62   :  { %v2117_v8 = vadd.f32 %v2115_v5, %v6628_v57  ;;  %v2287_v5 = vld [vmem:[#allocation8 + $0x18] sm:$0xff]  ;;  %6005 = vmatprep.subr.bf16.mxu0 %v6004_v4 }
 0xc63   :  { %v2116_v9 = vadd.f32 %v2114_v7, %v6625_v29  ;;  %v6008_v6 = vpack.c.bf16 %v2287_v5, %v2286_v15  ;;  %v2288_v7 = vld [vmem:[#allocation8 + $0x20] sm:$0xff]  ;;  %6007 = vmatpush3.bf16.msra.mxu0 %v6004_v4  ;;  %v2404_v15 = vld [vmem:[#allocation8 + $0xd0] sm:$0xff]  ;;  %v2405_v4 = vld [vmem:[#allocation8 + $0xd8] sm:$0xff] }
 0xc64   :  { %2120 = vadd.xlane.f32.xlu0 %v2117_v8 }
 0xc65   :  { %2118 = vadd.xlane.f32.xlu1 %v2116_v9  ;;  %6009 = vmatprep.subr.bf16.mxu0 %v6008_v6 }
 0xc67   :  { %6011 = vmatpush3.bf16.msra.mxu0 %v6008_v6  ;;  %v6056_v6 = vpack.c.bf16 %v2405_v4, %v2404_v15 }
 0xcf1   :  { %v2121_v57 = vpop.xlane.xlu0 %2120 }
 0xcf2   :  { %v2124_v19 = vmul.f32 0.0078125, %v2121_v57  ;;  %v2119_v29 = vpop.xlane.xlu1 %2118  ;;  %v2399_v57 = vld [vmem:[#allocation8 + $0xa8] sm:$0xff] }
 0xcf3   :  { %v2123_v20 = vmul.f32 0.0078125, %v2119_v29  ;;  %v2292_v29 = vld [vmem:[#allocation8 + $0x40] sm:$0xff] }
 0xcf4   :  { %v2126_v21 = vsub.f32 %v2117_v8, %v2124_v19  ;;  %v2289_v8 = vld [vmem:[#allocation8 + $0x28] sm:$0xff]  ;;  %v6016_v19 = vpack.c.bf16 %v2291_v12, %v2290_v11  ;;  %v2502_v11 = vld [vmem:[#allocation8 + $0x160] sm:$0xff] }
 0xcf5   :  { %v2125_v22 = vsub.f32 %v2116_v9, %v2123_v20  ;;  %v6012_v9 = vpack.c.bf16 %v2289_v8, %v2288_v7  ;;  %v2293_v20 = vld [vmem:[#allocation8 + $0x48] sm:$0xff]  ;;  %v2500_v7 = vld [vmem:[#allocation8 + $0x150] sm:$0xff]  ;;  %v2501_v8 = vld [vmem:[#allocation8 + $0x158] sm:$0xff] }
 0xcf6   :  { %v2128_v25 = vmul.f32 %v2126_v21, %v2126_v21  ;;  %v6088_v36 = vpack.c.bf16 %v2501_v8, %v2500_v7  ;;  %v2503_v12 = vld [vmem:[#allocation8 + $0x168] sm:$0xff] }
 0xcf7   :  { %v2127_v30 = vmul.f32 %v2125_v22, %v2125_v22  ;;  %6013 = vmatprep.subr.bf16.mxu0 %v6012_v9  ;;  %v6092_v26 = vpack.c.bf16 %v2503_v12, %v2502_v11 }
 0xcf8   :  { %2131 = vadd.xlane.f32.xlu1 %v2128_v25  ;;  %6015 = vmatpush3.bf16.msra.mxu0 %v6012_v9  ;;  %v2294_v25 = vld [vmem:[#allocation8 + $0x50] sm:$0xff]  ;;  %v2406_v9 = vld [vmem:[#allocation8 + $0xe0] sm:$0xff] }
 0xcf9   :  { %2129 = vadd.xlane.f32.xlu0 %v2127_v30  ;;  %6017 = vmatprep.subr.bf16.mxu0 %v6016_v19  ;;  %v2295_v30 = vld [vmem:[#allocation8 + $0x58] sm:$0xff] }
 0xcfa   :  { %v6024_v31 = vpack.c.bf16 %v2295_v30, %v2294_v25 }
 0xcfc   :  { %6019 = vmatpush3.bf16.msra.mxu0 %v6016_v19 }
 0xd85   :  { %v2132_v46 = vpop.xlane.xlu1 %2131 }
 0xd86   :  { %v2134_v47 = vmul.f32 0.0078125, %v2132_v46  ;;  %v2130_v48 = vpop.xlane.xlu0 %2129  ;;  %v6375_v46 = vld [vmem:[#allocation2 + $0x8] sm:$0xff] }
 0xd87   :  { %v2133_v50 = vmul.f32 0.0078125, %v2130_v48  ;;  %v6076_v48 = vpack.c.bf16 %v2495_v27, %v2494_v23 }
 0xd88   :  { %v2136_v52 = vadd.f32 1e-05, %v2134_v47  ;;  %v6376_v47 = vld [vmem:[#allocation2 + $0x10] sm:$0xff] }
 0xd89   :  { %v2135_v53 = vadd.f32 1e-05, %v2133_v50  ;;  %v6377_v50 = vld [vmem:[#allocation2 + $0x18] sm:$0xff] }
 0xd8a   :  { %6287 = vrsqrt.f32 %v2136_v52 }
 0xd8b   :  { %6289 = vrsqrt.f32 %v2135_v53 }
 0xd94   :  { %v6288_v51 = vpop.eup %6287 }
 0xd95   :  { %v6290_v55 = vpop.eup %6289  ;;  %v2140_v56 = vmul.f32 %v6288_v51, %v2126_v21  ;;  %v6044_v21 = vpack.c.bf16 %v2399_v57, %v2398_v18  ;;  %v2504_v18 = vld [vmem:[#allocation8 + $0x170] sm:$0xff]  ;;  %v2505_v57 = vld [vmem:[#allocation8 + $0x178] sm:$0xff] }
 0xd96   :  { %v2139_v28 = vmul.f32 %v6290_v55, %v2125_v22  ;;  %v6020_v22 = vpack.c.bf16 %v2293_v20, %v2292_v29  ;;  %v6096_v29 = vpack.c.bf16 %v2505_v57, %v2504_v18  ;;  %v4837_v20 = vld [vmem:[%s7150_s5] ss:$0 sm:$0xff] }
 0xd97   :  { %v2146_v38 = vmul.f32 %v6816_v54, %v2140_v56 }
 0xd98   :  { %v2145_v58 = vmul.f32 %v6816_v54, %v2139_v28  ;;  %6021 = vmatprep.subr.bf16.mxu0 %v6020_v22 }
 0xd99   :  { %v2152_v49 = vadd.f32 %v6821_v35, %v2146_v38  ;;  %6023 = vmatpush3.bf16.msra.mxu0 %v6020_v22 }
 0xd9a   :  { %v2151_v59 = vadd.f32 %v6821_v35, %v2145_v58  ;;  %6025 = vmatprep.subr.bf16.mxu0 %v6024_v31 }
 0xd9c   :  { %5503 = vmatprep.mubr.f32.mxu1 %v2151_v59 }
 0xd9d   :  { %5504 = vmatmul.mubr.f32.vlgmr.msra.gmra.mrb[28].mxu1 %v2152_v49  ;;  %6027 = vmatpush3.bf16.msra.mxu0 %v6024_v31 }
 0xd9e   :  { %6039 = vmatpush3.bf16.msra.mxu1 %v6036_v13  ;;  %6029 = vmatprep.subr.bf16.mxu0 %v6028_v34  ;;  %v6060_v13 = vpack.c.bf16 %v2407_v10, %v2406_v9 }
 0xd9f   :  { %6041 = vmatprep.subr.bf16.mxu1 %v6040_v17 }
 0xda1   :  { %6031 = vmatpush3.bf16.msra.mxu0 %v6028_v34 }
 0xda2   :  { %6043 = vmatpush3.bf16.msra.mxu1 %v6040_v17  ;;  %6033 = vmatprep.subr.bf16.mxu0 %v6032_v40  ;;  %v2409_v17 = vld [vmem:[#allocation8 + $0xf8] sm:$0xff] }
 0xda3   :  { %6045 = vmatprep.subr.bf16.mxu1 %v6044_v21  ;;  %v6064_v19 = vpack.c.bf16 %v2409_v17, %v2408_v16 }
 0xda5   :  { %6035 = vmatpush3.bf16.msra.mxu0 %v6032_v40 }
 0xda6   :  { %6047 = vmatpush3.bf16.msra.mxu1 %v6044_v21  ;;  %6069 = vmatprep.subr.bf16.mxu0 %v6068_v42 }
 0xda8   :  { %5539 = vmatmul.mubr.f32.vlgmr.msra.gmra.mrb[16].mxu0 %v6375_v46 }
 0xda9   :  { %6071 = vmatpush3.bf16.msra.mxu0 %v6068_v42  ;;  %5541 = vmatprep.mubr.f32.mxu0 %v6376_v47 }
 0xdaa   :  { %6073 = vmatprep.subr.bf16.mxu0 %v6072_v45 }
 0xdac   :  { %5542 = vmatmul.mubr.f32.gmra.mrb[18].mxu0 %v6377_v50 }
 0xdad   :  { %6075 = vmatpush3.bf16.msra.mxu0 %v6072_v45 }
 0xdae   :  { %6077 = vmatprep.subr.bf16.mxu0 %v6076_v48 }
 0xdb1   :  { %6079 = vmatpush3.bf16.msra.mxu0 %v6076_v48 }
 0xe70   :  { %v5505_v61 = vpop.f32.mrb[28].mxu1 }
 0xe71   :  { %v2246_v62 = vadd.f32 %v5505_v61, %v4836_v60  ;;  %v2240_v63 = vpop.f32.mrb[29].mxu1 }
 0xe72   :  { %v2241_v0 = vadd.f32 %v4836_v60, %v2240_v63  ;;  %v2496_v60 = vld [vmem:[#allocation8 + $0x130] sm:$0xff] }
 0xe73   :  { %v6830_v1 = vadd.f32 %v2246_v62, %v2152_v49  ;;  %v2401_v49 = vld [vmem:[#allocation8 + $0xb8] sm:$0xff] }
 0xe74   :  { %v6832_v2 = vadd.f32 %v2241_v0, %v2151_v59  ;;  %v2400_v59 = vld [vmem:[#allocation8 + $0xb0] sm:$0xff]  ;;  %v2497_v62 = vld [vmem:[#allocation8 + $0x138] sm:$0xff]  ;;  %v2402_v0 = vld [vmem:[#allocation8 + $0xc0] sm:$0xff] }
 0xe75   :  { %2253 = vadd.xlane.f32.xlu1 %v6830_v1  ;;  %v6048_v61 = vpack.c.bf16 %v2401_v49, %v2400_v59  ;;  %v6080_v63 = vpack.c.bf16 %v2497_v62, %v2496_v60 }
 0xe76   :  { %2251 = vadd.xlane.f32.xlu0 %v6832_v2 }
 0xe77   :  { %6049 = vmatprep.subr.bf16.mxu1 %v6048_v61  ;;  %6081 = vmatprep.subr.bf16.mxu0 %v6080_v63 }
 0xe78   :  { %6051 = vmatpush3.bf16.msra.mxu1 %v6048_v61  ;;  %6083 = vmatpush3.bf16.msra.mxu0 %v6080_v63 }
 0xe7b   :  { %v5540_v21 = vpop.f32.mrb[16].mxu0 }
 0xe7c   :  { %v2376_v22 = vadd.f32 %v5540_v21, %v4837_v20  ;;  %v2370_v25 = vpop.f32.mrb[17].mxu0 }
 0xe7d   :  { %v2371_v23 = vadd.f32 %v4837_v20, %v2370_v25 }
 0xe7e   :  { %v6879_v59 = vmul.f32 0.17677669, %v2376_v22 }
 0xe7f   :  { %v5543_v30 = vpop.f32.mrb[18].mxu0  ;;  %v6854_v48 = vmul.f32 0.17677669, %v2371_v23 }
 0xe80   :  { %v2386_v31 = vadd.f32 %v5543_v30, %v4837_v20  ;;  %v2380_v32 = vpop.f32.mrb[19].mxu0 }
 0xe81   :  { %v2381_v33 = vadd.f32 %v4837_v20, %v2380_v32 }
 0xe82   :  { %v6891_v60 = vmul.f32 0.17677669, %v2386_v31 }
 0xf02   :  { %v2254_v52 = vpop.xlane.xlu1 %2253 }
 0xf03   :  { %v2256_v53 = vmul.f32 0.0078125, %v2254_v52  ;;  %v2252_v51 = vpop.xlane.xlu0 %2251  ;;  %v4838_v52 = vld [vmem:[%s7150_s5 + $0x1] ss:$0 sm:$0xff] }
 0xf04   :  { %v2255_v55 = vmul.f32 0.0078125, %v2252_v51 }
 0xf05   :  { %v6837_v56 = vsub.f32 %v6830_v1, %v2256_v53  ;;  %v2403_v1 = vld [vmem:[#allocation8 + $0xc8] sm:$0xff] }
 0xf06   :  { %v6840_v28 = vsub.f32 %v6832_v2, %v2255_v55  ;;  %v2498_v2 = vld [vmem:[#allocation8 + $0x140] sm:$0xff]  ;;  %v6052_v14 = vpack.c.bf16 %v2403_v1, %v2402_v0 }
 0xf07   :  { %v2260_v38 = vmul.f32 %v6837_v56, %v6837_v56  ;;  %v6084_v5 = vpack.c.bf16 %v2499_v3, %v2498_v2 }
 0xf08   :  { %v2259_v58 = vmul.f32 %v6840_v28, %v6840_v28  ;;  %6053 = vmatprep.subr.bf16.mxu1 %v6052_v14 }
 0xf09   :  { %2263 = vadd.xlane.f32.xlu1 %v2260_v38  ;;  %6085 = vmatprep.subr.bf16.mxu0 %v6084_v5 }
 0xf0a   :  { %2261 = vadd.xlane.f32.xlu0 %v2259_v58  ;;  %6055 = vmatpush3.bf16.msra.mxu1 %v6052_v14  ;;  %v6874_v58 = vmul.f32 0.17677669, %v2381_v33 }
 0xf0b   :  { %6087 = vmatpush3.bf16.msra.mxu0 %v6084_v5  ;;  %6057 = vmatprep.subr.bf16.mxu1 %v6056_v6 }
 0xf0c   :  { %6089 = vmatprep.subr.bf16.mxu0 %v6088_v36 }
 0xf0e   :  { %6059 = vmatpush3.bf16.msra.mxu1 %v6056_v6 }
 0xf0f   :  { %6091 = vmatpush3.bf16.msra.mxu0 %v6088_v36  ;;  %6061 = vmatprep.subr.bf16.mxu1 %v6060_v13 }
 0xf10   :  { %6093 = vmatprep.subr.bf16.mxu0 %v6092_v26 }
 0xf12   :  { %6063 = vmatpush3.bf16.msra.mxu1 %v6060_v13 }
 0xf13   :  { %6095 = vmatpush3.bf16.msra.mxu0 %v6092_v26  ;;  %6065 = vmatprep.subr.bf16.mxu1 %v6064_v19 }
 0xf14   :  { %6097 = vmatprep.subr.bf16.mxu0 %v6096_v29 }
 0xf16   :  { %6067 = vmatpush3.bf16.msra.mxu1 %v6064_v19 }
 0xf17   :  { %6099 = vmatpush3.bf16.msra.mxu0 %v6096_v29 }
 0xf96   :  { %v2264_v34 = vpop.xlane.xlu1 %2263 }
 0xf97   :  { %v2266_v37 = vmul.f32 0.0078125, %v2264_v34  ;;  %v2262_v39 = vpop.xlane.xlu0 %2261 }
 0xf98   :  { %v2265_v40 = vmul.f32 0.0078125, %v2262_v39 }
 0xf99   :  { %v2268_v41 = vadd.f32 1e-05, %v2266_v37 }
 0xf9a   :  { %v2267_v24 = vadd.f32 1e-05, %v2265_v40 }
 0xf9b   :  { %6291 = vrsqrt.f32 %v2268_v41 }
 0xf9c   :  { %6293 = vrsqrt.f32 %v2267_v24 }
 0xfa5   :  { %v6292_v42 = vpop.eup %6291 }
 0xfa6   :  { %v6294_v43 = vpop.eup %6293  ;;  %v2272_v44 = vmul.f32 %v6292_v42, %v6837_v56 }
 0xfa7   :  { %v2271_v45 = vmul.f32 %v6294_v43, %v6840_v28 }
 0xfa8   :  { %v2274_v27 = vmul.f32 %v6816_v54, %v2272_v44 }
 0xfa9   :  { %v2273_v46 = vmul.f32 %v6816_v54, %v2271_v45  ;;  %v4839_v54 = vld [vmem:[%s7150_s5 + $0x2] ss:$0 sm:$0xff] }
 0xfaa   :  { %v2276_v50 = vadd.f32 %v6821_v35, %v2274_v27 }
 0xfab   :  { %v2275_v47 = vadd.f32 %v6821_v35, %v2273_v46 }
 0xfad   :  { %5576 = vmatprep.mubr.f32.mxu1 %v2275_v47  ;;  %5611 = vmatprep.mubr.f32.mxu0 %v2275_v47 }
 0xfae   :  { %5577 = vmatmul.mubr.f32.vlgmr.msra.gmra.mrb[30].mxu1 %v2276_v50  ;;  %5612 = vmatmul.mubr.f32.vlgmr.msra.gmra.mrb[20].mxu0 %v2276_v50 }
 0xfaf   :  { %5616 = vmatprep.mubr.msk.f32.mxu1 %vm418_vm1, %v6854_v48 }
0x1081   :  { %v5578_v53 = vpop.f32.mrb[30].mxu1  ;;  %v5613_v51 = vpop.f32.mrb[20].mxu0 }
0x1082   :  { %v2480_v55 = vpop.f32.mrb[31].mxu1  ;;  %v2576_v56 = vpop.f32.mrb[21].mxu0  ;;  %v6869_v38 = vadd.f32 %v5578_v53, %v4838_v52  ;;  %v6883_v49 = vadd.f32 %v5613_v51, %v4839_v54 }
0x1083   :  { %v6865_v35 = vadd.f32 %v4838_v52, %v2480_v55  ;;  %v6867_v28 = vadd.f32 %v4839_v54, %v2576_v56 }
0x1085   :  { %5614 = vmatprep.subr.msk.mxu1 %vm418_vm1, %v6865_v35  ;;  %5624 = vmatprep.subr.mxu0 %v6867_v28 }
0x1086   :  { %5615 = vmatpush3.xpose.msk.msra.mxu1 %vm418_vm1, %v6865_v35  ;;  %5625 = vmatpush3.msra.mxu0 %v6867_v28 }
0x1087   :  { %5619 = vmatprep.subr.msk.mxu1 %vm418_vm1, %v6869_v38 }
0x1089   :  { %5617 = vmatmul.mubr.msk.f32.vlgmr.msra.gmra.mrb[32].mxu1 %vm418_vm1, %v6879_v59 }
0x108a   :  { %5620 = vmatpush3.xpose.msk.msra.mxu1 %vm418_vm1, %v6869_v38  ;;  %5621 = vmatprep.mubr.msk.f32.mxu1 %vm418_vm1, %v6874_v58 }
0x108b   :  { %5629 = vmatprep.subr.mxu1 %v6883_v49 }
0x108d   :  { %5622 = vmatmul.mubr.msk.f32.vlgmr.msra.gmra.mrb[34].mxu1 %vm418_vm1, %v6891_v60 }
0x108e   :  { %5630 = vmatpush3.msra.mxu1 %v6883_v49 }
0x115c   :  { %v6897_v61 = vpop.f32.mrb[32].mxu1 }
0x115d   :  { %v6899_v62 = vpop.f32.mrb[33].mxu1  ;;  %v2774_v30 = vsel %vm2770_vm4, %v6897_v61, -inf }
0x115e   :  { %v2771_v44 = vsel %vm2770_vm4, %v6899_v62, -inf }
0x1160   :  { %v5623_v63 = vpop.f32.mrb[34].mxu1 }
0x1161   :  { %v2761_v0 = vpop.f32.mrb[35].mxu1  ;;  %v2780_v1 = vsel %vm2770_vm4, %v5623_v63, -inf }
0x1162   :  { %2781 = vmax.xlane.f32.xlu1 %v2780_v1  ;;  %v2777_v2 = vsel %vm2770_vm4, %v2761_v0, -inf }
0x1163   :  { %2778 = vmax.xlane.f32.xlu0 %v2777_v2 }
0x11ef   :  { %v2782_v14 = vpop.xlane.xlu1 %2781 }
0x11f0   :  { %v2786_v3 = vsub.f32 %v5623_v63, %v2782_v14  ;;  %v2779_v15 = vpop.xlane.xlu0 %2778 }
0x11f1   :  { %v2785_v4 = vsub.f32 %v2761_v0, %v2779_v15 }
0x11f2   :  { %v2793_v5 = vmul.f32 1.442695, %v2786_v3 }
0x11f3   :  { %v2791_v6 = vmul.f32 1.442695, %v2785_v4 }
0x11f4   :  { %6295 = vpow2.f32 %v2793_v5 }
0x11f5   :  { %6297 = vpow2.f32 %v2791_v6 }
0x11fe   :  { %v6296_v7 = vpop.eup %6295 }
0x11ff   :  { %v6298_v8 = vpop.eup %6297  ;;  %v2804_v9 = vsel %vm2770_vm4, %v6296_v7, 0.0 }
0x1200   :  { %2805 = vadd.xlane.f32.xlu1 %v2804_v9  ;;  %v2801_v36 = vsel %vm2770_vm4, %v6298_v8, 0.0 }
0x1201   :  { %2802 = vadd.xlane.f32.xlu0 %v2801_v36 }
0x1211   :  { %3064 = vrot.lane.b32.xlu1 %v6874_v58, %s6509_s27 }
0x1215   :  { %3066 = vrot.lane.b32.xlu1 %v6891_v60, %s6509_s27 }
0x1217   :  { %3068 = vrot.lane.b32.xlu0 %v6869_v38, %s6509_s27 }
0x128d   :  { %v2806_v10 = vpop.xlane.xlu1 %2805 }
0x128e   :  { %6299 = vrcp.f32 %v2806_v10  ;;  %v2803_v11 = vpop.xlane.xlu0 %2802 }
0x128f   :  { %6301 = vrcp.f32 %v2803_v11 }
0x1291   :  { %v3065_v16 = vpop.permute.xlu1 %3064 }
0x1292   :  { %v3069_v12 = vpop.permute.xlu0 %3068 }
0x1293   :  { %5639 = vmatprep.subr.msk.mxu1 %vm418_vm1, %v3069_v12 }
0x1295   :  { %v3067_v57 = vpop.permute.xlu1 %3066 }
0x1298   :  { %v6300_v13 = vpop.eup %6299 }
0x1299   :  { %v6302_v26 = vpop.eup %6301  ;;  %v2814_v18 = vmul.f32 %v6300_v13, %v6296_v7 }
0x129a   :  { %v2813_v17 = vmul.f32 %v6302_v26, %v6298_v8 }
0x129c   :  { %5631 = vmatprep.mubr.msk.f32.mxu1 %vm2770_vm4, %v2813_v17 }
0x129d   :  { %5632 = vmatmul.mubr.msk.f32.vlgmr.msra.gmra.mrb[36].mxu1 %vm2770_vm4, %v2814_v18 }
0x129e   :  { %5640 = vmatpush3.xpose.msk.msra.mxu1 %vm418_vm1, %v3069_v12  ;;  %5641 = vmatprep.mubr.msk.f32.mxu1 %vm418_vm1, %v3065_v16 }
0x12a1   :  { %5642 = vmatmul.mubr.msk.f32.vlgmr.msra.gmra.mrb[38].mxu1 %vm418_vm1, %v3067_v57 }
0x1370   :  { %v6917_v19 = vpop.f32.mrb[36].mxu1 }
0x1371   :  { %v6919_v29 = vpop.f32.mrb[37].mxu1 }
0x1374   :  { %v5643_v20 = vpop.f32.mrb[38].mxu1 }
0x1375   :  { %v3142_v21 = vpop.f32.mrb[39].mxu1  ;;  %v3160_v22 = vsel %vm2770_vm4, %v5643_v20, -inf }
0x1376   :  { %3161 = vmax.xlane.f32.xlu0 %v3160_v22  ;;  %v3157_v25 = vsel %vm2770_vm4, %v3142_v21, -inf }
0x1377   :  { %3158 = vmax.xlane.f32.xlu1 %v3157_v25 }
0x1388   :  { %3281 = vrot.lane.b32.xlu1 %v6883_v49, %s6509_s27 }
0x138c   :  { %3559 = vrot.lane.b32.xlu1 %v6854_v48, %s6510_s28 }
0x1390   :  { %3561 = vrot.lane.b32.xlu1 %v6879_v59, %s6510_s28 }
0x1394   :  { %3650 = vrot.lane.b32.xlu1 %v6869_v38, %s6510_s28 }
0x1398   :  { %3648 = vrot.lane.b32.xlu1 %v6891_v60, %s6510_s28 }
0x13bc   :  { %2775 = vmax.xlane.f32.xlu1 %v2774_v30 }
0x13cd   :  { %2977 = vrot.lane.b32.xlu1 %v6854_v48, %s6509_s27 }
0x13d1   :  { %2979 = vrot.lane.b32.xlu1 %v6879_v59, %s6509_s27 }
0x1403   :  { %v3162_v31 = vpop.xlane.xlu0 %3161 }
0x1404   :  { %v3166_v32 = vsub.f32 %v5643_v20, %v3162_v31  ;;  %v3159_v33 = vpop.xlane.xlu1 %3158 }
0x1405   :  { %v3165_v34 = vsub.f32 %v3142_v21, %v3159_v33 }
0x1406   :  { %v3173_v37 = vmul.f32 1.442695, %v3166_v32 }
0x1407   :  { %v3171_v39 = vmul.f32 1.442695, %v3165_v34 }
0x1408   :  { %6303 = vpow2.f32 %v3173_v37  ;;  %v3282_v40 = vpop.permute.xlu1 %3281 }
0x1409   :  { %5649 = vmatprep.subr.mxu1 %v3282_v40  ;;  %6305 = vpow2.f32 %v3171_v39 }
0x140a   :  { %5650 = vmatpush3.msra.mxu1 %v3282_v40 }
0x140c   :  { %v3560_v27 = vpop.permute.xlu1 %3559 }
0x1410   :  { %v3562_v50 = vpop.permute.xlu1 %3561 }
0x1412   :  { %v6304_v41 = vpop.eup %6303 }
0x1413   :  { %v3184_v24 = vsel %vm2770_vm4, %v6304_v41, 0.0  ;;  %v6306_v42 = vpop.eup %6305 }
0x1414   :  { %3185 = vadd.xlane.f32.xlu0 %v3184_v24  ;;  %v3181_v43 = vsel %vm2770_vm4, %v6306_v42, 0.0  ;;  %v3651_v51 = vpop.permute.xlu1 %3650 }
0x1418   :  { %3182 = vadd.xlane.f32.xlu0 %v3181_v43  ;;  %v3649_v56 = vpop.permute.xlu1 %3648 }
0x142e   :  { %3563 = vrot.lane.b32.xlu0 %v6865_v35, %s6510_s28 }
0x1432   :  { %3646 = vrot.lane.b32.xlu0 %v6874_v58, %s6510_s28 }
0x1449   :  { %v2776_v63 = vpop.xlane.xlu1 %2775 }
0x144a   :  { %v2784_v0 = vsub.f32 %v6897_v61, %v2776_v63 }
0x144c   :  { %v2789_v14 = vmul.f32 1.442695, %v2784_v0 }
0x144d   :  { %v2978_v12 = vpop.permute.xlu1 %2977 }
0x1451   :  { %2772 = vmax.xlane.f32.xlu0 %v2771_v44  ;;  %v2980_v21 = vpop.permute.xlu1 %2979 }
0x14a1   :  { %v3186_v45 = vpop.xlane.xlu0 %3185 }
0x14a2   :  { %6307 = vrcp.f32 %v3186_v45 }
0x14a5   :  { %v3183_v23 = vpop.xlane.xlu0 %3182 }
0x14a6   :  { %6309 = vrcp.f32 %v3183_v23 }
0x14a9   :  { %v3564_v46 = vpop.permute.xlu0 %3563 }
0x14aa   :  { %5682 = vmatprep.subr.msk.mxu1 %vm418_vm1, %v3564_v46 }
0x14ac   :  { %v6308_v47 = vpop.eup %6307 }
0x14ad   :  { %v3194_v53 = vmul.f32 %v6308_v47, %v6304_v41  ;;  %v3647_v55 = vpop.permute.xlu0 %3646 }
0x14b0   :  { %v6310_v52 = vpop.eup %6309 }
0x14b1   :  { %v3193_v54 = vmul.f32 %v6310_v52, %v6306_v42 }
0x14b3   :  { %5651 = vmatprep.mubr.msk.f32.mxu1 %vm2770_vm4, %v3193_v54 }
0x14b4   :  { %5652 = vmatmul.mubr.msk.f32.vlgmr.msra.gmra.mrb[40].mxu1 %vm2770_vm4, %v3194_v53 }
0x14b5   :  { %5683 = vmatpush3.xpose.msk.msra.mxu1 %vm418_vm1, %v3564_v46  ;;  %5684 = vmatprep.mubr.msk.f32.mxu1 %vm418_vm1, %v3560_v27 }
0x14b6   :  { %5687 = vmatprep.subr.msk.mxu1 %vm418_vm1, %v3651_v51 }
0x14b8   :  { %5685 = vmatmul.mubr.msk.f32.vlgmr.msra.gmra.mrb[42].mxu1 %vm418_vm1, %v3562_v50 }
0x14b9   :  { %5688 = vmatpush3.xpose.msk.msra.mxu1 %vm418_vm1, %v3651_v51  ;;  %5689 = vmatprep.mubr.msk.f32.mxu1 %vm418_vm1, %v3647_v55 }
0x14bc   :  { %5690 = vmatmul.mubr.msk.f32.vlgmr.msra.gmra.mrb[44].mxu1 %vm418_vm1, %v3649_v56 }
0x14de   :  { %v2773_v1 = vpop.xlane.xlu0 %2772 }
0x14df   :  { %v2783_v2 = vsub.f32 %v6899_v62, %v2773_v1 }
0x14e1   :  { %v2787_v3 = vmul.f32 1.442695, %v2783_v2 }
0x14e3   :  { %6311 = vpow2.f32 %v2787_v3 }
0x14e4   :  { %6313 = vpow2.f32 %v2789_v14 }
0x14ed   :  { %v6312_v15 = vpop.eup %6311 }
0x14ee   :  { %v2795_v4 = vsel %vm2770_vm4, %v6312_v15, 0.0  ;;  %v6314_v5 = vpop.eup %6313 }
0x14ef   :  { %2796 = vadd.xlane.f32.xlu0 %v2795_v4  ;;  %v2798_v6 = vsel %vm2770_vm4, %v6314_v5, 0.0 }
0x14f3   :  { %2799 = vadd.xlane.f32.xlu0 %v2798_v6 }
0x1509   :  { %2981 = vrot.lane.b32.xlu0 %v6865_v35, %s6509_s27 }
0x157c   :  { %v2797_v7 = vpop.xlane.xlu0 %2796 }
0x157d   :  { %6315 = vrcp.f32 %v2797_v7 }
0x1580   :  { %v2800_v61 = vpop.xlane.xlu0 %2799 }
0x1581   :  { %6317 = vrcp.f32 %v2800_v61 }
0x1584   :  { %v2982_v62 = vpop.permute.xlu0 %2981 }
0x1585   :  { %5634 = vmatprep.subr.msk.mxu0 %vm418_vm1, %v2982_v62 }
0x1587   :  { %v6316_v8 = vpop.eup %6315  ;;  %v6964_v9 = vpop.f32.mrb[40].mxu1 }
0x1588   :  { %v6966_v36 = vpop.f32.mrb[41].mxu1  ;;  %v2811_v10 = vmul.f32 %v6316_v8, %v6312_v15 }
0x158a   :  { %5626 = vmatprep.mubr.msk.f32.mxu0 %vm2770_vm4, %v2811_v10 }
0x158b   :  { %v6318_v11 = vpop.eup %6317  ;;  %v5686_v13 = vpop.f32.mrb[42].mxu1 }
0x158c   :  { %v2812_v26 = vmul.f32 %v6318_v11, %v6314_v5  ;;  %v3637_v16 = vpop.f32.mrb[43].mxu1  ;;  %v3736_v17 = vsel %vm2770_vm4, %v5686_v13, -inf }
0x158d   :  { %3737 = vmax.xlane.f32.xlu0 %v3736_v17  ;;  %v3733_v18 = vsel %vm2770_vm4, %v3637_v16, -inf }
0x158e   :  { %3734 = vmax.xlane.f32.xlu1 %v3733_v18  ;;  %5627 = vmatmul.mubr.msk.f32.vlgmr.msra.gmra.mrb[22].mxu0 %vm2770_vm4, %v2812_v26 }
0x158f   :  { %5635 = vmatpush3.xpose.msk.msra.mxu0 %vm418_vm1, %v2982_v62  ;;  %5636 = vmatprep.mubr.msk.f32.mxu0 %vm418_vm1, %v2978_v12  ;;  %v5691_v57 = vpop.f32.mrb[44].mxu1 }
0x1590   :  { %v3724_v20 = vpop.f32.mrb[45].mxu1  ;;  %v3742_v25 = vsel %vm2770_vm4, %v5691_v57, -inf }
0x1591   :  { %v3739_v22 = vsel %vm2770_vm4, %v3724_v20, -inf }
0x1592   :  { %3740 = vmax.xlane.f32.xlu0 %v3739_v22  ;;  %5637 = vmatmul.mubr.msk.f32.vlgmr.msra.gmra.mrb[24].mxu0 %vm418_vm1, %v2980_v21 }
0x1596   :  { %3743 = vmax.xlane.f32.xlu0 %v3742_v25 }
0x159f   :  { %3777 = vrot.lane.b32.xlu1 %v6867_v28, %s6510_s28 }
0x15a3   :  { %4050 = vrot.lane.b32.xlu1 %v6865_v35, %s6511_s29 }
0x15a7   :  { %4046 = vrot.lane.b32.xlu1 %v6854_v48, %s6511_s29 }
0x161a   :  { %v3738_v30 = vpop.xlane.xlu0 %3737 }
0x161b   :  { %v3746_v31 = vsub.f32 %v5686_v13, %v3738_v30  ;;  %v3735_v32 = vpop.xlane.xlu1 %3734 }
0x161c   :  { %v3745_v33 = vsub.f32 %v3637_v16, %v3735_v32 }
0x161d   :  { %v3751_v34 = vmul.f32 1.442695, %v3746_v31 }
0x161e   :  { %v3749_v37 = vmul.f32 1.442695, %v3745_v33 }
0x161f   :  { %6319 = vpow2.f32 %v3751_v34  ;;  %v3778_v39 = vpop.permute.xlu1 %3777  ;;  %v3741_v48 = vpop.xlane.xlu0 %3740 }
0x1620   :  { %6321 = vpow2.f32 %v3749_v37  ;;  %5692 = vmatprep.subr.mxu1 %v3778_v39  ;;  %v3747_v44 = vsub.f32 %v3724_v20, %v3741_v48 }
0x1621   :  { %5693 = vmatpush3.msra.mxu1 %v3778_v39 }
0x1622   :  { %v3753_v23 = vmul.f32 1.442695, %v3747_v44 }
0x1623   :  { %v3744_v42 = vpop.xlane.xlu0 %3743  ;;  %v4051_v56 = vpop.permute.xlu1 %4050 }
0x1624   :  { %v3748_v43 = vsub.f32 %v5691_v57, %v3744_v42 }
0x1626   :  { %v3755_v45 = vmul.f32 1.442695, %v3748_v43 }
0x1627   :  { %v4047_v63 = vpop.permute.xlu1 %4046 }
0x1628   :  { %6323 = vpow2.f32 %v3755_v45 }
0x1629   :  { %v6320_v40 = vpop.eup %6319  ;;  %6325 = vpow2.f32 %v3753_v23 }
0x162a   :  { %v6322_v41 = vpop.eup %6321  ;;  %v3760_v24 = vsel %vm2770_vm4, %v6320_v40, 0.0 }
0x162b   :  { %3761 = vadd.xlane.f32.xlu0 %v3760_v24  ;;  %v3757_v35 = vsel %vm2770_vm4, %v6322_v41, 0.0 }
0x162c   :  { %3758 = vadd.xlane.f32.xlu1 %v3757_v35 }
0x1632   :  { %v6324_v27 = vpop.eup %6323 }
0x1633   :  { %v6326_v46 = vpop.eup %6325  ;;  %v3766_v47 = vsel %vm2770_vm4, %v6324_v27, 0.0 }
0x1634   :  { %v3763_v50 = vsel %vm2770_vm4, %v6326_v46, 0.0 }
0x163d   :  { %4048 = vrot.lane.b32.xlu1 %v6879_v59, %s6511_s29 }
0x1641   :  { %3861 = vrot.lane.b32.xlu0 %v6883_v49, %s6510_s28 }
0x1660   :  { %3767 = vadd.xlane.f32.xlu0 %v3766_v47  ;;  %v2592_v47 = vld [vmem:[#allocation8 + $0x1b0] sm:$0xff] }
0x1661   :  { %v6991_v52 = vpop.f32.mrb[22].mxu0  ;;  %3764 = vadd.xlane.f32.xlu1 %v3763_v50 }
0x1662   :  { %v6993_v59 = vpop.f32.mrb[23].mxu0 }
0x1665   :  { %v5638_v54 = vpop.f32.mrb[24].mxu0 }
0x1666   :  { %v3055_v53 = vpop.f32.mrb[25].mxu0  ;;  %v3154_v55 = vsel %vm2770_vm4, %v5638_v54, -inf }
0x1667   :  { %v3151_v51 = vsel %vm2770_vm4, %v3055_v53, -inf }
0x1672   :  { %4133 = vrot.lane.b32.xlu1 %v6874_v58, %s6511_s29 }
0x1676   :  { %4137 = vrot.lane.b32.xlu0 %v6869_v38, %s6511_s29 }
0x167a   :  { %4135 = vrot.lane.b32.xlu0 %v6891_v60, %s6511_s29 }
0x1696   :  { %3152 = vmax.xlane.f32.xlu1 %v3151_v51  ;;  %v2586_v51 = vld [vmem:[#allocation8 + $0x180] sm:$0xff] }
0x1699   :  { %3155 = vmax.xlane.f32.xlu0 %v3154_v55  ;;  %v2587_v55 = vld [vmem:[#allocation8 + $0x188] sm:$0xff] }
0x16a7   :  { %3196 = vrot.lane.b32.xlu1 %v6867_v28, %s6509_s27 }
0x16b8   :  { %v3762_v0 = vpop.xlane.xlu0 %3761 }
0x16b9   :  { %6327 = vrcp.f32 %v3762_v0  ;;  %v3759_v58 = vpop.xlane.xlu1 %3758 }
0x16ba   :  { %6329 = vrcp.f32 %v3759_v58 }
0x16bc   :  { %v3862_v1 = vpop.permute.xlu0 %3861 }
0x16bd   :  { %5697 = vmatprep.subr.mxu1 %v3862_v1  ;;  %v4049_v3 = vpop.permute.xlu1 %4048 }
0x16c3   :  { %v6328_v38 = vpop.eup %6327 }
0x16c4   :  { %v6330_v2 = vpop.eup %6329  ;;  %v3774_v14 = vmul.f32 %v6328_v38, %v6320_v40 }
0x16c5   :  { %v3773_v60 = vmul.f32 %v6330_v2, %v6322_v41 }
0x16c7   :  { %5694 = vmatprep.mubr.msk.f32.mxu1 %vm2770_vm4, %v3773_v60 }
0x16c8   :  { %5695 = vmatmul.mubr.msk.f32.vlgmr.msra.gmra.mrb[46].mxu1 %vm2770_vm4, %v3774_v14 }
0x16c9   :  { %5698 = vmatpush3.msra.mxu1 %v3862_v1 }
0x16ca   :  { %5716 = vmatprep.subr.msk.mxu1 %vm418_vm1, %v4051_v56 }
0x16ed   :  { %v3768_v15 = vpop.xlane.xlu0 %3767 }
0x16ee   :  { %6331 = vrcp.f32 %v3768_v15  ;;  %v3765_v4 = vpop.xlane.xlu1 %3764 }
0x16ef   :  { %6333 = vrcp.f32 %v3765_v4 }
0x16f1   :  { %v4138_v62 = vpop.permute.xlu0 %4137 }
0x16f2   :  { %v4134_v8 = vpop.permute.xlu1 %4133 }
0x16f5   :  { %v4136_v10 = vpop.permute.xlu0 %4135 }
0x16f8   :  { %v6332_v5 = vpop.eup %6331 }
0x16f9   :  { %v6334_v6 = vpop.eup %6333  ;;  %v3776_v61 = vmul.f32 %v6332_v5, %v6324_v27  ;;  %v2590_v27 = vld [vmem:[#allocation8 + $0x1a0] sm:$0xff] }
0x16fa   :  { %v3775_v7 = vmul.f32 %v6334_v6, %v6326_v46  ;;  %v2591_v46 = vld [vmem:[#allocation8 + $0x1a8] sm:$0xff] }
0x16fb   :  { %v6100_v50 = vpack.c.bf16 %v2591_v46, %v2590_v27  ;;  %v4896_v27 = vld [vmem:[%s7150_s5 + $0x3] ss:$0 sm:$0xff] }
0x16fc   :  { %5699 = vmatprep.mubr.msk.f32.mxu1 %vm2770_vm4, %v3775_v7 }
0x16fd   :  { %5700 = vmatmul.mubr.msk.f32.vlgmr.msra.gmra.mrb[48].mxu1 %vm2770_vm4, %v3776_v61 }
0x16fe   :  { %5717 = vmatpush3.xpose.msk.msra.mxu1 %vm418_vm1, %v4051_v56  ;;  %5718 = vmatprep.mubr.msk.f32.mxu1 %vm418_vm1, %v4047_v63  ;;  %v6108_v56 = vpack.c.bf16 %v2587_v55, %v2586_v51  ;;  %v6379_v55 = vld [vmem:[#allocation2] sm:$0xff] }
0x16ff   :  { %5721 = vmatprep.subr.msk.mxu1 %vm418_vm1, %v4138_v62 }
0x1701   :  { %5719 = vmatmul.mubr.msk.f32.vlgmr.msra.gmra.mrb[50].mxu1 %vm418_vm1, %v4049_v3 }
0x1702   :  { %5722 = vmatpush3.xpose.msk.msra.mxu1 %vm418_vm1, %v4138_v62  ;;  %5723 = vmatprep.mubr.msk.f32.mxu1 %vm418_vm1, %v4134_v8 }
0x1705   :  { %5724 = vmatmul.mubr.msk.f32.vlgmr.msra.gmra.mrb[52].mxu1 %vm418_vm1, %v4136_v10 }
0x1723   :  { %v3153_v11 = vpop.xlane.xlu1 %3152 }
0x1724   :  { %v3163_v12 = vsub.f32 %v3055_v53, %v3153_v11 }
0x1726   :  { %v3167_v13 = vmul.f32 1.442695, %v3163_v12  ;;  %v3156_v26 = vpop.xlane.xlu0 %3155 }
0x1727   :  { %v3164_v16 = vsub.f32 %v5638_v54, %v3156_v26  ;;  %v3197_v17 = vpop.permute.xlu1 %3196  ;;  %v2593_v54 = vld [vmem:[#allocation8 + $0x1b8] sm:$0xff] }
0x1728   :  { %6335 = vpow2.f32 %v3167_v13  ;;  %5644 = vmatprep.subr.mxu0 %v3197_v17  ;;  %v6104_v53 = vpack.c.bf16 %v2593_v54, %v2592_v47  ;;  %v2588_v13 = vld [vmem:[#allocation8 + $0x190] sm:$0xff]  ;;  %v2589_v26 = vld [vmem:[#allocation8 + $0x198] sm:$0xff] }
0x1729   :  { %v3169_v18 = vmul.f32 1.442695, %v3164_v16  ;;  %5645 = vmatpush3.msra.mxu0 %v3197_v17 }
0x172a   :  { %6101 = vmatprep.subr.bf16.mxu0 %v6100_v50 }
0x172b   :  { %6337 = vpow2.f32 %v3169_v18  ;;  %v6112_v18 = vpack.c.bf16 %v2589_v26, %v2588_v13 }
0x1732   :  { %v6336_v57 = vpop.eup %6335 }
0x1733   :  { %v3175_v20 = vsel %vm2770_vm4, %v6336_v57, 0.0 }
0x1734   :  { %3176 = vadd.xlane.f32.xlu0 %v3175_v20  ;;  %v2595_v20 = vld [vmem:[#allocation8 + $0x1c8] sm:$0xff] }
0x1735   :  { %v6338_v21 = vpop.eup %6337 }
0x1736   :  { %v3178_v22 = vsel %vm2770_vm4, %v6338_v21, 0.0 }
0x1738   :  { %3179 = vadd.xlane.f32.xlu0 %v3178_v22  ;;  %v2597_v22 = vld [vmem:[#allocation8 + $0x1d8] sm:$0xff] }
0x179b   :  { %v7019_v25 = vpop.f32.mrb[46].mxu1 }
0x179c   :  { %v7021_v30 = vpop.f32.mrb[47].mxu1 }
0x17c1   :  { %v3177_v31 = vpop.xlane.xlu0 %3176 }
0x17c2   :  { %6339 = vrcp.f32 %v3177_v31 }
0x17c5   :  { %v3180_v32 = vpop.xlane.xlu0 %3179 }
0x17c6   :  { %6341 = vrcp.f32 %v3180_v32 }
0x17cc   :  { %v6340_v33 = vpop.eup %6339 }
0x17cd   :  { %v3191_v34 = vmul.f32 %v6340_v33, %v6336_v57  ;;  %v2594_v57 = vld [vmem:[#allocation8 + $0x1c0] sm:$0xff] }
0x17cf   :  { %5646 = vmatprep.mubr.msk.f32.mxu0 %vm2770_vm4, %v3191_v34 }
0x17d0   :  { %v6342_v37 = vpop.eup %6341  ;;  %v7024_v39 = vpop.f32.mrb[48].mxu1 }
0x17d1   :  { %v3192_v40 = vmul.f32 %v6342_v37, %v6338_v21  ;;  %v7026_v41 = vpop.f32.mrb[49].mxu1  ;;  %v2596_v21 = vld [vmem:[#allocation8 + $0x1d0] sm:$0xff] }
0x17d3   :  { %5647 = vmatmul.mubr.msk.f32.vlgmr.msra.gmra.mrb[26].mxu0 %vm2770_vm4, %v3192_v40  ;;  %v2600_v40 = vld [vmem:[#allocation8 + $0x1f0] sm:$0xff] }
0x17d4   :  { %v5720_v24 = vpop.f32.mrb[50].mxu1  ;;  %6103 = vmatpush3.bf16.msra.mxu0 %v6100_v50 }
0x17d5   :  { %v4124_v35 = vpop.f32.mrb[51].mxu1  ;;  %v4223_v48 = vsel %vm2770_vm4, %v5720_v24, -inf  ;;  %6105 = vmatprep.subr.bf16.mxu0 %v6104_v53 }
0x17d6   :  { %4224 = vmax.xlane.f32.xlu0 %v4223_v48  ;;  %v4220_v44 = vsel %vm2770_vm4, %v4124_v35, -inf }
0x17d8   :  { %v5725_v42 = vpop.f32.mrb[52].mxu1  ;;  %6107 = vmatpush3.bf16.msra.mxu0 %v6104_v53  ;;  %v6378_v53 = vld [vmem:[#allocation2 + $0x8] sm:$0xff] }
0x17d9   :  { %v4211_v43 = vpop.f32.mrb[53].mxu1  ;;  %v4229_v23 = vsel %vm2770_vm4, %v5725_v42, -inf  ;;  %6109 = vmatprep.subr.bf16.mxu0 %v6108_v56 }
0x17da   :  { %4221 = vmax.xlane.f32.xlu0 %v4220_v44  ;;  %v4226_v45 = vsel %vm2770_vm4, %v4211_v43, -inf }
0x17de   :  { %4227 = vmax.xlane.f32.xlu0 %v4226_v45 }
0x17e2   :  { %4230 = vmax.xlane.f32.xlu0 %v4229_v23 }
0x1863   :  { %v4225_v63 = vpop.xlane.xlu0 %4224 }
0x1864   :  { %v4233_v0 = vsub.f32 %v5720_v24, %v4225_v63 }
0x1866   :  { %v4238_v58 = vmul.f32 1.442695, %v4233_v0 }
0x1867   :  { %v4222_v1 = vpop.xlane.xlu0 %4221 }
0x1868   :  { %6343 = vpow2.f32 %v4238_v58  ;;  %v4232_v38 = vsub.f32 %v4124_v35, %v4222_v1 }
0x186a   :  { %v4236_v2 = vmul.f32 1.442695, %v4232_v38  ;;  %v6380_v38 = vld [vmem:[#allocation2 + $0x10] sm:$0xff] }
0x186b   :  { %v4228_v60 = vpop.xlane.xlu0 %4227 }
0x186c   :  { %6345 = vpow2.f32 %v4236_v2  ;;  %v4234_v14 = vsub.f32 %v4211_v43, %v4228_v60  ;;  %v6381_v60 = vld [vmem:[#allocation2 + $0x18] sm:$0xff] }
0x186e   :  { %v4240_v5 = vmul.f32 1.442695, %v4234_v14 }
0x186f   :  { %v4231_v3 = vpop.xlane.xlu0 %4230 }
0x1870   :  { %v4235_v15 = vsub.f32 %v5725_v42, %v4231_v3  ;;  %v4606_v3 = vld [vmem:[#allocation8 + $0x200] sm:$0xff] }
0x1872   :  { %v7033_v4 = vpop.eup %6343  ;;  %v4242_v6 = vmul.f32 1.442695, %v4235_v15  ;;  %v4607_v15 = vld [vmem:[#allocation8 + $0x208] sm:$0xff] }
0x1873   :  { %v4247_v7 = vsel %vm2770_vm4, %v7033_v4, 0.0 }
0x1874   :  { %6347 = vpow2.f32 %v4242_v6  ;;  %4248 = vadd.xlane.f32.xlu0 %v4247_v7  ;;  %v4609_v6 = vld [vmem:[#allocation8 + $0x218] sm:$0xff] }
0x1875   :  { %6349 = vpow2.f32 %v4240_v5  ;;  %v6132_v5 = vpack.c.bf16 %v4607_v15, %v4606_v3 }
0x1876   :  { %v6346_v61 = vpop.eup %6345 }
0x1877   :  { %v4244_v62 = vsel %vm2770_vm4, %v6346_v61, 0.0 }
0x1878   :  { %4245 = vadd.xlane.f32.xlu1 %v4244_v62 }
0x187e   :  { %v7038_v8 = vpop.eup %6347 }
0x187f   :  { %v4253_v10 = vsel %vm2770_vm4, %v7038_v8, 0.0  ;;  %v7042_v11 = vpop.eup %6349 }
0x1880   :  { %4254 = vadd.xlane.f32.xlu0 %v4253_v10  ;;  %v4250_v12 = vsel %vm2770_vm4, %v7042_v11, 0.0 }
0x1884   :  { %4251 = vadd.xlane.f32.xlu0 %v4250_v12 }
0x1889   :  { %4348 = vrot.lane.b32.xlu1 %v6883_v49, %s6511_s29  ;;  %v6116_v49 = vpack.c.bf16 %v2595_v20, %v2594_v57 }
0x189a   :  { %4264 = vrot.lane.b32.xlu0 %v6867_v28, %s6511_s29  ;;  %v6120_v28 = vpack.c.bf16 %v2597_v22, %v2596_v21 }
0x18a6   :  { %v5648_v16 = vpop.f32.mrb[26].mxu0 }
0x18a7   :  { %v3271_v17 = vpop.f32.mrb[27].mxu0 }
0x18a8   :  { %5662 = vmatprep.mubr.msk.f32.mxu0 %vm418_vm1, %v3271_v17 }
0x18a9   :  { %5663 = vmatmul.mubr.msk.f32.vlgmr.msra.gmra.mrb[28].mxu0 %vm418_vm1, %v5648_v16 }
0x18aa   :  { %5665 = vmatprep.mubr.msk.f32.mxu0 %vm418_vm1, %v6966_v36  ;;  %6111 = vmatpush3.bf16.msra.mxu0 %v6108_v56  ;;  %v2599_v36 = vld [vmem:[#allocation8 + $0x1e8] sm:$0xff] }
0x18ab   :  { %6113 = vmatprep.subr.bf16.mxu0 %v6112_v18 }
0x18ad   :  { %5666 = vmatmul.mubr.msk.f32.gmra.mrb[30].mxu0 %vm418_vm1, %v6964_v9 }
0x18ae   :  { %6115 = vmatpush3.bf16.msra.mxu0 %v6112_v18  ;;  %5676 = vmatprep.mubr.msk.f32.mxu0 %vm418_vm1, %v6993_v59 }
0x18af   :  { %6117 = vmatprep.subr.bf16.mxu0 %v6116_v49 }
0x18b1   :  { %5677 = vmatmul.mubr.msk.f32.vlgmr.msra.gmra.mrb[28].mxu0 %vm418_vm1, %v6991_v52 }
0x18b2   :  { %5679 = vmatprep.mubr.msk.f32.mxu0 %vm418_vm1, %v6919_v29  ;;  %6119 = vmatpush3.bf16.msra.mxu0 %v6116_v49  ;;  %v2598_v29 = vld [vmem:[#allocation8 + $0x1e0] sm:$0xff] }
0x18b3   :  { %6121 = vmatprep.subr.bf16.mxu0 %v6120_v28  ;;  %v6124_v59 = vpack.c.bf16 %v2599_v36, %v2598_v29  ;;  %v4612_v36 = vld [vmem:[#allocation8 + $0x230] sm:$0xff] }
0x18b5   :  { %5680 = vmatmul.mubr.msk.f32.gmra.mrb[30].mxu0 %vm418_vm1, %v6917_v19 }
0x18b6   :  { %6123 = vmatpush3.bf16.msra.mxu0 %v6120_v28  ;;  %5710 = vmatprep.mubr.msk.f32.mxu0 %vm418_vm1, %v7021_v30  ;;  %v4610_v28 = vld [vmem:[#allocation8 + $0x220] sm:$0xff] }
0x18b9   :  { %5711 = vmatmul.mubr.msk.f32.vlgmr.msra.gmra.mrb[28].mxu0 %vm418_vm1, %v7019_v25 }
0x18ba   :  { %5713 = vmatprep.mubr.msk.f32.mxu0 %vm418_vm1, %v7026_v41  ;;  %v2601_v41 = vld [vmem:[#allocation8 + $0x1f8] sm:$0xff] }
0x18bb   :  { %v6128_v42 = vpack.c.bf16 %v2601_v41, %v2600_v40  ;;  %v4620_v40 = vld [vmem:[#allocation8 + $0x270] sm:$0xff]  ;;  %v4621_v41 = vld [vmem:[#allocation8 + $0x278] sm:$0xff] }
0x18bd   :  { %5714 = vmatmul.mubr.msk.f32.gmra.mrb[30].mxu0 %vm418_vm1, %v7024_v39 }
0x1901   :  { %v4249_v52 = vpop.xlane.xlu0 %4248 }
0x1905   :  { %v4246_v9 = vpop.xlane.xlu1 %4245 }
0x1906   :  { %6351 = vrcp.f32 %v4246_v9  ;;  %v4611_v9 = vld [vmem:[#allocation8 + $0x228] sm:$0xff] }
0x1907   :  { %6353 = vrcp.f32 %v4249_v52  ;;  %v6140_v29 = vpack.c.bf16 %v4611_v9, %v4610_v28  ;;  %v4613_v52 = vld [vmem:[#allocation8 + $0x238] sm:$0xff] }
0x1909   :  { %v4349_v19 = vpop.permute.xlu1 %4348 }
0x190a   :  { %5731 = vmatprep.subr.mxu0 %v4349_v19 }
0x190b   :  { %5732 = vmatpush3.msra.mxu0 %v4349_v19  ;;  %v4614_v19 = vld [vmem:[#allocation8 + $0x240] sm:$0xff] }
0x190c   :  { %6125 = vmatprep.subr.bf16.mxu0 %v6124_v59 }
0x190d   :  { %v4255_v30 = vpop.xlane.xlu0 %4254 }
0x190e   :  { %6355 = vrcp.f32 %v4255_v30  ;;  %v4615_v30 = vld [vmem:[#allocation8 + $0x248] sm:$0xff] }
0x1910   :  { %v6352_v31 = vpop.eup %6351 }
0x1911   :  { %v4252_v25 = vpop.xlane.xlu0 %4251  ;;  %v4260_v32 = vmul.f32 %v6352_v31, %v6346_v61  ;;  %v6354_v33 = vpop.eup %6353  ;;  %v6148_v31 = vpack.c.bf16 %v4615_v30, %v4614_v19 }
0x1912   :  { %6357 = vrcp.f32 %v4252_v25  ;;  %v4261_v37 = vmul.f32 %v6354_v33, %v7033_v4  ;;  %v4608_v4 = vld [vmem:[#allocation8 + $0x210] sm:$0xff] }
0x1913   :  { %5728 = vmatprep.mubr.msk.f32.mxu1 %vm2770_vm4, %v4260_v32  ;;  %v6136_v7 = vpack.c.bf16 %v4609_v6, %v4608_v4  ;;  %v4616_v25 = vld [vmem:[#allocation8 + $0x250] sm:$0xff]  ;;  %v4617_v32 = vld [vmem:[#allocation8 + $0x258] sm:$0xff] }
0x1914   :  { %v6152_v33 = vpack.c.bf16 %v4617_v32, %v4616_v25 }
0x1915   :  { %v4265_v34 = vpop.permute.xlu0 %4264 }
0x1916   :  { %5726 = vmatprep.subr.mxu1 %v4265_v34 }
0x1917   :  { %5727 = vmatpush3.msra.mxu1 %v4265_v34  ;;  %v4618_v34 = vld [vmem:[#allocation8 + $0x260] sm:$0xff] }
0x1918   :  { %5729 = vmatmul.mubr.msk.f32.vlgmr.msra.gmra.mrb[54].mxu1 %vm2770_vm4, %v4261_v37  ;;  %v6356_v39 = vpop.eup %6355  ;;  %6133 = vmatprep.subr.bf16.mxu1 %v6132_v5  ;;  %v4619_v37 = vld [vmem:[#allocation8 + $0x268] sm:$0xff] }
0x1919   :  { %v4263_v48 = vmul.f32 %v6356_v39, %v7038_v8  ;;  %6135 = vmatpush3.bf16.msra.mxu1 %v6132_v5  ;;  %v6156_v39 = vpack.c.bf16 %v4619_v37, %v4618_v34 }
0x191a   :  { %6137 = vmatprep.subr.bf16.mxu1 %v6136_v7 }
0x191c   :  { %v6358_v24 = vpop.eup %6357 }
0x191d   :  { %v4262_v35 = vmul.f32 %v6358_v24, %v7042_v11  ;;  %6139 = vmatpush3.bf16.msra.mxu1 %v6136_v7  ;;  %v6160_v24 = vpack.c.bf16 %v4621_v41, %v4620_v40 }
0x191e   :  { %6141 = vmatprep.subr.bf16.mxu1 %v6140_v29 }
0x191f   :  { %5733 = vmatprep.mubr.msk.f32.mxu0 %vm2770_vm4, %v4262_v35 }
0x1920   :  { %5734 = vmatmul.mubr.msk.f32.vlgmr.msra.gmra.mrb[32].mxu0 %vm2770_vm4, %v4263_v48 }
0x1921   :  { %6127 = vmatpush3.bf16.msra.mxu0 %v6124_v59  ;;  %6143 = vmatpush3.bf16.msra.mxu1 %v6140_v29  ;;  %v6144_v59 = vpack.c.bf16 %v4613_v52, %v4612_v36 }
0x1922   :  { %6129 = vmatprep.subr.bf16.mxu0 %v6128_v42 }
0x1923   :  { %6145 = vmatprep.subr.bf16.mxu1 %v6144_v59 }
0x1925   :  { %6131 = vmatpush3.bf16.msra.mxu0 %v6128_v42  ;;  %6147 = vmatpush3.bf16.msra.mxu1 %v6144_v59 }
0x1926   :  { %6149 = vmatprep.subr.bf16.mxu1 %v6148_v31 }
0x1929   :  { %6151 = vmatpush3.bf16.msra.mxu1 %v6148_v31 }
0x192a   :  { %6153 = vmatprep.subr.bf16.mxu1 %v6152_v33 }
0x192d   :  { %6155 = vmatpush3.bf16.msra.mxu1 %v6152_v33 }
0x192e   :  { %6157 = vmatprep.subr.bf16.mxu1 %v6156_v39 }
0x1931   :  { %6159 = vmatpush3.bf16.msra.mxu1 %v6156_v39 }
0x1932   :  { %6161 = vmatprep.subr.bf16.mxu1 %v6160_v24 }
0x1935   :  { %6163 = vmatpush3.bf16.msra.mxu1 %v6160_v24 }
0x19eb   :  { %v5730_v43 = vpop.f32.mrb[54].mxu1 }
0x19ec   :  { %v4339_v44 = vpop.f32.mrb[55].mxu1 }
0x19ed   :  { %5744 = vmatprep.mubr.msk.f32.mxu0 %vm418_vm1, %v4339_v44 }
0x19ee   :  { %5745 = vmatmul.mubr.msk.f32.vlgmr.msra.gmra.mrb[28].mxu0 %vm418_vm1, %v5730_v43 }
0x19f3   :  { %v5735_v45 = vpop.f32.mrb[32].mxu0 }
0x19f4   :  { %v4423_v23 = vpop.f32.mrb[33].mxu0 }
0x19f5   :  { %5747 = vmatprep.mubr.msk.f32.mxu0 %vm418_vm1, %v4423_v23 }
0x19f6   :  { %5748 = vmatmul.mubr.msk.f32.gmra.mrb[30].mxu0 %vm418_vm1, %v5735_v45 }
0x1ac1   :  { %v5746_v46 = vpop.f32.mrb[28].mxu0 }
0x1ac2   :  { %v4538_v47 = vadd.f32 %v5746_v46, %v4896_v27  ;;  %v4510_v50 = vpop.f32.mrb[29].mxu0 }
0x1ac3   :  { %v4537_v54 = vadd.f32 %v4896_v27, %v4510_v50 }
0x1ac4   :  { %v4542_v51 = vadd.f32 %v6378_v53, %v4538_v47 }
0x1ac5   :  { %v4541_v56 = vadd.f32 %v6379_v55, %v4537_v54  ;;  %v7101_v55 = vld [vmem:[%s7150_s5 + $0x5] ss:$0 sm:$0xff] }
0x1ac6   :  { %4547 = vadd.xlane.f32.xlu1 %v4542_v51 }
0x1ac7   :  { %4545 = vadd.xlane.f32.xlu0 %v4541_v56 }
0x1ac9   :  { %v5749_v63 = vpop.f32.mrb[30].mxu0 }
0x1aca   :  { %v4520_v0 = vpop.f32.mrb[31].mxu0  ;;  %v4540_v1 = vadd.f32 %v5749_v63, %v4896_v27 }
0x1acb   :  { %v4539_v58 = vadd.f32 %v4896_v27, %v4520_v0 }
0x1acc   :  { %v4544_v14 = vadd.f32 %v6381_v60, %v4540_v1 }
0x1acd   :  { %v4543_v2 = vadd.f32 %v6380_v38, %v4539_v58  ;;  %v7108_v58 = vld [vmem:[%s7150_s5 + $0x6] ss:$0 sm:$0xff] }
0x1acf   :  { %4549 = vadd.xlane.f32.xlu0 %v4543_v2 }
0x1ad3   :  { %4551 = vadd.xlane.f32.xlu0 %v4544_v14 }
0x1b53   :  { %v4548_v61 = vpop.xlane.xlu1 %4547 }
0x1b54   :  { %v4554_v62 = vmul.f32 0.0078125, %v4548_v61  ;;  %v4546_v8 = vpop.xlane.xlu0 %4545  ;;  %v4899_v61 = vld [vmem:[%s7150_s5 + $0x4] ss:$0 sm:$0xff]  ;;  %s6512_s5 = smov [#allocation10]  }
0x1b55   :  { %v4553_v10 = vmul.f32 0.0078125, %v4546_v8  ;;  %s4776_s25 = sshll.u32 %s6512_s5, 4  ;;  %s4777_s25 = int_to_ptr.vmem [resolvable:$true] %s4776_s25 }
0x1b56   :  { %v4558_v11 = vsub.f32 %v4542_v51, %v4554_v62  ;;  %s6470_s26 = scalar_lea.vmem %s4777_s25, 512  ;;  %p6475_p5 = scmp.lt.s32.totalorder %s4777_s25, %s4777_s25 }
0x1b57   :  { %v7086_v12 = vsub.f32 %v4541_v56, %v4553_v10  ;;  %p6471_p4 = scmp.ne.s32.totalorder %s4777_s25, %s6470_s26  ;;  %p6476_p6 = scmp.lt.s32.totalorder %s6470_s26, %s6470_s26 }
0x1b58   :  { %v4562_v13 = vmul.f32 %v4558_v11, %v4558_v11 }
0x1b59   :  { %v4561_v16 = vmul.f32 %v7086_v12, %v7086_v12  ;;  %p6477_p7 = por %p6476_p6, %p6475_p5 }
0x1b5a   :  { %4567 = vadd.xlane.f32.xlu0 %v4562_v13 }
0x1b5b   :  { %p6478_p8 = pnand %p6477_p7, %p6471_p4 }
0x1b5c   :  { %v4550_v26 = vpop.xlane.xlu0 %4549 }
0x1b5d   :  { %v4555_v17 = vmul.f32 0.0078125, %v4550_v26 }
0x1b5e   :  { %4565 = vadd.xlane.f32.xlu0 %v4561_v16 }
0x1b5f   :  { %v7090_v18 = vsub.f32 %v4543_v2, %v4555_v17 }
0x1b60   :  { %v4552_v57 = vpop.xlane.xlu0 %4551 }
0x1b61   :  { %v4556_v20 = vmul.f32 0.0078125, %v4552_v57  ;;  %v4563_v49 = vmul.f32 %v7090_v18, %v7090_v18 }
0x1b63   :  { %v7094_v21 = vsub.f32 %v4544_v14, %v4556_v20  ;;  %4569 = vadd.xlane.f32.xlu0 %v4563_v49 }
0x1b65   :  { %v4564_v22 = vmul.f32 %v7094_v21, %v7094_v21 }
0x1b67   :  { %4571 = vadd.xlane.f32.xlu0 %v4564_v22 }
0x1be7   :  { %v4568_v35 = vpop.xlane.xlu0 %4567 }
0x1be8   :  { %v4574_v48 = vmul.f32 0.0078125, %v4568_v35 }
0x1bea   :  { %v4578_v42 = vadd.f32 1e-05, %v4574_v48 }
0x1beb   :  { %v4566_v43 = vpop.xlane.xlu0 %4565 }
0x1bec   :  { %6359 = vrsqrt.f32 %v4578_v42  ;;  %v4573_v44 = vmul.f32 0.0078125, %v4566_v43 }
0x1bee   :  { %v4577_v45 = vadd.f32 1e-05, %v4573_v44 }
0x1bf0   :  { %6361 = vrsqrt.f32 %v4577_v45  ;;  %v4570_v23 = vpop.xlane.xlu0 %4569 }
0x1bf1   :  { %v4575_v27 = vmul.f32 0.0078125, %v4570_v23 }
0x1bf3   :  { %v4579_v46 = vadd.f32 1e-05, %v4575_v27 }
0x1bf4   :  { %v4572_v47 = vpop.xlane.xlu0 %4571 }
0x1bf5   :  { %6363 = vrsqrt.f32 %v4579_v46  ;;  %v4576_v50 = vmul.f32 0.0078125, %v4572_v47 }
0x1bf6   :  { %v6360_v54 = vpop.eup %6359 }
0x1bf7   :  { %v4580_v53 = vadd.f32 1e-05, %v4576_v50  ;;  %v4586_v51 = vmul.f32 %v6360_v54, %v4558_v11 }
0x1bf9   :  { %6365 = vrsqrt.f32 %v4580_v53  ;;  %v4594_v0 = vmul.f32 %v7101_v55, %v4586_v51 }
0x1bfa   :  { %v6362_v56 = vpop.eup %6361 }
0x1bfb   :  { %v4585_v63 = vmul.f32 %v6362_v56, %v7086_v12  ;;  %v4602_v60 = vadd.f32 %v7108_v58, %v4594_v0 }
0x1bfd   :  { %v4593_v1 = vmul.f32 %v7101_v55, %v4585_v63 }
0x1bff   :  { %v6364_v38 = vpop.eup %6363  ;;  %v4601_v2 = vadd.f32 %v7108_v58, %v4593_v1 }
0x1c00   :  { %v4587_v14 = vmul.f32 %v6364_v38, %v7090_v18 }
0x1c01   :  { %5782 = vmatprep.mubr.f32.mxu1 %v4601_v2 }
0x1c02   :  { %5783 = vmatmul.mubr.f32.vlgmr.msra.gmra.mrb[56].mxu1 %v4602_v60  ;;  %v4595_v3 = vmul.f32 %v7101_v55, %v4587_v14 }
0x1c03   :  { %v6366_v15 = vpop.eup %6365 }
0x1c04   :  { %v4603_v4 = vadd.f32 %v7108_v58, %v4595_v3  ;;  %v4588_v5 = vmul.f32 %v6366_v15, %v7094_v21 }
0x1c06   :  { %5785 = vmatprep.mubr.f32.mxu1 %v4603_v4  ;;  %v4596_v6 = vmul.f32 %v7101_v55, %v4588_v5 }
0x1c08   :  { %v4604_v7 = vadd.f32 %v7108_v58, %v4596_v6 }
0x1c0a   :  { %5786 = vmatmul.mubr.f32.gmra.mrb[58].mxu1 %v4604_v7 }
0x1cd5   :  { %v5784_v62 = vpop.f32.mrb[56].mxu1 }
0x1cd6   :  { %v4698_v8 = vadd.f32 %v5784_v62, %v4899_v61  ;;  %v4692_v10 = vpop.f32.mrb[57].mxu1 }
0x1cd7   :  { %v4693_v11 = vadd.f32 %v4899_v61, %v4692_v10 }
0x1cd8   :  { %v4712_v12 = vadd.f32 %v4698_v8, %v4602_v60 }
0x1cd9   :  { %v4711_v13 = vadd.f32 %v4693_v11, %v4601_v2 }
0x1cda   :  { %4717 = vadd.xlane.f32.xlu0 %v4712_v12 }
0x1cdb   :  { %4715 = vadd.xlane.f32.xlu1 %v4711_v13 }
0x1cdd   :  { %v5787_v26 = vpop.f32.mrb[58].mxu1 }
0x1cde   :  { %v4708_v16 = vadd.f32 %v5787_v26, %v4899_v61  ;;  %v4702_v17 = vpop.f32.mrb[59].mxu1 }
0x1cdf   :  { %v4703_v18 = vadd.f32 %v4899_v61, %v4702_v17 }
0x1ce0   :  { %v4714_v57 = vadd.f32 %v4708_v16, %v4604_v7 }
0x1ce1   :  { %v4713_v20 = vadd.f32 %v4703_v18, %v4603_v4 }
0x1ce2   :  { %4721 = vadd.xlane.f32.xlu0 %v4714_v57 }
0x1ce3   :  { %4719 = vadd.xlane.f32.xlu1 %v4713_v20 }
0x1d67   :  { %v4718_v49 = vpop.xlane.xlu0 %4717 }
0x1d68   :  { %v4724_v21 = vmul.f32 0.0078125, %v4718_v49  ;;  %v4716_v22 = vpop.xlane.xlu1 %4715 }
0x1d69   :  { %v4723_v28 = vmul.f32 0.0078125, %v4716_v22 }
0x1d6a   :  { %v4728_v9 = vsub.f32 %v4712_v12, %v4724_v21 }
0x1d6b   :  { %v4727_v29 = vsub.f32 %v4711_v13, %v4723_v28 }
0x1d6c   :  { %v4732_v36 = vmul.f32 %v4728_v9, %v4728_v9 }
0x1d6d   :  { %v4731_v52 = vmul.f32 %v4727_v29, %v4727_v29 }
0x1d6e   :  { %4737 = vadd.xlane.f32.xlu0 %v4732_v36 }
0x1d6f   :  { %4735 = vadd.xlane.f32.xlu1 %v4731_v52  ;;  %v4722_v59 = vpop.xlane.xlu0 %4721 }
0x1d70   :  { %v4726_v19 = vmul.f32 0.0078125, %v4722_v59  ;;  %v4720_v30 = vpop.xlane.xlu1 %4719 }
0x1d71   :  { %v4725_v31 = vmul.f32 0.0078125, %v4720_v30 }
0x1d72   :  { %v4730_v25 = vsub.f32 %v4714_v57, %v4726_v19 }
0x1d73   :  { %v4729_v32 = vsub.f32 %v4713_v20, %v4725_v31 }
0x1d74   :  { %v4734_v33 = vmul.f32 %v4730_v25, %v4730_v25 }
0x1d75   :  { %v4733_v34 = vmul.f32 %v4729_v32, %v4729_v32 }
0x1d76   :  { %4741 = vadd.xlane.f32.xlu0 %v4734_v33 }
0x1d77   :  { %4739 = vadd.xlane.f32.xlu1 %v4733_v34 }
0x1dfb   :  { %v4738_v37 = vpop.xlane.xlu0 %4737 }
0x1dfc   :  { %v4744_v39 = vmul.f32 0.0078125, %v4738_v37  ;;  %v4736_v40 = vpop.xlane.xlu1 %4735 }
0x1dfd   :  { %v4743_v41 = vmul.f32 0.0078125, %v4736_v40 }
0x1dfe   :  { %v4748_v24 = vadd.f32 1e-05, %v4744_v39 }
0x1dff   :  { %v4747_v35 = vadd.f32 1e-05, %v4743_v41 }
0x1e00   :  { %6367 = vrsqrt.f32 %v4748_v24 }
0x1e01   :  { %6369 = vrsqrt.f32 %v4747_v35 }
0x1e03   :  { %v4742_v48 = vpop.xlane.xlu0 %4741 }
0x1e04   :  { %v4746_v42 = vmul.f32 0.0078125, %v4742_v48  ;;  %v4740_v43 = vpop.xlane.xlu1 %4739 }
0x1e05   :  { %v4745_v44 = vmul.f32 0.0078125, %v4740_v43 }
0x1e06   :  { %v4750_v45 = vadd.f32 1e-05, %v4746_v42 }
0x1e07   :  { %v4749_v23 = vadd.f32 1e-05, %v4745_v44 }
0x1e08   :  { %6371 = vrsqrt.f32 %v4750_v45 }
0x1e09   :  { %6373 = vrsqrt.f32 %v4749_v23 }
0x1e0a   :  { %v6368_v27 = vpop.eup %6367 }
0x1e0b   :  { %v6370_v46 = vpop.eup %6369  ;;  %v4756_v47 = vmul.f32 %v6368_v27, %v4728_v9 }
0x1e0c   :  { %v4755_v50 = vmul.f32 %v6370_v46, %v4727_v29 }
0x1e0d   :  { %v4760_v54 = vmul.f32 %v7101_v55, %v4756_v47 }
0x1e0e   :  { %v4759_v53 = vmul.f32 %v7101_v55, %v4755_v50 }
0x1e0f   :  { %v4764_v51 = vadd.f32 %v7108_v58, %v4760_v54 }
0x1e10   :  { %v4763_v56 = vadd.f32 %v7108_v58, %v4759_v53 }
0x1e11   :  { %4768 = vst [vmem:[#allocation10 + $0x8] sm:$0xff] %v4764_v51 }
0x1e12   :  { %v6372_v63 = vpop.eup %6371  ;;  %4767 = vst [vmem:[#allocation10] sm:$0xff] %v4763_v56 }
0x1e13   :  { %v6374_v0 = vpop.eup %6373  ;;  %v4758_v1 = vmul.f32 %v6372_v63, %v4730_v25 }
0x1e14   :  { %v4757_v38 = vmul.f32 %v6374_v0, %v4729_v32 }
0x1e15   :  { %v4762_v2 = vmul.f32 %v7101_v55, %v4758_v1 }
0x1e16   :  { %v4761_v60 = vmul.f32 %v7101_v55, %v4757_v38 }
0x1e17   :  { %v4766_v14 = vadd.f32 %v7108_v58, %v4762_v2 }
0x1e18   :  { %v4765_v3 = vadd.f32 %v7108_v58, %v4761_v60 }
0x1e19   :  { %4770 = vst [vmem:[#allocation10 + $0x18] sm:$0xff] %v4766_v14 }
0x1e1a   :  { %4769 = vst [vmem:[#allocation10 + $0x10] sm:$0xff] %v4765_v3 }
0x1e1b   :  { %6481 = shalt.err (!%p6478_p8)
}
0x1e1c   :  { %s6482_s29 = scalar_lea.hbm %s7151_s6, 512 }
0x1e1d   :  { %p6483_p9 = scmp.ne.s32.totalorder %s7151_s6, %s6482_s29  ;;  %p6486_p10 = scmp.lt.u32.totalorder %s6482_s29, %s7151_s6 }
0x1e1f   :  { %p6488_p11 = pnand %p6486_p10, %p6483_p9 }
0x1e21   :  { %6491 = shalt.err (!%p6488_p11)
}
0x1e22   :  { %4782 = dma.vmem_to_hbm [thread:$0]  %s4777_s25, 512, %s7151_s6, [#allocation4], %s6502_s9, %s6502_s9, %s6503_s10  }
0x1e23   :  { %6498 = dma.done.wait [#allocation4], 512  }
0x1e24   :  { %6499 = vsyncadd [#allocation4], 4294966784 }
0x1e25   :  { %4786 = vsyncpa [#allocation3], 1 }
0x1e26   :  { %4787 = vsyncpa [#allocation6], 1 }
0x1e27   :  { %4788 = vsyncpa [#allocation9], 1 }
0x1e28   :  { %4789 = vsyncpa [#allocation4], 1 }

</bundles_post_ra>
